<compile_context>
chip_gen: v7x
topology: tpu7x:2x2x1
jax: 0.10.0
libtpu: 0.0.40
codegen_flags: <defaults>
</compile_context>

<pallas_src>
import jax
import jax.numpy as jnp
from jax.experimental import pallas as pl
from jax.experimental.pallas import tpu as pltpu


def _round_up(x, m):
    return (x + m - 1) // m * m


# ----------------------------- Pallas kernels --------------------------------
def _matmul_bias_relu_kernel(a_ref, w_ref, b_ref, o_ref):
    # a: (TM, Kp) bf16, w: (Kp, OCp) bf16, b: (1, OCp) f32 -> o: (TM, OCp)
    acc = jnp.dot(a_ref[...], w_ref[...], preferred_element_type=jnp.float32)
    o_ref[...] = jnp.maximum(acc + b_ref[...], 0.0).astype(o_ref.dtype)


def matmul_bias_relu(a, w, b, *, out_dtype=jnp.bfloat16, num_blocks=1):
    """ReLU(a @ w + b).  a:(M,Kp) bf16, w:(Kp,OCp) bf16, b:(1,OCp) f32."""
    M, K = a.shape
    Kw, OC = w.shape
    assert K == Kw and K % 128 == 0 and OC % 128 == 0, (K, OC)

    if num_blocks <= 1:
        tm = M                                   # one full-M block (block == array dim)
    else:
        tm = _round_up(pl.cdiv(M, num_blocks), 8)  # 8-aligned, last block partial
    grid = (pl.cdiv(M, tm),)

    return pl.pallas_call(
        _matmul_bias_relu_kernel,
        out_shape=jax.ShapeDtypeStruct((M, OC), out_dtype),
        grid=grid,
        in_specs=[
            pl.BlockSpec((tm, K), lambda i: (i, 0)),
            pl.BlockSpec((K, OC), lambda i: (0, 0)),   # grid-invariant: DMA'd once
            pl.BlockSpec((1, OC), lambda i: (0, 0)),   # grid-invariant
        ],
        out_specs=pl.BlockSpec((tm, OC), lambda i: (i, 0)),
        compiler_params=pltpu.CompilerParams(
            dimension_semantics=("parallel",)),
    )(a, w, b)


def _tail_kernel(a_ref, w4_ref, b4_ref, w5_ref, b5_ref, w6_ref, b6_ref, o_ref):
    # conv4 (as matmul) + fc1 + fc2, ReLU after each; intermediates stay on-chip.
    h = jnp.dot(a_ref[...], w4_ref[...], preferred_element_type=jnp.float32)
    h = jnp.maximum(h + b4_ref[...], 0.0)
    h = jnp.dot(h.astype(w5_ref.dtype), w5_ref[...],
                preferred_element_type=jnp.float32)
    h = jnp.maximum(h + b5_ref[...], 0.0)
    h = jnp.dot(h.astype(w6_ref.dtype), w6_ref[...],
                preferred_element_type=jnp.float32)
    o_ref[...] = jnp.maximum(h + b6_ref[...], 0.0).astype(o_ref.dtype)


def fused_conv4_fc1_fc2(a, w4, b4, w5, b5, w6, b6):
    M = a.shape[0]
    OC = w6.shape[1]
    # Tiny arrays: everything fits in VMEM whole, no grid needed.
    return pl.pallas_call(
        _tail_kernel,
        out_shape=jax.ShapeDtypeStruct((M, OC), jnp.float32),
    )(a, w4, b4, w5, b5, w6, b6)


# ------------------------------- conv glue -----------------------------------
def _im2col_nhwc(x, c_real, kh, kw, sh, sw, k_pad, dtype):
    """x:(N,H,W,C>=c_real) NHWC -> (N*OH*OW, k_pad) patches, feature order (KH,KW,C).

    Only the first c_real channels are gathered (the rest are lane padding from
    the previous layer); the K axis is zero-padded to k_pad inside the concat so
    no separate HBM pad pass is needed.
    """
    N, H, W, _ = x.shape
    OH = (H - kh) // sh + 1
    OW = (W - kw) // sw + 1
    x = x.astype(dtype)
    cols = []
    for i in range(kh):
        for j in range(kw):
            cols.append(
                x[:, i:i + sh * (OH - 1) + 1:sh, j:j + sw * (OW - 1) + 1:sw, :c_real])
    k = kh * kw * c_real
    if k_pad > k:
        cols.append(jnp.zeros((N, OH, OW, k_pad - k), dtype))
    patches = jnp.concatenate(cols, axis=-1)
    return patches.reshape(N * OH * OW, k_pad), OH, OW


def conv2d_relu_nhwc(x, wm, bp, c_real, kh, kw, stride, *, num_blocks=1):
    """NHWC valid conv + ReLU via im2col + the Pallas matmul kernel.

    Output keeps OC zero-padded to 128 (lane-dense store); the next layer only
    gathers its real channels.
    """
    k_pad, oc_pad = wm.shape
    patches, OH, OW = _im2col_nhwc(x, c_real, kh, kw, stride[0], stride[1],
                                   k_pad, wm.dtype)
    out = matmul_bias_relu(patches, wm, bp, out_dtype=jnp.bfloat16,
                           num_blocks=num_blocks)
    return out.reshape(x.shape[0], OH, OW, oc_pad)


# ------------------------------ parameters -----------------------------------
_OC_PAD = 128


def init_raw_params(key):
    """Parameters in PyTorch layout (Conv2d: (OC,IC,KH,KW), Linear: (out,in))."""
    ks = jax.random.split(key, 12)
    s = 0.05

    def normal(k, shape):
        return (s * jax.random.normal(k, shape)).astype(jnp.float32)

    return {
        "conv1_w": normal(ks[0], (20, 3, 5, 5)),   "conv1_b": normal(ks[1], (20,)),
        "conv2_w": normal(ks[2], (20, 20, 5, 5)),  "conv2_b": normal(ks[3], (20,)),
        "conv3_w": normal(ks[4], (20, 20, 5, 5)),  "conv3_b": normal(ks[5], (20,)),
        "conv4_w": normal(ks[6], (40, 20, 10, 5)), "conv4_b": normal(ks[7], (40,)),
        "fc1_w": normal(ks[8], (40, 40)),          "fc1_b": normal(ks[9], (40,)),
        "fc2_w": normal(ks[10], (20, 40)),         "fc2_b": normal(ks[11], (20,)),
    }


def _pack_conv(w, b, dtype=jnp.bfloat16):
    OC, IC, KH, KW = w.shape
    K = KH * KW * IC
    k_pad = _round_up(K, 128)
    wm = w.transpose(2, 3, 1, 0).reshape(K, OC)            # feature order (KH,KW,C)
    wm = jnp.pad(wm, ((0, k_pad - K), (0, _OC_PAD - OC))).astype(dtype)
    bp = jnp.pad(b, (0, _OC_PAD - OC)).astype(jnp.float32).reshape(1, _OC_PAD)
    return wm, bp


def _pack_fc(w, b, dtype=jnp.bfloat16):
    OC, K = w.shape                                        # torch Linear: (out, in)
    k_pad = _round_up(K, 128)
    wm = jnp.pad(w.T, ((0, k_pad - K), (0, _OC_PAD - OC))).astype(dtype)
    bp = jnp.pad(b, (0, _OC_PAD - OC)).astype(jnp.float32).reshape(1, _OC_PAD)
    return wm, bp


def pack_params(raw):
    """One-time repack: transpose / zero-pad / cast weights for the kernels."""
    p = {}
    p["w1"], p["b1"] = _pack_conv(raw["conv1_w"], raw["conv1_b"])
    p["w2"], p["b2"] = _pack_conv(raw["conv2_w"], raw["conv2_b"])
    p["w3"], p["b3"] = _pack_conv(raw["conv3_w"], raw["conv3_b"])
    p["w4"], p["b4"] = _pack_conv(raw["conv4_w"], raw["conv4_b"])
    p["w5"], p["b5"] = _pack_fc(raw["fc1_w"], raw["fc1_b"])
    p["w6"], p["b6"] = _pack_fc(raw["fc2_w"], raw["fc2_b"])
    return p


# ------------------------------- Encoder -------------------------------------
@jax.jit
def encoder_forward(params, x):
    # x: (N, 3, H, W) f32 (PyTorch NCHW interface) -> NHWC once.
    x = x.transpose(0, 2, 3, 1)
    x = conv2d_relu_nhwc(x, params["w1"], params["b1"], 3, 5, 5, (4, 4),
                         num_blocks=2)   # only layer with enough M to split (v7x)
    x = conv2d_relu_nhwc(x, params["w2"], params["b2"], 20, 5, 5, (4, 4))
    x = conv2d_relu_nhwc(x, params["w3"], params["b3"], 20, 5, 5, (1, 1))

    # conv4 collapses spatial to 1x1 for valid input sizes, so torch's
    # view(-1, 40) is exactly one row per sample; fuse conv4+fc1+fc2.
    k_pad4 = params["w4"].shape[0]
    patches, OH, OW = _im2col_nhwc(x, 20, 10, 5, 1, 1, k_pad4, jnp.bfloat16)
    assert OH == 1 and OW == 1, "flatten invariant needs 1x1 spatial at conv4"
    out = fused_conv4_fc1_fc2(patches, params["w4"], params["b4"],
                              params["w5"], params["b5"],
                              params["w6"], params["b6"])
    return out[:, :20]                   # un-pad OC only at the very end


# ------------------------- pure-JAX reference (check) ------------------------
def _ref_conv_relu(x, w, b, stride):
    y = jax.lax.conv_general_dilated(
        x, w, window_strides=stride, padding="VALID",
        dimension_numbers=("NCHW", "OIHW", "NCHW"))
    return jax.nn.relu(y + b.reshape(1, -1, 1, 1))


def encoder_reference(raw, x):
    x = _ref_conv_relu(x, raw["conv1_w"], raw["conv1_b"], (4, 4))
    x = _ref_conv_relu(x, raw["conv2_w"], raw["conv2_b"], (4, 4))
    x = _ref_conv_relu(x, raw["conv3_w"], raw["conv3_b"], (1, 1))
    x = _ref_conv_relu(x, raw["conv4_w"], raw["conv4_b"], (1, 1))
    x = x.reshape(-1, 40)
    x = jax.nn.relu(x @ raw["fc1_w"].T + raw["fc1_b"])
    x = jax.nn.relu(x @ raw["fc2_w"].T + raw["fc2_b"])
    return x


if __name__ == "__main__":
    key = jax.random.PRNGKey(0)
    kparam, kx = jax.random.split(key)
    raw = init_raw_params(kparam)
    params = pack_params(raw)

    # Smallest NCHW input for which the conv stack collapses to 1x1 spatial
    # before the flatten (229x149 -> 57x37 -> 14x9 -> 10x5 -> 1x1), matching
    # torch's view(-1, 40) semantics.
    x = jax.random.normal(kx, (2, 3, 229, 149), dtype=jnp.float32)

    out = jax.block_until_ready(encoder_forward(params, x))
    assert out.shape == (2, 20), out.shape

    ref = jax.block_until_ready(encoder_reference(raw, x))
    max_err = float(jnp.max(jnp.abs(out - ref)))
    # bf16 MXU inputs with f32 accumulation: tolerance loosened accordingly.
    assert jnp.allclose(out, ref, rtol=2e-2, atol=2e-2), max_err

    print("KERNEL_OK")
</pallas_src>

<mosaic_0001>
module attributes {stable_mosaic.version = 11 : i64} {
  func.func @_matmul_bias_relu_kernel(%arg0: i32, %arg1: memref<2112x128xbf16, #tpu.memory_space<vmem>>, %arg2: memref<128x128xbf16, #tpu.memory_space<vmem>>, %arg3: memref<1x128xf32, #tpu.memory_space<vmem>>, %arg4: memref<2112x128xbf16, #tpu.memory_space<vmem>>) attributes {dimension_semantics = [#tpu.dimension_semantics<parallel>], iteration_bounds = array<i64: 2>, scalar_prefetch = 0 : i64, scratch_operands = 0 : i64, tpu.core_type = #tpu.core_type<tc>, window_params = [{transform_indices = @transform_0, window_bounds = array<i64: 2112, 128>}, {pipeline_mode = #tpu.pipeline_mode<synchronous>, transform_indices = @transform_1, window_bounds = array<i64: 128, 128>}, {pipeline_mode = #tpu.pipeline_mode<synchronous>, transform_indices = @transform_2, window_bounds = array<i64: 1, 128>}, {transform_indices = @transform_3, window_bounds = array<i64: 2112, 128>}]} {
    %c0 = arith.constant 0 : index
    %c0_0 = arith.constant 0 : index
    %0 = vector.load %arg1[%c0, %c0_0] : memref<2112x128xbf16, #tpu.memory_space<vmem>>, vector<2112x128xbf16>
    %c0_1 = arith.constant 0 : index
    %c0_2 = arith.constant 0 : index
    %1 = vector.load %arg2[%c0_1, %c0_2] : memref<128x128xbf16, #tpu.memory_space<vmem>>, vector<128x128xbf16>
    %cst = arith.constant dense<0.000000e+00> : vector<2112x128xf32>
    %2 = tpu.matmul %0, %1, %cst {dimension_numbers = #tpu.dot_dimension_numbers<[1], [0], [0], [1], [0, 0, 1, 1], [], []>} : vector<2112x128xbf16>, vector<128x128xbf16>, vector<2112x128xf32> -> vector<2112x128xf32>
    %c0_3 = arith.constant 0 : index
    %c0_4 = arith.constant 0 : index
    %3 = vector.load %arg3[%c0_3, %c0_4] : memref<1x128xf32, #tpu.memory_space<vmem>>, vector<1x128xf32>
    %4 = vector.broadcast %3 : vector<1x128xf32> to vector<2112x128xf32>
    %5 = arith.addf %2, %4 : vector<2112x128xf32>
    %cst_5 = arith.constant 0.000000e+00 : f32
    %6 = vector.broadcast %cst_5 : f32 to vector<2112x128xf32>
    %7 = arith.maximumf %5, %6 : vector<2112x128xf32>
    %8 = arith.truncf %7 : vector<2112x128xf32> to vector<2112x128xbf16>
    %c0_6 = arith.constant 0 : index
    %c0_7 = arith.constant 0 : index
    %9 = vector.load %arg4[%c0_6, %c0_7] : memref<2112x128xbf16, #tpu.memory_space<vmem>>, vector<2112x128xbf16>
    tpu.vector_store %arg4[%c0_6, %c0_7], %8 {strides = array<i32>} : memref<2112x128xbf16, #tpu.memory_space<vmem>>, vector<2112x128xbf16>,
    return
  }
  func.func @transform_0(%arg0: i32) -> (i32, i32) {
    %c0_i32 = arith.constant 0 : i32
    %c0_i32_0 = arith.constant 0 : i32
    return %arg0, %c0_i32 : i32, i32
  }
  func.func @transform_1(%arg0: i32) -> (i32, i32) {
    %c0_i32 = arith.constant 0 : i32
    %c0_i32_0 = arith.constant 0 : i32
    %c0_i32_1 = arith.constant 0 : i32
    return %c0_i32, %c0_i32_0 : i32, i32
  }
  func.func @transform_2(%arg0: i32) -> (i32, i32) {
    %c0_i32 = arith.constant 0 : i32
    %c0_i32_0 = arith.constant 0 : i32
    %c0_i32_1 = arith.constant 0 : i32
    return %c0_i32, %c0_i32_0 : i32, i32
  }
  func.func @transform_3(%arg0: i32) -> (i32, i32) {
    %c0_i32 = arith.constant 0 : i32
    %c0_i32_0 = arith.constant 0 : i32
    return %arg0, %c0_i32 : i32, i32
  }
}

module attributes {stable_mosaic.version = 11 : i64} {
  func.func @_matmul_bias_relu_kernel(%arg0: i32, %arg1: memref<252x512xbf16, #tpu.memory_space<vmem>>, %arg2: memref<512x128xbf16, #tpu.memory_space<vmem>>, %arg3: memref<1x128xf32, #tpu.memory_space<vmem>>, %arg4: memref<252x128xbf16, #tpu.memory_space<vmem>>) attributes {dimension_semantics = [#tpu.dimension_semantics<parallel>], iteration_bounds = array<i64: 1>, scalar_prefetch = 0 : i64, scratch_operands = 0 : i64, tpu.core_type = #tpu.core_type<tc>, window_params = [{transform_indices = @transform_0, window_bounds = array<i64: 252, 512>}, {pipeline_mode = #tpu.pipeline_mode<synchronous>, transform_indices = @transform_1, window_bounds = array<i64: 512, 128>}, {pipeline_mode = #tpu.pipeline_mode<synchronous>, transform_indices = @transform_2, window_bounds = array<i64: 1, 128>}, {transform_indices = @transform_3, window_bounds = array<i64: 252, 128>}]} {
    %c0 = arith.constant 0 : index
    %c0_0 = arith.constant 0 : index
    %0 = vector.load %arg1[%c0, %c0_0] : memref<252x512xbf16, #tpu.memory_space<vmem>>, vector<252x512xbf16>
    %c0_1 = arith.constant 0 : index
    %c0_2 = arith.constant 0 : index
    %1 = vector.load %arg2[%c0_1, %c0_2] : memref<512x128xbf16, #tpu.memory_space<vmem>>, vector<512x128xbf16>
    %cst = arith.constant dense<0.000000e+00> : vector<252x128xf32>
    %2 = tpu.matmul %0, %1, %cst {dimension_numbers = #tpu.dot_dimension_numbers<[1], [0], [0], [1], [0, 0, 1, 1], [], []>} : vector<252x512xbf16>, vector<512x128xbf16>, vector<252x128xf32> -> vector<252x128xf32>
    %c0_3 = arith.constant 0 : index
    %c0_4 = arith.constant 0 : index
    %3 = vector.load %arg3[%c0_3, %c0_4] : memref<1x128xf32, #tpu.memory_space<vmem>>, vector<1x128xf32>
    %4 = vector.broadcast %3 : vector<1x128xf32> to vector<252x128xf32>
    %5 = arith.addf %2, %4 : vector<252x128xf32>
    %cst_5 = arith.constant 0.000000e+00 : f32
    %6 = vector.broadcast %cst_5 : f32 to vector<252x128xf32>
    %7 = arith.maximumf %5, %6 : vector<252x128xf32>
    %8 = arith.truncf %7 : vector<252x128xf32> to vector<252x128xbf16>
    %c0_6 = arith.constant 0 : index
    %c0_7 = arith.constant 0 : index
    %9 = vector.load %arg4[%c0_6, %c0_7] : memref<252x128xbf16, #tpu.memory_space<vmem>>, vector<252x128xbf16>
    tpu.vector_store %arg4[%c0_6, %c0_7], %8 {strides = array<i32>} : memref<252x128xbf16, #tpu.memory_space<vmem>>, vector<252x128xbf16>,
    return
  }
  func.func @transform_0(%arg0: i32) -> (i32, i32) {
    %c0_i32 = arith.constant 0 : i32
    %c0_i32_0 = arith.constant 0 : i32
    return %arg0, %c0_i32 : i32, i32
  }
  func.func @transform_1(%arg0: i32) -> (i32, i32) {
    %c0_i32 = arith.constant 0 : i32
    %c0_i32_0 = arith.constant 0 : i32
    %c0_i32_1 = arith.constant 0 : i32
    return %c0_i32, %c0_i32_0 : i32, i32
  }
  func.func @transform_2(%arg0: i32) -> (i32, i32) {
    %c0_i32 = arith.constant 0 : i32
    %c0_i32_0 = arith.constant 0 : i32
    %c0_i32_1 = arith.constant 0 : i32
    return %c0_i32, %c0_i32_0 : i32, i32
  }
  func.func @transform_3(%arg0: i32) -> (i32, i32) {
    %c0_i32 = arith.constant 0 : i32
    %c0_i32_0 = arith.constant 0 : i32
    return %arg0, %c0_i32 : i32, i32
  }
}

module attributes {stable_mosaic.version = 11 : i64} {
  func.func @_matmul_bias_relu_kernel(%arg0: i32, %arg1: memref<100x512xbf16, #tpu.memory_space<vmem>>, %arg2: memref<512x128xbf16, #tpu.memory_space<vmem>>, %arg3: memref<1x128xf32, #tpu.memory_space<vmem>>, %arg4: memref<100x128xbf16, #tpu.memory_space<vmem>>) attributes {dimension_semantics = [#tpu.dimension_semantics<parallel>], iteration_bounds = array<i64: 1>, scalar_prefetch = 0 : i64, scratch_operands = 0 : i64, tpu.core_type = #tpu.core_type<tc>, window_params = [{transform_indices = @transform_0, window_bounds = array<i64: 100, 512>}, {pipeline_mode = #tpu.pipeline_mode<synchronous>, transform_indices = @transform_1, window_bounds = array<i64: 512, 128>}, {pipeline_mode = #tpu.pipeline_mode<synchronous>, transform_indices = @transform_2, window_bounds = array<i64: 1, 128>}, {transform_indices = @transform_3, window_bounds = array<i64: 100, 128>}]} {
    %c0 = arith.constant 0 : index
    %c0_0 = arith.constant 0 : index
    %0 = vector.load %arg1[%c0, %c0_0] : memref<100x512xbf16, #tpu.memory_space<vmem>>, vector<100x512xbf16>
    %c0_1 = arith.constant 0 : index
    %c0_2 = arith.constant 0 : index
    %1 = vector.load %arg2[%c0_1, %c0_2] : memref<512x128xbf16, #tpu.memory_space<vmem>>, vector<512x128xbf16>
    %cst = arith.constant dense<0.000000e+00> : vector<100x128xf32>
    %2 = tpu.matmul %0, %1, %cst {dimension_numbers = #tpu.dot_dimension_numbers<[1], [0], [0], [1], [0, 0, 1, 1], [], []>} : vector<100x512xbf16>, vector<512x128xbf16>, vector<100x128xf32> -> vector<100x128xf32>
    %c0_3 = arith.constant 0 : index
    %c0_4 = arith.constant 0 : index
    %3 = vector.load %arg3[%c0_3, %c0_4] : memref<1x128xf32, #tpu.memory_space<vmem>>, vector<1x128xf32>
    %4 = vector.broadcast %3 : vector<1x128xf32> to vector<100x128xf32>
    %5 = arith.addf %2, %4 : vector<100x128xf32>
    %cst_5 = arith.constant 0.000000e+00 : f32
    %6 = vector.broadcast %cst_5 : f32 to vector<100x128xf32>
    %7 = arith.maximumf %5, %6 : vector<100x128xf32>
    %8 = arith.truncf %7 : vector<100x128xf32> to vector<100x128xbf16>
    %c0_6 = arith.constant 0 : index
    %c0_7 = arith.constant 0 : index
    %9 = vector.load %arg4[%c0_6, %c0_7] : memref<100x128xbf16, #tpu.memory_space<vmem>>, vector<100x128xbf16>
    tpu.vector_store %arg4[%c0_6, %c0_7], %8 {strides = array<i32>} : memref<100x128xbf16, #tpu.memory_space<vmem>>, vector<100x128xbf16>,
    return
  }
  func.func @transform_0(%arg0: i32) -> (i32, i32) {
    %c0_i32 = arith.constant 0 : i32
    %c0_i32_0 = arith.constant 0 : i32
    return %arg0, %c0_i32 : i32, i32
  }
  func.func @transform_1(%arg0: i32) -> (i32, i32) {
    %c0_i32 = arith.constant 0 : i32
    %c0_i32_0 = arith.constant 0 : i32
    %c0_i32_1 = arith.constant 0 : i32
    return %c0_i32, %c0_i32_0 : i32, i32
  }
  func.func @transform_2(%arg0: i32) -> (i32, i32) {
    %c0_i32 = arith.constant 0 : i32
    %c0_i32_0 = arith.constant 0 : i32
    %c0_i32_1 = arith.constant 0 : i32
    return %c0_i32, %c0_i32_0 : i32, i32
  }
  func.func @transform_3(%arg0: i32) -> (i32, i32) {
    %c0_i32 = arith.constant 0 : i32
    %c0_i32_0 = arith.constant 0 : i32
    return %arg0, %c0_i32 : i32, i32
  }
}

module attributes {stable_mosaic.version = 11 : i64} {
  func.func @_tail_kernel(%arg0: memref<2x1024xbf16, #tpu.memory_space<vmem>>, %arg1: memref<1024x128xbf16, #tpu.memory_space<vmem>>, %arg2: memref<1x128xf32, #tpu.memory_space<vmem>>, %arg3: memref<128x128xbf16, #tpu.memory_space<vmem>>, %arg4: memref<1x128xf32, #tpu.memory_space<vmem>>, %arg5: memref<128x128xbf16, #tpu.memory_space<vmem>>, %arg6: memref<1x128xf32, #tpu.memory_space<vmem>>, %arg7: memref<2x128xf32, #tpu.memory_space<vmem>>) attributes {dimension_semantics = [], scalar_prefetch = 0 : i64, scratch_operands = 0 : i64, tpu.core_type = #tpu.core_type<tc>} {
    %c0 = arith.constant 0 : index
    %c0_0 = arith.constant 0 : index
    %0 = vector.load %arg0[%c0, %c0_0] : memref<2x1024xbf16, #tpu.memory_space<vmem>>, vector<2x1024xbf16>
    %c0_1 = arith.constant 0 : index
    %c0_2 = arith.constant 0 : index
    %1 = vector.load %arg1[%c0_1, %c0_2] : memref<1024x128xbf16, #tpu.memory_space<vmem>>, vector<1024x128xbf16>
    %cst = arith.constant dense<0.000000e+00> : vector<2x128xf32>
    %2 = tpu.matmul %0, %1, %cst {dimension_numbers = #tpu.dot_dimension_numbers<[1], [0], [0], [1], [0, 0, 1, 1], [], []>} : vector<2x1024xbf16>, vector<1024x128xbf16>, vector<2x128xf32> -> vector<2x128xf32>
    %c0_3 = arith.constant 0 : index
    %c0_4 = arith.constant 0 : index
    %3 = vector.load %arg2[%c0_3, %c0_4] : memref<1x128xf32, #tpu.memory_space<vmem>>, vector<1x128xf32>
    %4 = vector.broadcast %3 : vector<1x128xf32> to vector<2x128xf32>
    %5 = arith.addf %2, %4 : vector<2x128xf32>
    %cst_5 = arith.constant 0.000000e+00 : f32
    %6 = vector.broadcast %cst_5 : f32 to vector<2x128xf32>
    %7 = arith.maximumf %5, %6 : vector<2x128xf32>
    %8 = arith.truncf %7 : vector<2x128xf32> to vector<2x128xbf16>
    %c0_6 = arith.constant 0 : index
    %c0_7 = arith.constant 0 : index
    %9 = vector.load %arg3[%c0_6, %c0_7] : memref<128x128xbf16, #tpu.memory_space<vmem>>, vector<128x128xbf16>
    %cst_8 = arith.constant dense<0.000000e+00> : vector<2x128xf32>
    %10 = tpu.matmul %8, %9, %cst_8 {dimension_numbers = #tpu.dot_dimension_numbers<[1], [0], [0], [1], [0, 0, 1, 1], [], []>} : vector<2x128xbf16>, vector<128x128xbf16>, vector<2x128xf32> -> vector<2x128xf32>
    %c0_9 = arith.constant 0 : index
    %c0_10 = arith.constant 0 : index
    %11 = vector.load %arg4[%c0_9, %c0_10] : memref<1x128xf32, #tpu.memory_space<vmem>>, vector<1x128xf32>
    %12 = vector.broadcast %11 : vector<1x128xf32> to vector<2x128xf32>
    %13 = arith.addf %10, %12 : vector<2x128xf32>
    %cst_11 = arith.constant 0.000000e+00 : f32
    %14 = vector.broadcast %cst_11 : f32 to vector<2x128xf32>
    %15 = arith.maximumf %13, %14 : vector<2x128xf32>
    %16 = arith.truncf %15 : vector<2x128xf32> to vector<2x128xbf16>
    %c0_12 = arith.constant 0 : index
    %c0_13 = arith.constant 0 : index
    %17 = vector.load %arg5[%c0_12, %c0_13] : memref<128x128xbf16, #tpu.memory_space<vmem>>, vector<128x128xbf16>
    %cst_14 = arith.constant dense<0.000000e+00> : vector<2x128xf32>
    %18 = tpu.matmul %16, %17, %cst_14 {dimension_numbers = #tpu.dot_dimension_numbers<[1], [0], [0], [1], [0, 0, 1, 1], [], []>} : vector<2x128xbf16>, vector<128x128xbf16>, vector<2x128xf32> -> vector<2x128xf32>
    %c0_15 = arith.constant 0 : index
    %c0_16 = arith.constant 0 : index
    %19 = vector.load %arg6[%c0_15, %c0_16] : memref<1x128xf32, #tpu.memory_space<vmem>>, vector<1x128xf32>
    %20 = vector.broadcast %19 : vector<1x128xf32> to vector<2x128xf32>
    %21 = arith.addf %18, %20 : vector<2x128xf32>
    %cst_17 = arith.constant 0.000000e+00 : f32
    %22 = vector.broadcast %cst_17 : f32 to vector<2x128xf32>
    %23 = arith.maximumf %21, %22 : vector<2x128xf32>
    %c0_18 = arith.constant 0 : index
    %c0_19 = arith.constant 0 : index
    %24 = vector.load %arg7[%c0_18, %c0_19] : memref<2x128xf32, #tpu.memory_space<vmem>>, vector<2x128xf32>
    tpu.vector_store %arg7[%c0_18, %c0_19], %23 {strides = array<i32>} : memref<2x128xf32, #tpu.memory_space<vmem>>, vector<2x128xf32>,
    return
  }
}

</mosaic_0001>

<bundles_post_ra>
// kernel: encoder_forward.4
= control target key start
LH: loop header
LB: loop body
LE: loop exit
PB: predicated region body
PF: predicated region fallthrough
CT: control target
= control target key end

     0   :  { %s6114_s12 = smov 0   ;;  %s6691_s0 = inlined_call_operand.vmem [shape: bf16[4218,128], index: 0, kind: input, shape index: {}]   ;;  %s6692_s1 = inlined_call_operand.vmem [shape: bf16[128,128], index: 1, kind: input, shape index: {}]   ;;  %s6693_s2 = inlined_call_operand.vmem [shape: f32[1,128], index: 2, kind: input, shape index: {}]   ;;  %s6694_s3 = inlined_call_operand.vmem [shape: bf16[4218,128], index: 3, kind: output, shape index: {}]  }
   0x1 LB: > { %s4031_s13 = sadd.s32 4294967295, %s6092_s12   ;;  %p4035_p0 = scmp.ge.s32.totalorder %s6092_s12, 1  ;;  %s6092_s12 = sphi %s6114_s12, %s13_s12  }
   0x2   : > { %p138_p1 = scmp.lt.s32.totalorder %s6092_s12, 3 }
   0x4   : > { %p139_p2 = pnand %p4035_p0, %p138_p1 }
   0x5   : > { %v5944_v0 = vld [vmem:[%s6692_s1] sm:$0xff] (!%p139_p2)   ;;  %s162_s16 = smul.u32 (!%p139_p2), 264, %s4031_s13  ;;  %v5945_v1 = vld [vmem:[%s6692_s1 + $0x8] sm:$0xff] (!%p139_p2)   ;;  %v5946_v2 = vld [vmem:[%s6692_s1 + $0x10] sm:$0xff] (!%p139_p2)  }
   0x6   : > { %142 = sbr.rel (%p139_p2) target bundleno = 516 (0x204), region = 32  ;;  %5640 = vmatprep.subr.bf16.mxu0 (!%p139_p2), %v5944_v0  ;;  %5920 = vmatprep.subr.bf16.mxu1 (!%p139_p2), %v5944_v0  ;;  %v5947_v3 = vld [vmem:[%s6692_s1 + $0x18] sm:$0xff] (!%p139_p2)   ;;  %v5948_v6 = vld [vmem:[%s6692_s1 + $0x20] sm:$0xff] (!%p139_p2)   ;;  %v5949_v7 = vld [vmem:[%s6692_s1 + $0x28] sm:$0xff] (!%p139_p2)  }
   0x7   : > { %p163_p3 = scmp.lt.s32.totalorder (!%p139_p2), %s162_s16, 527  ;;  %5641 = vmatpush3.bf16.msra.mxu0 (!%p139_p2), %v5944_v0  ;;  %5928 = vmatpush3.bf16.msra.mxu1 (!%p139_p2), %v5944_v0  ;;  %v5950_v8 = vld [vmem:[%s6692_s1 + $0x30] sm:$0xff] (!%p139_p2)   ;;  %v5951_v9 = vld [vmem:[%s6692_s1 + $0x38] sm:$0xff] (!%p139_p2)  }
   0x8   : > { %5642 = vmatprep.subr.bf16.mxu0 (!%p139_p2), %v5945_v1  ;;  %5921 = vmatprep.subr.bf16.mxu1 (!%p139_p2), %v5945_v1 }
   0xb   : > { %5643 = vmatpush3.bf16.msra.mxu0 (!%p139_p2), %v5945_v1  ;;  %5929 = vmatpush3.bf16.msra.mxu1 (!%p139_p2), %v5945_v1 }
   0xc   : > { %5644 = vmatprep.subr.bf16.mxu0 (!%p139_p2), %v5946_v2  ;;  %5922 = vmatprep.subr.bf16.mxu1 (!%p139_p2), %v5946_v2 }
   0xd   : > { %s6696_s16 = smov (!%p163_p3, %s162_s16), 527 }
   0xe   : > { %s4036_s21 = sshll.u32 %s6696_s16, 2 }
   0xf   : > { %s6142_s26 = scalar_lea.vmem %s6691_s0, %s4036_s21  ;;  %5645 = vmatpush3.bf16.msra.mxu0 %v5946_v2  ;;  %5930 = vmatpush3.bf16.msra.mxu1 %v5946_v2  ;;  %s6288_s13 = scalar_lea.vmem %s6694_s3, %s4036_s21 }
  0x10   : > { %v5952_v4 = vld [vmem:[%s6142_s26] sm:$0xff]   ;;  %v5953_v5 = vld [vmem:[%s6142_s26 + $0x210] sm:$0xff]   ;;  %5646 = vmatprep.subr.bf16.mxu0 %v5947_v3  ;;  %5923 = vmatprep.subr.bf16.mxu1 %v5947_v3  ;;  %v5954_v10 = vld [vmem:[%s6142_s26 + $0x8] sm:$0xff]  }
  0x11   : > { %5656 = vmatprep.mubr.bf16.mxu0 %v5952_v4  ;;  %5788 = vmatprep.mubr.bf16.mxu1 %v5953_v5  ;;  %v5955_v11 = vld [vmem:[%s6142_s26 + $0x218] sm:$0xff]   ;;  %v5956_v12 = vld [vmem:[%s6142_s26 + $0x10] sm:$0xff]   ;;  %v5957_v13 = vld [vmem:[%s6142_s26 + $0x220] sm:$0xff]  }
  0x12   : > { %v5958_v14 = vld [vmem:[%s6142_s26 + $0x18] sm:$0xff]   ;;  %v5959_v15 = vld [vmem:[%s6142_s26 + $0x228] sm:$0xff]   ;;  %v5960_v16 = vld [vmem:[%s6142_s26 + $0x20] sm:$0xff]  }
  0x13   : > { %5647 = vmatpush3.bf16.msra.mxu0 %v5947_v3  ;;  %5931 = vmatpush3.bf16.msra.mxu1 %v5947_v3  ;;  %v5961_v17 = vld [vmem:[%s6142_s26 + $0x230] sm:$0xff]   ;;  %v5962_v18 = vld [vmem:[%s6142_s26 + $0x28] sm:$0xff]   ;;  %v5963_v19 = vld [vmem:[%s6142_s26 + $0x238] sm:$0xff]  }
  0x14   : > { %5648 = vmatprep.subr.bf16.mxu0 %v5948_v6  ;;  %5924 = vmatprep.subr.bf16.mxu1 %v5948_v6  ;;  %v5964_v20 = vld [vmem:[%s6142_s26 + $0x30] sm:$0xff]   ;;  %v5965_v21 = vld [vmem:[%s6142_s26 + $0x240] sm:$0xff]   ;;  %v5966_v22 = vld [vmem:[%s6142_s26 + $0x38] sm:$0xff]  }
  0x15   : > { %v5967_v23 = vld [vmem:[%s6142_s26 + $0x248] sm:$0xff]   ;;  %v5968_v24 = vld [vmem:[%s6142_s26 + $0x40] sm:$0xff]   ;;  %v5969_v25 = vld [vmem:[%s6142_s26 + $0x250] sm:$0xff]  }
  0x16   : > { %v5970_v26 = vld [vmem:[%s6142_s26 + $0x48] sm:$0xff]   ;;  %v5971_v27 = vld [vmem:[%s6142_s26 + $0x258] sm:$0xff]   ;;  %v5972_v28 = vld [vmem:[%s6142_s26 + $0x50] sm:$0xff]  }
  0x17   : > { %5649 = vmatpush3.bf16.msra.mxu0 %v5948_v6  ;;  %5932 = vmatpush3.bf16.msra.mxu1 %v5948_v6  ;;  %v5973_v29 = vld [vmem:[%s6142_s26 + $0x260] sm:$0xff]   ;;  %v5974_v30 = vld [vmem:[%s6142_s26 + $0x58] sm:$0xff]   ;;  %v5975_v31 = vld [vmem:[%s6142_s26 + $0x268] sm:$0xff]  }
  0x18   : > { %5650 = vmatprep.subr.bf16.mxu0 %v5949_v7  ;;  %5925 = vmatprep.subr.bf16.mxu1 %v5949_v7  ;;  %v5976_v32 = vld [vmem:[%s6142_s26 + $0x60] sm:$0xff]   ;;  %v5977_v33 = vld [vmem:[%s6142_s26 + $0x270] sm:$0xff]   ;;  %v5978_v34 = vld [vmem:[%s6142_s26 + $0x68] sm:$0xff]  }
  0x19   : > { %v5979_v35 = vld [vmem:[%s6142_s26 + $0x278] sm:$0xff]   ;;  %v5980_v36 = vld [vmem:[%s6142_s26 + $0x70] sm:$0xff]   ;;  %v5981_v37 = vld [vmem:[%s6142_s26 + $0x280] sm:$0xff]  }
  0x1a   : > { %v5982_v38 = vld [vmem:[%s6142_s26 + $0x78] sm:$0xff]   ;;  %v5983_v39 = vld [vmem:[%s6142_s26 + $0x288] sm:$0xff]   ;;  %v5984_v40 = vld [vmem:[%s6142_s26 + $0x80] sm:$0xff]  }
  0x1b   : > { %5651 = vmatpush3.bf16.msra.mxu0 %v5949_v7  ;;  %5933 = vmatpush3.bf16.msra.mxu1 %v5949_v7  ;;  %v5985_v41 = vld [vmem:[%s6142_s26 + $0x290] sm:$0xff]   ;;  %v5986_v42 = vld [vmem:[%s6142_s26 + $0x88] sm:$0xff]   ;;  %v5987_v43 = vld [vmem:[%s6142_s26 + $0x298] sm:$0xff]  }
  0x1c   : > { %5652 = vmatprep.subr.bf16.mxu0 %v5950_v8  ;;  %5926 = vmatprep.subr.bf16.mxu1 %v5950_v8  ;;  %v5988_v44 = vld [vmem:[%s6142_s26 + $0x90] sm:$0xff]   ;;  %v5989_v45 = vld [vmem:[%s6142_s26 + $0x2a0] sm:$0xff]   ;;  %v5990_v46 = vld [vmem:[%s6142_s26 + $0x98] sm:$0xff]  }
  0x1d   : > { %v5991_v47 = vld [vmem:[%s6142_s26 + $0x2a8] sm:$0xff]   ;;  %v5992_v48 = vld [vmem:[%s6142_s26 + $0xa0] sm:$0xff]   ;;  %v5993_v49 = vld [vmem:[%s6142_s26 + $0x2b0] sm:$0xff]  }
  0x1e   : > { %v5994_v50 = vld [vmem:[%s6142_s26 + $0xa8] sm:$0xff]   ;;  %v5995_v51 = vld [vmem:[%s6142_s26 + $0x2b8] sm:$0xff]   ;;  %v5996_v52 = vld [vmem:[%s6142_s26 + $0xb0] sm:$0xff]  }
  0x1f   : > { %5653 = vmatpush3.bf16.msra.mxu0 %v5950_v8  ;;  %5934 = vmatpush3.bf16.msra.mxu1 %v5950_v8  ;;  %v5997_v53 = vld [vmem:[%s6142_s26 + $0x2c0] sm:$0xff]   ;;  %v5998_v54 = vld [vmem:[%s6142_s26 + $0xb8] sm:$0xff]   ;;  %v5999_v55 = vld [vmem:[%s6142_s26 + $0x2c8] sm:$0xff]  }
  0x20   : > { %5654 = vmatprep.subr.bf16.mxu0 %v5951_v9  ;;  %5927 = vmatprep.subr.bf16.mxu1 %v5951_v9  ;;  %v6000_v56 = vld [vmem:[%s6142_s26 + $0xc0] sm:$0xff]   ;;  %v6001_v57 = vld [vmem:[%s6142_s26 + $0x2d0] sm:$0xff]   ;;  %v6002_v58 = vld [vmem:[%s6142_s26 + $0xc8] sm:$0xff]  }
  0x21   : > { %v6003_v59 = vld [vmem:[%s6142_s26 + $0x2d8] sm:$0xff]   ;;  %v6004_v60 = vld [vmem:[%s6142_s26 + $0xd0] sm:$0xff]   ;;  %v6005_v61 = vld [vmem:[%s6142_s26 + $0x2e0] sm:$0xff]  }
  0x22   : > { %v6006_v62 = vld [vmem:[%s6142_s26 + $0xd8] sm:$0xff]   ;;  %v6007_v63 = vld [vmem:[%s6142_s26 + $0x2e8] sm:$0xff]   ;;  %v6008_v0 = vld [vmem:[%s6142_s26 + $0xe0] sm:$0xff]  }
  0x23   : > { %5655 = vmatpush3.bf16.msra.mxu0 %v5951_v9  ;;  %5935 = vmatpush3.bf16.msra.mxu1 %v5951_v9  ;;  %v6009_v1 = vld [vmem:[%s6142_s26 + $0x2f0] sm:$0xff]   ;;  %v6010_v2 = vld [vmem:[%s6142_s26 + $0xe8] sm:$0xff]   ;;  %v6011_v3 = vld [vmem:[%s6142_s26 + $0x2f8] sm:$0xff]  }
  0x24   : > { %v6012_v4 = vld [vmem:[%s6142_s26 + $0xf0] sm:$0xff]   ;;  %v6013_v5 = vld [vmem:[%s6142_s26 + $0x300] sm:$0xff]   ;;  %v6014_v6 = vld [vmem:[%s6142_s26 + $0xf8] sm:$0xff]  }
  0x25   : > { %v6015_v7 = vld [vmem:[%s6142_s26 + $0x308] sm:$0xff]   ;;  %v6016_v8 = vld [vmem:[%s6142_s26 + $0x100] sm:$0xff]   ;;  %v6017_v9 = vld [vmem:[%s6142_s26 + $0x310] sm:$0xff]  }
  0x26   : > { %5657 = vmatmul.mubr.bf16.vlgmr.msra.gmra.mrb[0].mxu0 %v5954_v10  ;;  %5789 = vmatmul.mubr.bf16.vlgmr.msra.gmra.mrb[0].mxu1 %v5955_v11  ;;  %v6018_v10 = vld [vmem:[%s6142_s26 + $0x108] sm:$0xff]   ;;  %v6019_v11 = vld [vmem:[%s6142_s26 + $0x318] sm:$0xff]  }
  0x27   : > { %5660 = vmatprep.mubr.bf16.mxu0 %v5956_v12  ;;  %5792 = vmatprep.mubr.bf16.mxu1 %v5957_v13  ;;  %v6020_v12 = vld [vmem:[%s6142_s26 + $0x110] sm:$0xff]   ;;  %v6021_v13 = vld [vmem:[%s6142_s26 + $0x320] sm:$0xff]  }
  0x2e   : > { %5661 = vmatmul.mubr.bf16.gmra.mrb[4].mxu0 %v5958_v14  ;;  %5793 = vmatmul.mubr.bf16.gmra.mrb[4].mxu1 %v5959_v15  ;;  %v6022_v14 = vld [vmem:[%s6142_s26 + $0x118] sm:$0xff]   ;;  %v6023_v15 = vld [vmem:[%s6142_s26 + $0x328] sm:$0xff]  }
  0x2f   : > { %5664 = vmatprep.mubr.bf16.mxu0 %v5960_v16  ;;  %5796 = vmatprep.mubr.bf16.mxu1 %v5961_v17  ;;  %v6024_v16 = vld [vmem:[%s6142_s26 + $0x120] sm:$0xff]   ;;  %v6025_v17 = vld [vmem:[%s6142_s26 + $0x330] sm:$0xff]  }
  0x36   : > { %5665 = vmatmul.mubr.bf16.gmra.mrb[8].mxu0 %v5962_v18  ;;  %5797 = vmatmul.mubr.bf16.gmra.mrb[8].mxu1 %v5963_v19  ;;  %v6026_v18 = vld [vmem:[%s6142_s26 + $0x128] sm:$0xff]   ;;  %v6027_v19 = vld [vmem:[%s6142_s26 + $0x338] sm:$0xff]  }
  0x37   : > { %5668 = vmatprep.mubr.bf16.mxu0 %v5964_v20  ;;  %5800 = vmatprep.mubr.bf16.mxu1 %v5965_v21  ;;  %v6028_v20 = vld [vmem:[%s6142_s26 + $0x130] sm:$0xff]   ;;  %v6029_v21 = vld [vmem:[%s6142_s26 + $0x340] sm:$0xff]  }
  0x3e   : > { %5669 = vmatmul.mubr.bf16.gmra.mrb[12].mxu0 %v5966_v22  ;;  %5801 = vmatmul.mubr.bf16.gmra.mrb[12].mxu1 %v5967_v23  ;;  %v6030_v22 = vld [vmem:[%s6142_s26 + $0x138] sm:$0xff]   ;;  %v6031_v23 = vld [vmem:[%s6142_s26 + $0x348] sm:$0xff]  }
  0x3f   : > { %5672 = vmatprep.mubr.bf16.mxu0 %v5968_v24  ;;  %5804 = vmatprep.mubr.bf16.mxu1 %v5969_v25  ;;  %v6032_v24 = vld [vmem:[%s6142_s26 + $0x140] sm:$0xff]   ;;  %v6033_v25 = vld [vmem:[%s6142_s26 + $0x350] sm:$0xff]  }
  0x46   : > { %5673 = vmatmul.mubr.bf16.gmra.mrb[16].mxu0 %v5970_v26  ;;  %5805 = vmatmul.mubr.bf16.gmra.mrb[16].mxu1 %v5971_v27  ;;  %v6034_v26 = vld [vmem:[%s6142_s26 + $0x148] sm:$0xff]   ;;  %v6035_v27 = vld [vmem:[%s6142_s26 + $0x358] sm:$0xff]  }
  0x47   : > { %5676 = vmatprep.mubr.bf16.mxu0 %v5972_v28  ;;  %5808 = vmatprep.mubr.bf16.mxu1 %v5973_v29  ;;  %v6036_v28 = vld [vmem:[%s6142_s26 + $0x150] sm:$0xff]   ;;  %v6037_v29 = vld [vmem:[%s6142_s26 + $0x360] sm:$0xff]  }
  0x4e   : > { %5677 = vmatmul.mubr.bf16.gmra.mrb[20].mxu0 %v5974_v30  ;;  %5809 = vmatmul.mubr.bf16.gmra.mrb[20].mxu1 %v5975_v31  ;;  %v6038_v30 = vld [vmem:[%s6142_s26 + $0x158] sm:$0xff]   ;;  %v6039_v31 = vld [vmem:[%s6142_s26 + $0x368] sm:$0xff]  }
  0x4f   : > { %5680 = vmatprep.mubr.bf16.mxu0 %v5976_v32  ;;  %5812 = vmatprep.mubr.bf16.mxu1 %v5977_v33  ;;  %v6040_v32 = vld [vmem:[%s6142_s26 + $0x160] sm:$0xff]   ;;  %v6041_v33 = vld [vmem:[%s6142_s26 + $0x370] sm:$0xff]  }
  0x56   : > { %5681 = vmatmul.mubr.bf16.gmra.mrb[24].mxu0 %v5978_v34  ;;  %5813 = vmatmul.mubr.bf16.gmra.mrb[24].mxu1 %v5979_v35  ;;  %v6042_v34 = vld [vmem:[%s6142_s26 + $0x168] sm:$0xff]   ;;  %v6043_v35 = vld [vmem:[%s6142_s26 + $0x378] sm:$0xff]  }
  0x57   : > { %5684 = vmatprep.mubr.bf16.mxu0 %v5980_v36  ;;  %5816 = vmatprep.mubr.bf16.mxu1 %v5981_v37  ;;  %v6044_v36 = vld [vmem:[%s6142_s26 + $0x170] sm:$0xff]   ;;  %v6045_v37 = vld [vmem:[%s6142_s26 + $0x380] sm:$0xff]  }
  0x5e   : > { %5685 = vmatmul.mubr.bf16.gmra.mrb[28].mxu0 %v5982_v38  ;;  %5817 = vmatmul.mubr.bf16.gmra.mrb[28].mxu1 %v5983_v39  ;;  %v6046_v38 = vld [vmem:[%s6142_s26 + $0x178] sm:$0xff]   ;;  %v6047_v39 = vld [vmem:[%s6142_s26 + $0x388] sm:$0xff]  }
  0x5f   : > { %5688 = vmatprep.mubr.bf16.mxu0 %v5984_v40  ;;  %5820 = vmatprep.mubr.bf16.mxu1 %v5985_v41  ;;  %v6048_v40 = vld [vmem:[%s6142_s26 + $0x180] sm:$0xff]   ;;  %v6049_v41 = vld [vmem:[%s6142_s26 + $0x390] sm:$0xff]  }
  0x66   : > { %5689 = vmatmul.mubr.bf16.gmra.mrb[32].mxu0 %v5986_v42  ;;  %5821 = vmatmul.mubr.bf16.gmra.mrb[32].mxu1 %v5987_v43  ;;  %v6050_v42 = vld [vmem:[%s6142_s26 + $0x188] sm:$0xff]   ;;  %v6051_v43 = vld [vmem:[%s6142_s26 + $0x398] sm:$0xff]  }
  0x67   : > { %5692 = vmatprep.mubr.bf16.mxu0 %v5988_v44  ;;  %5824 = vmatprep.mubr.bf16.mxu1 %v5989_v45  ;;  %v6052_v44 = vld [vmem:[%s6142_s26 + $0x190] sm:$0xff]   ;;  %v6053_v45 = vld [vmem:[%s6142_s26 + $0x3a0] sm:$0xff]  }
  0x6e   : > { %5693 = vmatmul.mubr.bf16.gmra.mrb[36].mxu0 %v5990_v46  ;;  %5825 = vmatmul.mubr.bf16.gmra.mrb[36].mxu1 %v5991_v47  ;;  %v6054_v46 = vld [vmem:[%s6142_s26 + $0x198] sm:$0xff]   ;;  %v6055_v47 = vld [vmem:[%s6142_s26 + $0x3a8] sm:$0xff]  }
  0x6f   : > { %5696 = vmatprep.mubr.bf16.mxu0 %v5992_v48  ;;  %5828 = vmatprep.mubr.bf16.mxu1 %v5993_v49  ;;  %v6056_v48 = vld [vmem:[%s6142_s26 + $0x1a0] sm:$0xff]   ;;  %v6057_v49 = vld [vmem:[%s6142_s26 + $0x3b0] sm:$0xff]  }
  0x76   : > { %5697 = vmatmul.mubr.bf16.gmra.mrb[40].mxu0 %v5994_v50  ;;  %5829 = vmatmul.mubr.bf16.gmra.mrb[40].mxu1 %v5995_v51  ;;  %v6058_v50 = vld [vmem:[%s6142_s26 + $0x1a8] sm:$0xff]   ;;  %v6059_v51 = vld [vmem:[%s6142_s26 + $0x3b8] sm:$0xff]  }
  0x77   : > { %5700 = vmatprep.mubr.bf16.mxu0 %v5996_v52  ;;  %5832 = vmatprep.mubr.bf16.mxu1 %v5997_v53  ;;  %v6060_v52 = vld [vmem:[%s6142_s26 + $0x1b0] sm:$0xff]   ;;  %v6061_v53 = vld [vmem:[%s6142_s26 + $0x3c0] sm:$0xff]  }
  0x7e   : > { %5701 = vmatmul.mubr.bf16.gmra.mrb[44].mxu0 %v5998_v54  ;;  %5833 = vmatmul.mubr.bf16.gmra.mrb[44].mxu1 %v5999_v55  ;;  %v6269_v54 = vld [vmem:[%s6693_s2] ss:$0 sm:$0xff] }
  0x7f   : > { %5704 = vmatprep.mubr.bf16.mxu0 %v6000_v56  ;;  %5836 = vmatprep.mubr.bf16.mxu1 %v6001_v57 }
  0x86   : > { %5705 = vmatmul.mubr.bf16.gmra.mrb[48].mxu0 %v6002_v58  ;;  %5837 = vmatmul.mubr.bf16.gmra.mrb[48].mxu1 %v6003_v59 }
  0x87   : > { %5708 = vmatprep.mubr.bf16.mxu0 %v6004_v60  ;;  %5840 = vmatprep.mubr.bf16.mxu1 %v6005_v61  ;;  %v6062_v61 = vld [vmem:[%s6142_s26 + $0x1b8] sm:$0xff]  }
  0x8e   : > { %5709 = vmatmul.mubr.bf16.gmra.mrb[52].mxu0 %v6006_v62  ;;  %5841 = vmatmul.mubr.bf16.gmra.mrb[52].mxu1 %v6007_v63  ;;  %v6063_v62 = vld [vmem:[%s6142_s26 + $0x3c8] sm:$0xff]  }
  0x8f   : > { %5712 = vmatprep.mubr.bf16.mxu0 %v6008_v0  ;;  %5844 = vmatprep.mubr.bf16.mxu1 %v6009_v1 }
  0x96   : > { %5713 = vmatmul.mubr.bf16.gmra.mrb[56].mxu0 %v6010_v2  ;;  %5845 = vmatmul.mubr.bf16.gmra.mrb[56].mxu1 %v6011_v3  ;;  %v6064_v3 = vld [vmem:[%s6142_s26 + $0x1c0] sm:$0xff]  }
  0x97   : > { %5716 = vmatprep.mubr.bf16.mxu0 %v6012_v4  ;;  %5848 = vmatprep.mubr.bf16.mxu1 %v6013_v5  ;;  %v6065_v4 = vld [vmem:[%s6142_s26 + $0x3d0] sm:$0xff]  }
  0x9e   : > { %5717 = vmatmul.mubr.bf16.gmra.mrb[60].mxu0 %v6014_v6  ;;  %5849 = vmatmul.mubr.bf16.gmra.mrb[60].mxu1 %v6015_v7 }
  0x9f   : > { %5720 = vmatprep.mubr.bf16.mxu0 %v6016_v8  ;;  %5852 = vmatprep.mubr.bf16.mxu1 %v6017_v9 }
  0xa6   : > { %5721 = vmatmul.mubr.bf16.gmra.mrb[64].mxu0 %v6018_v10  ;;  %5853 = vmatmul.mubr.bf16.gmra.mrb[64].mxu1 %v6019_v11 }
  0xa7   : > { %5724 = vmatprep.mubr.bf16.mxu0 %v6020_v12  ;;  %5856 = vmatprep.mubr.bf16.mxu1 %v6021_v13 }
  0xae   : > { %5725 = vmatmul.mubr.bf16.gmra.mrb[68].mxu0 %v6022_v14  ;;  %5857 = vmatmul.mubr.bf16.gmra.mrb[68].mxu1 %v6023_v15 }
  0xaf   : > { %5728 = vmatprep.mubr.bf16.mxu0 %v6024_v16  ;;  %5860 = vmatprep.mubr.bf16.mxu1 %v6025_v17 }
  0xb6   : > { %5729 = vmatmul.mubr.bf16.gmra.mrb[72].mxu0 %v6026_v18  ;;  %5861 = vmatmul.mubr.bf16.gmra.mrb[72].mxu1 %v6027_v19 }
  0xb7   : > { %5732 = vmatprep.mubr.bf16.mxu0 %v6028_v20  ;;  %5864 = vmatprep.mubr.bf16.mxu1 %v6029_v21 }
  0xbe   : > { %5733 = vmatmul.mubr.bf16.gmra.mrb[76].mxu0 %v6030_v22  ;;  %5865 = vmatmul.mubr.bf16.gmra.mrb[76].mxu1 %v6031_v23 }
  0xbf   : > { %5736 = vmatprep.mubr.bf16.mxu0 %v6032_v24  ;;  %5868 = vmatprep.mubr.bf16.mxu1 %v6033_v25 }
  0xc6   : > { %5737 = vmatmul.mubr.bf16.gmra.mrb[80].mxu0 %v6034_v26  ;;  %5869 = vmatmul.mubr.bf16.gmra.mrb[80].mxu1 %v6035_v27 }
  0xc7   : > { %5740 = vmatprep.mubr.bf16.mxu0 %v6036_v28  ;;  %5872 = vmatprep.mubr.bf16.mxu1 %v6037_v29  ;;  %v6066_v29 = vld [vmem:[%s6142_s26 + $0x1c8] sm:$0xff]  }
  0xce   : > { %5741 = vmatmul.mubr.bf16.gmra.mrb[84].mxu0 %v6038_v30  ;;  %5873 = vmatmul.mubr.bf16.gmra.mrb[84].mxu1 %v6039_v31  ;;  %v6067_v30 = vld [vmem:[%s6142_s26 + $0x3d8] sm:$0xff]  }
  0xcf   : > { %5744 = vmatprep.mubr.bf16.mxu0 %v6040_v32  ;;  %5876 = vmatprep.mubr.bf16.mxu1 %v6041_v33 }
  0xd6   : > { %5745 = vmatmul.mubr.bf16.gmra.mrb[88].mxu0 %v6042_v34  ;;  %5877 = vmatmul.mubr.bf16.gmra.mrb[88].mxu1 %v6043_v35  ;;  %v6068_v35 = vld [vmem:[%s6142_s26 + $0x1d0] sm:$0xff]  }
  0xd7   : > { %5748 = vmatprep.mubr.bf16.mxu0 %v6044_v36  ;;  %5880 = vmatprep.mubr.bf16.mxu1 %v6045_v37  ;;  %v6069_v36 = vld [vmem:[%s6142_s26 + $0x3e0] sm:$0xff]  }
  0xde   : > { %5749 = vmatmul.mubr.bf16.gmra.mrb[92].mxu0 %v6046_v38  ;;  %5881 = vmatmul.mubr.bf16.gmra.mrb[92].mxu1 %v6047_v39 }
  0xdf   : > { %5752 = vmatprep.mubr.bf16.mxu0 %v6048_v40  ;;  %5884 = vmatprep.mubr.bf16.mxu1 %v6049_v41 }
  0xe6   : > { %5753 = vmatmul.mubr.bf16.gmra.mrb[96].mxu0 %v6050_v42  ;;  %5885 = vmatmul.mubr.bf16.gmra.mrb[96].mxu1 %v6051_v43 }
  0xe7   : > { %5756 = vmatprep.mubr.bf16.mxu0 %v6052_v44  ;;  %5888 = vmatprep.mubr.bf16.mxu1 %v6053_v45 }
  0xee   : > { %5757 = vmatmul.mubr.bf16.gmra.mrb[100].mxu0 %v6054_v46  ;;  %5889 = vmatmul.mubr.bf16.gmra.mrb[100].mxu1 %v6055_v47 }
  0xef   : > { %5760 = vmatprep.mubr.bf16.mxu0 %v6056_v48  ;;  %5892 = vmatprep.mubr.bf16.mxu1 %v6057_v49 }
  0xf6   : > { %5761 = vmatmul.mubr.bf16.gmra.mrb[104].mxu0 %v6058_v50  ;;  %5893 = vmatmul.mubr.bf16.gmra.mrb[104].mxu1 %v6059_v51 }
  0xf7   : > { %5764 = vmatprep.mubr.bf16.mxu0 %v6060_v52  ;;  %5896 = vmatprep.mubr.bf16.mxu1 %v6061_v53 }
  0xf9   : > { %v5658_v55 = vpop.f32.mrb[0].mxu0  ;;  %v5790_v56 = vpop.f32.mrb[0].mxu1 }
  0xfa   : > { %v1345_v57 = vadd.f32 %v5658_v55, %v6269_v54  ;;  %v1873_v58 = vadd.f32 %v5790_v56, %v6269_v54  ;;  %v1336_v59 = vpop.f32.mrb[1].mxu0  ;;  %v1864_v60 = vpop.f32.mrb[1].mxu1 }
  0xfb   : > { %v1337_v63 = vadd.f32 %v6269_v54, %v1336_v59  ;;  %v1865_v0 = vadd.f32 %v6269_v54, %v1864_v60  ;;  %v5659_v1 = vpop.f32.mrb[2].mxu0  ;;  %v5791_v2 = vpop.f32.mrb[2].mxu1 }
  0xfc   : > { %v1348_v5 = vadd.f32 %v5659_v1, %v6269_v54  ;;  %v1876_v6 = vadd.f32 %v5791_v2, %v6269_v54  ;;  %v1339_v7 = vpop.f32.mrb[3].mxu0  ;;  %v1867_v8 = vpop.f32.mrb[3].mxu1  ;;  %v2393_v11 = vmax.f32 %v1345_v57, 0.0  ;;  %v2525_v12 = vmax.f32 %v1873_v58, 0.0 }
  0xfd   : > { %v1340_v9 = vadd.f32 %v6269_v54, %v1339_v7  ;;  %v1868_v10 = vadd.f32 %v6269_v54, %v1867_v8  ;;  %v2391_v15 = vmax.f32 %v1337_v63, 0.0  ;;  %v2523_v16 = vmax.f32 %v1865_v0, 0.0  ;;  %v6071_v63 = vld [vmem:[%s6142_s26 + $0x3e8] sm:$0xff]  }
  0xfe   : > { %v2394_v13 = vmax.f32 %v1348_v5, 0.0  ;;  %v2526_v14 = vmax.f32 %v1876_v6, 0.0  ;;  %5765 = vmatmul.mubr.bf16.gmra.mrb[108].mxu0 %v6062_v61  ;;  %5897 = vmatmul.mubr.bf16.gmra.mrb[108].mxu1 %v6063_v62  ;;  %v6070_v62 = vld [vmem:[%s6142_s26 + $0x1d8] sm:$0xff]   ;;  %v6073_v5 = vld [vmem:[%s6142_s26 + $0x3f0] sm:$0xff]  }
  0xff   : > { %v2392_v17 = vmax.f32 %v1340_v9, 0.0  ;;  %v2524_v18 = vmax.f32 %v1868_v10, 0.0  ;;  %5768 = vmatprep.mubr.bf16.mxu0 %v6064_v3  ;;  %5900 = vmatprep.mubr.bf16.mxu1 %v6065_v4  ;;  %v6072_v4 = vld [vmem:[%s6142_s26 + $0x1e0] sm:$0xff]  }
 0x100   : > { %v4717_v19 = vpack.c.bf16 %v2394_v13, %v2393_v11  ;;  %v5047_v20 = vpack.c.bf16 %v2526_v14, %v2525_v12 }
 0x101   : > { %v4712_v21 = vpack.c.bf16 %v2392_v17, %v2391_v15  ;;  %v5042_v22 = vpack.c.bf16 %v2524_v18, %v2523_v16  ;;  %v5662_v23 = vpop.f32.mrb[4].mxu0  ;;  %v5794_v24 = vpop.f32.mrb[4].mxu1 }
 0x102   : > { %5369 = vst [vmem:[%s6288_s13 + $0x8] sm:$0xff] %v4717_v19   ;;  %5435 = vst [vmem:[%s6288_s13 + $0x218] sm:$0xff] %v5047_v20   ;;  %v1361_v25 = vadd.f32 %v5662_v23, %v6269_v54  ;;  %v1889_v26 = vadd.f32 %v5794_v24, %v6269_v54  ;;  %v1352_v27 = vpop.f32.mrb[5].mxu0  ;;  %v1880_v28 = vpop.f32.mrb[5].mxu1 }
 0x103   : > { %4713 = vst [vmem:[%s6288_s13] sm:$0xff] %v4712_v21   ;;  %5434 = vst [vmem:[%s6288_s13 + $0x210] sm:$0xff] %v5042_v22   ;;  %v1353_v31 = vadd.f32 %v6269_v54, %v1352_v27  ;;  %v1881_v32 = vadd.f32 %v6269_v54, %v1880_v28  ;;  %v5663_v33 = vpop.f32.mrb[6].mxu0  ;;  %v5795_v34 = vpop.f32.mrb[6].mxu1 }
 0x104   : > { %v1364_v37 = vadd.f32 %v5663_v33, %v6269_v54  ;;  %v1892_v38 = vadd.f32 %v5795_v34, %v6269_v54  ;;  %v1355_v39 = vpop.f32.mrb[7].mxu0  ;;  %v1883_v40 = vpop.f32.mrb[7].mxu1  ;;  %v2397_v43 = vmax.f32 %v1361_v25, 0.0  ;;  %v2529_v44 = vmax.f32 %v1889_v26, 0.0 }
 0x105   : > { %v1356_v41 = vadd.f32 %v6269_v54, %v1355_v39  ;;  %v1884_v42 = vadd.f32 %v6269_v54, %v1883_v40  ;;  %v2395_v47 = vmax.f32 %v1353_v31, 0.0  ;;  %v2527_v48 = vmax.f32 %v1881_v32, 0.0  ;;  %v6075_v31 = vld [vmem:[%s6142_s26 + $0x3f8] sm:$0xff]  }
 0x106   : > { %v2398_v45 = vmax.f32 %v1364_v37, 0.0  ;;  %v2530_v46 = vmax.f32 %v1892_v38, 0.0  ;;  %5769 = vmatmul.mubr.bf16.gmra.mrb[112].mxu0 %v6066_v29  ;;  %5901 = vmatmul.mubr.bf16.gmra.mrb[112].mxu1 %v6067_v30  ;;  %v6074_v30 = vld [vmem:[%s6142_s26 + $0x1e8] sm:$0xff]   ;;  %v6077_v37 = vld [vmem:[%s6142_s26 + $0x400] sm:$0xff]  }
 0x107   : > { %v2396_v49 = vmax.f32 %v1356_v41, 0.0  ;;  %v2528_v50 = vmax.f32 %v1884_v42, 0.0  ;;  %5772 = vmatprep.mubr.bf16.mxu0 %v6068_v35  ;;  %5904 = vmatprep.mubr.bf16.mxu1 %v6069_v36  ;;  %v6076_v36 = vld [vmem:[%s6142_s26 + $0x1f0] sm:$0xff]  }
 0x108   : > { %v4727_v51 = vpack.c.bf16 %v2398_v45, %v2397_v43  ;;  %v5057_v52 = vpack.c.bf16 %v2530_v46, %v2529_v44 }
 0x109   : > { %v4722_v53 = vpack.c.bf16 %v2396_v49, %v2395_v47  ;;  %v5052_v55 = vpack.c.bf16 %v2528_v50, %v2527_v48  ;;  %v5666_v56 = vpop.f32.mrb[8].mxu0  ;;  %v5798_v57 = vpop.f32.mrb[8].mxu1 }
 0x10a   : > { %5371 = vst [vmem:[%s6288_s13 + $0x18] sm:$0xff] %v4727_v51   ;;  %5437 = vst [vmem:[%s6288_s13 + $0x228] sm:$0xff] %v5057_v52   ;;  %v1377_v58 = vadd.f32 %v5666_v56, %v6269_v54  ;;  %v1905_v59 = vadd.f32 %v5798_v57, %v6269_v54  ;;  %v1368_v60 = vpop.f32.mrb[9].mxu0  ;;  %v1896_v61 = vpop.f32.mrb[9].mxu1 }
 0x10b   : > { %5370 = vst [vmem:[%s6288_s13 + $0x10] sm:$0xff] %v4722_v53   ;;  %5436 = vst [vmem:[%s6288_s13 + $0x220] sm:$0xff] %v5052_v55   ;;  %v1369_v0 = vadd.f32 %v6269_v54, %v1368_v60  ;;  %v1897_v1 = vadd.f32 %v6269_v54, %v1896_v61  ;;  %v5667_v2 = vpop.f32.mrb[10].mxu0  ;;  %v5799_v3 = vpop.f32.mrb[10].mxu1 }
 0x10c   : > { %v1380_v6 = vadd.f32 %v5667_v2, %v6269_v54  ;;  %v1908_v7 = vadd.f32 %v5799_v3, %v6269_v54  ;;  %v1371_v8 = vpop.f32.mrb[11].mxu0  ;;  %v1899_v9 = vpop.f32.mrb[11].mxu1  ;;  %v2401_v12 = vmax.f32 %v1377_v58, 0.0  ;;  %v2533_v13 = vmax.f32 %v1905_v59, 0.0 }
 0x10d   : > { %v1372_v10 = vadd.f32 %v6269_v54, %v1371_v8  ;;  %v1900_v11 = vadd.f32 %v6269_v54, %v1899_v9  ;;  %v2399_v16 = vmax.f32 %v1369_v0, 0.0  ;;  %v2531_v17 = vmax.f32 %v1897_v1, 0.0  ;;  %v6079_v0 = vld [vmem:[%s6142_s26 + $0x408] sm:$0xff]  }
 0x10e   : > { %v2402_v14 = vmax.f32 %v1380_v6, 0.0  ;;  %v2534_v15 = vmax.f32 %v1908_v7, 0.0  ;;  %5773 = vmatmul.mubr.bf16.gmra.mrb[116].mxu0 %v6070_v62  ;;  %5905 = vmatmul.mubr.bf16.gmra.mrb[116].mxu1 %v6071_v63  ;;  %v6078_v63 = vld [vmem:[%s6142_s26 + $0x1f8] sm:$0xff]   ;;  %v6081_v6 = vld [vmem:[%s6142_s26 + $0x410] sm:$0xff]  }
 0x10f   : > { %v2400_v18 = vmax.f32 %v1372_v10, 0.0  ;;  %v2532_v19 = vmax.f32 %v1900_v11, 0.0  ;;  %5776 = vmatprep.mubr.bf16.mxu0 %v6072_v4  ;;  %5908 = vmatprep.mubr.bf16.mxu1 %v6073_v5  ;;  %v6080_v5 = vld [vmem:[%s6142_s26 + $0x200] sm:$0xff]  }
 0x110   : > { %v4737_v20 = vpack.c.bf16 %v2402_v14, %v2401_v12  ;;  %v5067_v21 = vpack.c.bf16 %v2534_v15, %v2533_v13 }
 0x111   : > { %v4732_v22 = vpack.c.bf16 %v2400_v18, %v2399_v16  ;;  %v5062_v23 = vpack.c.bf16 %v2532_v19, %v2531_v17  ;;  %v5670_v24 = vpop.f32.mrb[12].mxu0  ;;  %v5802_v25 = vpop.f32.mrb[12].mxu1 }
 0x112   : > { %5373 = vst [vmem:[%s6288_s13 + $0x28] sm:$0xff] %v4737_v20   ;;  %5439 = vst [vmem:[%s6288_s13 + $0x238] sm:$0xff] %v5067_v21   ;;  %v1393_v26 = vadd.f32 %v5670_v24, %v6269_v54  ;;  %v1921_v27 = vadd.f32 %v5802_v25, %v6269_v54  ;;  %v1384_v28 = vpop.f32.mrb[13].mxu0  ;;  %v1912_v29 = vpop.f32.mrb[13].mxu1 }
 0x113   : > { %5372 = vst [vmem:[%s6288_s13 + $0x20] sm:$0xff] %v4732_v22   ;;  %5438 = vst [vmem:[%s6288_s13 + $0x230] sm:$0xff] %v5062_v23   ;;  %v1385_v32 = vadd.f32 %v6269_v54, %v1384_v28  ;;  %v1913_v33 = vadd.f32 %v6269_v54, %v1912_v29  ;;  %v5671_v34 = vpop.f32.mrb[14].mxu0  ;;  %v5803_v35 = vpop.f32.mrb[14].mxu1 }
 0x114   : > { %v1396_v38 = vadd.f32 %v5671_v34, %v6269_v54  ;;  %v1924_v39 = vadd.f32 %v5803_v35, %v6269_v54  ;;  %v1387_v40 = vpop.f32.mrb[15].mxu0  ;;  %v1915_v41 = vpop.f32.mrb[15].mxu1  ;;  %v2405_v44 = vmax.f32 %v1393_v26, 0.0  ;;  %v2537_v45 = vmax.f32 %v1921_v27, 0.0 }
 0x115   : > { %v1388_v42 = vadd.f32 %v6269_v54, %v1387_v40  ;;  %v1916_v43 = vadd.f32 %v6269_v54, %v1915_v41  ;;  %v2403_v48 = vmax.f32 %v1385_v32, 0.0  ;;  %v2535_v49 = vmax.f32 %v1913_v33, 0.0  ;;  %v6083_v32 = vld [vmem:[%s6142_s26 + $0x418] sm:$0xff]  }
 0x116   : > { %v2406_v46 = vmax.f32 %v1396_v38, 0.0  ;;  %v2538_v47 = vmax.f32 %v1924_v39, 0.0  ;;  %5777 = vmatmul.mubr.bf16.gmra.mrb[120].mxu0 %v6074_v30  ;;  %5909 = vmatmul.mubr.bf16.gmra.mrb[120].mxu1 %v6075_v31  ;;  %v6082_v31 = vld [vmem:[%s6142_s26 + $0x208] sm:$0xff]  }
 0x117   : > { %v2404_v50 = vmax.f32 %v1388_v42, 0.0  ;;  %v2536_v51 = vmax.f32 %v1916_v43, 0.0  ;;  %5780 = vmatprep.mubr.bf16.mxu0 %v6076_v36  ;;  %5912 = vmatprep.mubr.bf16.mxu1 %v6077_v37 }
 0x118   : > { %v4747_v52 = vpack.c.bf16 %v2406_v46, %v2405_v44  ;;  %v5077_v53 = vpack.c.bf16 %v2538_v47, %v2537_v45 }
 0x119   : > { %v4742_v55 = vpack.c.bf16 %v2404_v50, %v2403_v48  ;;  %v5072_v56 = vpack.c.bf16 %v2536_v51, %v2535_v49  ;;  %v5674_v57 = vpop.f32.mrb[16].mxu0  ;;  %v5806_v58 = vpop.f32.mrb[16].mxu1 }
 0x11a   : > { %5375 = vst [vmem:[%s6288_s13 + $0x38] sm:$0xff] %v4747_v52   ;;  %5441 = vst [vmem:[%s6288_s13 + $0x248] sm:$0xff] %v5077_v53   ;;  %v1409_v59 = vadd.f32 %v5674_v57, %v6269_v54  ;;  %v1937_v60 = vadd.f32 %v5806_v58, %v6269_v54  ;;  %v1400_v61 = vpop.f32.mrb[17].mxu0  ;;  %v1928_v62 = vpop.f32.mrb[17].mxu1 }
 0x11b   : > { %5374 = vst [vmem:[%s6288_s13 + $0x30] sm:$0xff] %v4742_v55   ;;  %5440 = vst [vmem:[%s6288_s13 + $0x240] sm:$0xff] %v5072_v56   ;;  %v1401_v1 = vadd.f32 %v6269_v54, %v1400_v61  ;;  %v1929_v2 = vadd.f32 %v6269_v54, %v1928_v62  ;;  %v5675_v3 = vpop.f32.mrb[18].mxu0  ;;  %v5807_v4 = vpop.f32.mrb[18].mxu1 }
 0x11c   : > { %v1412_v7 = vadd.f32 %v5675_v3, %v6269_v54  ;;  %v1940_v8 = vadd.f32 %v5807_v4, %v6269_v54  ;;  %v1403_v9 = vpop.f32.mrb[19].mxu0  ;;  %v1931_v10 = vpop.f32.mrb[19].mxu1  ;;  %v2409_v13 = vmax.f32 %v1409_v59, 0.0  ;;  %v2541_v14 = vmax.f32 %v1937_v60, 0.0 }
 0x11d   : > { %v1404_v11 = vadd.f32 %v6269_v54, %v1403_v9  ;;  %v1932_v12 = vadd.f32 %v6269_v54, %v1931_v10  ;;  %v2407_v17 = vmax.f32 %v1401_v1, 0.0  ;;  %v2539_v18 = vmax.f32 %v1929_v2, 0.0 }
 0x11e   : > { %v2410_v15 = vmax.f32 %v1412_v7, 0.0  ;;  %v2542_v16 = vmax.f32 %v1940_v8, 0.0  ;;  %5781 = vmatmul.mubr.bf16.gmra.mrb[124].mxu0 %v6078_v63  ;;  %5913 = vmatmul.mubr.bf16.gmra.mrb[124].mxu1 %v6079_v0 }
 0x11f   : > { %v2408_v19 = vmax.f32 %v1404_v11, 0.0  ;;  %v2540_v20 = vmax.f32 %v1932_v12, 0.0  ;;  %5784 = vmatprep.mubr.bf16.mxu0 %v6080_v5  ;;  %5916 = vmatprep.mubr.bf16.mxu1 %v6081_v6 }
 0x120   : > { %v4757_v21 = vpack.c.bf16 %v2410_v15, %v2409_v13  ;;  %v5087_v22 = vpack.c.bf16 %v2542_v16, %v2541_v14 }
 0x121   : > { %v4752_v23 = vpack.c.bf16 %v2408_v19, %v2407_v17  ;;  %v5082_v24 = vpack.c.bf16 %v2540_v20, %v2539_v18  ;;  %v5678_v25 = vpop.f32.mrb[20].mxu0  ;;  %v5810_v26 = vpop.f32.mrb[20].mxu1 }
 0x122   : > { %5377 = vst [vmem:[%s6288_s13 + $0x48] sm:$0xff] %v4757_v21   ;;  %5443 = vst [vmem:[%s6288_s13 + $0x258] sm:$0xff] %v5087_v22   ;;  %v1425_v27 = vadd.f32 %v5678_v25, %v6269_v54  ;;  %v1953_v28 = vadd.f32 %v5810_v26, %v6269_v54  ;;  %v1416_v29 = vpop.f32.mrb[21].mxu0  ;;  %v1944_v30 = vpop.f32.mrb[21].mxu1 }
 0x123   : > { %5376 = vst [vmem:[%s6288_s13 + $0x40] sm:$0xff] %v4752_v23   ;;  %5442 = vst [vmem:[%s6288_s13 + $0x250] sm:$0xff] %v5082_v24   ;;  %v1417_v33 = vadd.f32 %v6269_v54, %v1416_v29  ;;  %v1945_v34 = vadd.f32 %v6269_v54, %v1944_v30  ;;  %v5679_v35 = vpop.f32.mrb[22].mxu0  ;;  %v5811_v36 = vpop.f32.mrb[22].mxu1 }
 0x124   : > { %v1428_v37 = vadd.f32 %v5679_v35, %v6269_v54  ;;  %v1956_v38 = vadd.f32 %v5811_v36, %v6269_v54  ;;  %v1419_v39 = vpop.f32.mrb[23].mxu0  ;;  %v1947_v40 = vpop.f32.mrb[23].mxu1  ;;  %v2413_v43 = vmax.f32 %v1425_v27, 0.0  ;;  %v2545_v44 = vmax.f32 %v1953_v28, 0.0 }
 0x125   : > { %v1420_v41 = vadd.f32 %v6269_v54, %v1419_v39  ;;  %v1948_v42 = vadd.f32 %v6269_v54, %v1947_v40  ;;  %v2411_v47 = vmax.f32 %v1417_v33, 0.0  ;;  %v2543_v48 = vmax.f32 %v1945_v34, 0.0 }
 0x126   : > { %v2414_v45 = vmax.f32 %v1428_v37, 0.0  ;;  %v2546_v46 = vmax.f32 %v1956_v38, 0.0  ;;  %5785 = vmatmul.mubr.bf16.gmra.mrb[128].mxu0 %v6082_v31  ;;  %5917 = vmatmul.mubr.bf16.gmra.mrb[128].mxu1 %v6083_v32 }
 0x127   : > { %v2412_v49 = vmax.f32 %v1420_v41, 0.0  ;;  %v2544_v50 = vmax.f32 %v1948_v42, 0.0 }
 0x128   : > { %v4767_v51 = vpack.c.bf16 %v2414_v45, %v2413_v43  ;;  %v5097_v52 = vpack.c.bf16 %v2546_v46, %v2545_v44 }
 0x129   : > { %v4762_v53 = vpack.c.bf16 %v2412_v49, %v2411_v47  ;;  %v5092_v55 = vpack.c.bf16 %v2544_v50, %v2543_v48  ;;  %v5682_v56 = vpop.f32.mrb[24].mxu0  ;;  %v5814_v57 = vpop.f32.mrb[24].mxu1 }
 0x12a   : > { %5379 = vst [vmem:[%s6288_s13 + $0x58] sm:$0xff] %v4767_v51   ;;  %5445 = vst [vmem:[%s6288_s13 + $0x268] sm:$0xff] %v5097_v52   ;;  %v1441_v58 = vadd.f32 %v5682_v56, %v6269_v54  ;;  %v1969_v59 = vadd.f32 %v5814_v57, %v6269_v54  ;;  %v1432_v60 = vpop.f32.mrb[25].mxu0  ;;  %v1960_v61 = vpop.f32.mrb[25].mxu1 }
 0x12b   : > { %5378 = vst [vmem:[%s6288_s13 + $0x50] sm:$0xff] %v4762_v53   ;;  %5444 = vst [vmem:[%s6288_s13 + $0x260] sm:$0xff] %v5092_v55   ;;  %v1433_v62 = vadd.f32 %v6269_v54, %v1432_v60  ;;  %v1961_v63 = vadd.f32 %v6269_v54, %v1960_v61  ;;  %v5683_v0 = vpop.f32.mrb[26].mxu0  ;;  %v5815_v1 = vpop.f32.mrb[26].mxu1 }
 0x12c   : > { %v1444_v2 = vadd.f32 %v5683_v0, %v6269_v54  ;;  %v1972_v3 = vadd.f32 %v5815_v1, %v6269_v54  ;;  %v1435_v4 = vpop.f32.mrb[27].mxu0  ;;  %v1963_v5 = vpop.f32.mrb[27].mxu1  ;;  %v2417_v8 = vmax.f32 %v1441_v58, 0.0  ;;  %v2549_v9 = vmax.f32 %v1969_v59, 0.0 }
 0x12d   : > { %v1436_v6 = vadd.f32 %v6269_v54, %v1435_v4  ;;  %v1964_v7 = vadd.f32 %v6269_v54, %v1963_v5  ;;  %v2415_v12 = vmax.f32 %v1433_v62, 0.0  ;;  %v2547_v13 = vmax.f32 %v1961_v63, 0.0 }
 0x12e   : > { %v2418_v10 = vmax.f32 %v1444_v2, 0.0  ;;  %v2550_v11 = vmax.f32 %v1972_v3, 0.0 }
 0x12f   : > { %v2416_v14 = vmax.f32 %v1436_v6, 0.0  ;;  %v2548_v15 = vmax.f32 %v1964_v7, 0.0 }
 0x130   : > { %v4777_v16 = vpack.c.bf16 %v2418_v10, %v2417_v8  ;;  %v5107_v17 = vpack.c.bf16 %v2550_v11, %v2549_v9 }
 0x131   : > { %v4772_v18 = vpack.c.bf16 %v2416_v14, %v2415_v12  ;;  %v5102_v19 = vpack.c.bf16 %v2548_v15, %v2547_v13  ;;  %v5686_v20 = vpop.f32.mrb[28].mxu0  ;;  %v5818_v21 = vpop.f32.mrb[28].mxu1 }
 0x132   : > { %5381 = vst [vmem:[%s6288_s13 + $0x68] sm:$0xff] %v4777_v16   ;;  %5447 = vst [vmem:[%s6288_s13 + $0x278] sm:$0xff] %v5107_v17   ;;  %v1457_v22 = vadd.f32 %v5686_v20, %v6269_v54  ;;  %v1985_v23 = vadd.f32 %v5818_v21, %v6269_v54  ;;  %v1448_v24 = vpop.f32.mrb[29].mxu0  ;;  %v1976_v25 = vpop.f32.mrb[29].mxu1 }
 0x133   : > { %5380 = vst [vmem:[%s6288_s13 + $0x60] sm:$0xff] %v4772_v18   ;;  %5446 = vst [vmem:[%s6288_s13 + $0x270] sm:$0xff] %v5102_v19   ;;  %v1449_v26 = vadd.f32 %v6269_v54, %v1448_v24  ;;  %v1977_v27 = vadd.f32 %v6269_v54, %v1976_v25  ;;  %v5687_v28 = vpop.f32.mrb[30].mxu0  ;;  %v5819_v29 = vpop.f32.mrb[30].mxu1 }
 0x134   : > { %v1460_v30 = vadd.f32 %v5687_v28, %v6269_v54  ;;  %v1988_v31 = vadd.f32 %v5819_v29, %v6269_v54  ;;  %v1451_v32 = vpop.f32.mrb[31].mxu0  ;;  %v1979_v33 = vpop.f32.mrb[31].mxu1  ;;  %v2421_v36 = vmax.f32 %v1457_v22, 0.0  ;;  %v2553_v37 = vmax.f32 %v1985_v23, 0.0 }
 0x135   : > { %v1452_v34 = vadd.f32 %v6269_v54, %v1451_v32  ;;  %v1980_v35 = vadd.f32 %v6269_v54, %v1979_v33  ;;  %v2419_v40 = vmax.f32 %v1449_v26, 0.0  ;;  %v2551_v41 = vmax.f32 %v1977_v27, 0.0 }
 0x136   : > { %v2422_v38 = vmax.f32 %v1460_v30, 0.0  ;;  %v2554_v39 = vmax.f32 %v1988_v31, 0.0 }
 0x137   : > { %v2420_v42 = vmax.f32 %v1452_v34, 0.0  ;;  %v2552_v43 = vmax.f32 %v1980_v35, 0.0 }
 0x138   : > { %v4787_v44 = vpack.c.bf16 %v2422_v38, %v2421_v36  ;;  %v5117_v45 = vpack.c.bf16 %v2554_v39, %v2553_v37 }
 0x139   : > { %v4782_v46 = vpack.c.bf16 %v2420_v42, %v2419_v40  ;;  %v5112_v47 = vpack.c.bf16 %v2552_v43, %v2551_v41  ;;  %v5690_v48 = vpop.f32.mrb[32].mxu0  ;;  %v5822_v49 = vpop.f32.mrb[32].mxu1 }
 0x13a   : > { %5383 = vst [vmem:[%s6288_s13 + $0x78] sm:$0xff] %v4787_v44   ;;  %5449 = vst [vmem:[%s6288_s13 + $0x288] sm:$0xff] %v5117_v45   ;;  %v1473_v50 = vadd.f32 %v5690_v48, %v6269_v54  ;;  %v2001_v51 = vadd.f32 %v5822_v49, %v6269_v54  ;;  %v1464_v52 = vpop.f32.mrb[33].mxu0  ;;  %v1992_v53 = vpop.f32.mrb[33].mxu1 }
 0x13b   : > { %5382 = vst [vmem:[%s6288_s13 + $0x70] sm:$0xff] %v4782_v46   ;;  %5448 = vst [vmem:[%s6288_s13 + $0x280] sm:$0xff] %v5112_v47   ;;  %v1465_v55 = vadd.f32 %v6269_v54, %v1464_v52  ;;  %v1993_v56 = vadd.f32 %v6269_v54, %v1992_v53  ;;  %v5691_v57 = vpop.f32.mrb[34].mxu0  ;;  %v5823_v58 = vpop.f32.mrb[34].mxu1 }
 0x13c   : > { %v1476_v59 = vadd.f32 %v5691_v57, %v6269_v54  ;;  %v2004_v60 = vadd.f32 %v5823_v58, %v6269_v54  ;;  %v1467_v61 = vpop.f32.mrb[35].mxu0  ;;  %v1995_v62 = vpop.f32.mrb[35].mxu1  ;;  %v2425_v1 = vmax.f32 %v1473_v50, 0.0  ;;  %v2557_v2 = vmax.f32 %v2001_v51, 0.0 }
 0x13d   : > { %v1468_v63 = vadd.f32 %v6269_v54, %v1467_v61  ;;  %v1996_v0 = vadd.f32 %v6269_v54, %v1995_v62  ;;  %v2423_v5 = vmax.f32 %v1465_v55, 0.0  ;;  %v2555_v6 = vmax.f32 %v1993_v56, 0.0 }
 0x13e   : > { %v2426_v3 = vmax.f32 %v1476_v59, 0.0  ;;  %v2558_v4 = vmax.f32 %v2004_v60, 0.0 }
 0x13f   : > { %v2424_v7 = vmax.f32 %v1468_v63, 0.0  ;;  %v2556_v8 = vmax.f32 %v1996_v0, 0.0 }
 0x140   : > { %v4797_v9 = vpack.c.bf16 %v2426_v3, %v2425_v1  ;;  %v5127_v10 = vpack.c.bf16 %v2558_v4, %v2557_v2 }
 0x141   : > { %v4792_v11 = vpack.c.bf16 %v2424_v7, %v2423_v5  ;;  %v5122_v12 = vpack.c.bf16 %v2556_v8, %v2555_v6  ;;  %v5694_v13 = vpop.f32.mrb[36].mxu0  ;;  %v5826_v14 = vpop.f32.mrb[36].mxu1 }
 0x142   : > { %5385 = vst [vmem:[%s6288_s13 + $0x88] sm:$0xff] %v4797_v9   ;;  %5451 = vst [vmem:[%s6288_s13 + $0x298] sm:$0xff] %v5127_v10   ;;  %v1489_v15 = vadd.f32 %v5694_v13, %v6269_v54  ;;  %v2017_v16 = vadd.f32 %v5826_v14, %v6269_v54  ;;  %v1480_v17 = vpop.f32.mrb[37].mxu0  ;;  %v2008_v18 = vpop.f32.mrb[37].mxu1 }
 0x143   : > { %5384 = vst [vmem:[%s6288_s13 + $0x80] sm:$0xff] %v4792_v11   ;;  %5450 = vst [vmem:[%s6288_s13 + $0x290] sm:$0xff] %v5122_v12   ;;  %v1481_v19 = vadd.f32 %v6269_v54, %v1480_v17  ;;  %v2009_v20 = vadd.f32 %v6269_v54, %v2008_v18  ;;  %v5695_v21 = vpop.f32.mrb[38].mxu0  ;;  %v5827_v22 = vpop.f32.mrb[38].mxu1 }
 0x144   : > { %v1492_v23 = vadd.f32 %v5695_v21, %v6269_v54  ;;  %v2020_v24 = vadd.f32 %v5827_v22, %v6269_v54  ;;  %v1483_v25 = vpop.f32.mrb[39].mxu0  ;;  %v2011_v26 = vpop.f32.mrb[39].mxu1  ;;  %v2429_v29 = vmax.f32 %v1489_v15, 0.0  ;;  %v2561_v30 = vmax.f32 %v2017_v16, 0.0 }
 0x145   : > { %v1484_v27 = vadd.f32 %v6269_v54, %v1483_v25  ;;  %v2012_v28 = vadd.f32 %v6269_v54, %v2011_v26  ;;  %v2427_v33 = vmax.f32 %v1481_v19, 0.0  ;;  %v2559_v34 = vmax.f32 %v2009_v20, 0.0 }
 0x146   : > { %v2430_v31 = vmax.f32 %v1492_v23, 0.0  ;;  %v2562_v32 = vmax.f32 %v2020_v24, 0.0 }
 0x147   : > { %v2428_v35 = vmax.f32 %v1484_v27, 0.0  ;;  %v2560_v36 = vmax.f32 %v2012_v28, 0.0 }
 0x148   : > { %v4807_v37 = vpack.c.bf16 %v2430_v31, %v2429_v29  ;;  %v5137_v38 = vpack.c.bf16 %v2562_v32, %v2561_v30 }
 0x149   : > { %v4802_v39 = vpack.c.bf16 %v2428_v35, %v2427_v33  ;;  %v5132_v40 = vpack.c.bf16 %v2560_v36, %v2559_v34  ;;  %v5698_v41 = vpop.f32.mrb[40].mxu0  ;;  %v5830_v42 = vpop.f32.mrb[40].mxu1 }
 0x14a   : > { %5387 = vst [vmem:[%s6288_s13 + $0x98] sm:$0xff] %v4807_v37   ;;  %5453 = vst [vmem:[%s6288_s13 + $0x2a8] sm:$0xff] %v5137_v38   ;;  %v1505_v43 = vadd.f32 %v5698_v41, %v6269_v54  ;;  %v2033_v44 = vadd.f32 %v5830_v42, %v6269_v54  ;;  %v1496_v45 = vpop.f32.mrb[41].mxu0  ;;  %v2024_v46 = vpop.f32.mrb[41].mxu1 }
 0x14b   : > { %5386 = vst [vmem:[%s6288_s13 + $0x90] sm:$0xff] %v4802_v39   ;;  %5452 = vst [vmem:[%s6288_s13 + $0x2a0] sm:$0xff] %v5132_v40   ;;  %v1497_v47 = vadd.f32 %v6269_v54, %v1496_v45  ;;  %v2025_v48 = vadd.f32 %v6269_v54, %v2024_v46  ;;  %v5699_v49 = vpop.f32.mrb[42].mxu0  ;;  %v5831_v50 = vpop.f32.mrb[42].mxu1 }
 0x14c   : > { %v1508_v51 = vadd.f32 %v5699_v49, %v6269_v54  ;;  %v2036_v52 = vadd.f32 %v5831_v50, %v6269_v54  ;;  %v1499_v53 = vpop.f32.mrb[43].mxu0  ;;  %v2027_v55 = vpop.f32.mrb[43].mxu1  ;;  %v2433_v58 = vmax.f32 %v1505_v43, 0.0  ;;  %v2565_v59 = vmax.f32 %v2033_v44, 0.0 }
 0x14d   : > { %v1500_v56 = vadd.f32 %v6269_v54, %v1499_v53  ;;  %v2028_v57 = vadd.f32 %v6269_v54, %v2027_v55  ;;  %v2431_v62 = vmax.f32 %v1497_v47, 0.0  ;;  %v2563_v63 = vmax.f32 %v2025_v48, 0.0 }
 0x14e   : > { %v2434_v60 = vmax.f32 %v1508_v51, 0.0  ;;  %v2566_v61 = vmax.f32 %v2036_v52, 0.0 }
 0x14f   : > { %v2432_v0 = vmax.f32 %v1500_v56, 0.0  ;;  %v2564_v1 = vmax.f32 %v2028_v57, 0.0 }
 0x150   : > { %v4817_v2 = vpack.c.bf16 %v2434_v60, %v2433_v58  ;;  %v5147_v3 = vpack.c.bf16 %v2566_v61, %v2565_v59 }
 0x151   : > { %v4812_v4 = vpack.c.bf16 %v2432_v0, %v2431_v62  ;;  %v5142_v5 = vpack.c.bf16 %v2564_v1, %v2563_v63  ;;  %v5702_v6 = vpop.f32.mrb[44].mxu0  ;;  %v5834_v7 = vpop.f32.mrb[44].mxu1 }
 0x152   : > { %5389 = vst [vmem:[%s6288_s13 + $0xa8] sm:$0xff] %v4817_v2   ;;  %5455 = vst [vmem:[%s6288_s13 + $0x2b8] sm:$0xff] %v5147_v3   ;;  %v1521_v8 = vadd.f32 %v5702_v6, %v6269_v54  ;;  %v2049_v9 = vadd.f32 %v5834_v7, %v6269_v54  ;;  %v1512_v10 = vpop.f32.mrb[45].mxu0  ;;  %v2040_v11 = vpop.f32.mrb[45].mxu1 }
 0x153   : > { %5388 = vst [vmem:[%s6288_s13 + $0xa0] sm:$0xff] %v4812_v4   ;;  %5454 = vst [vmem:[%s6288_s13 + $0x2b0] sm:$0xff] %v5142_v5   ;;  %v1513_v12 = vadd.f32 %v6269_v54, %v1512_v10  ;;  %v2041_v13 = vadd.f32 %v6269_v54, %v2040_v11  ;;  %v5703_v14 = vpop.f32.mrb[46].mxu0  ;;  %v5835_v15 = vpop.f32.mrb[46].mxu1 }
 0x154   : > { %v1524_v16 = vadd.f32 %v5703_v14, %v6269_v54  ;;  %v2052_v17 = vadd.f32 %v5835_v15, %v6269_v54  ;;  %v1515_v18 = vpop.f32.mrb[47].mxu0  ;;  %v2043_v19 = vpop.f32.mrb[47].mxu1  ;;  %v2437_v22 = vmax.f32 %v1521_v8, 0.0  ;;  %v2569_v23 = vmax.f32 %v2049_v9, 0.0 }
 0x155   : > { %v1516_v20 = vadd.f32 %v6269_v54, %v1515_v18  ;;  %v2044_v21 = vadd.f32 %v6269_v54, %v2043_v19  ;;  %v2435_v26 = vmax.f32 %v1513_v12, 0.0  ;;  %v2567_v27 = vmax.f32 %v2041_v13, 0.0 }
 0x156   : > { %v2438_v24 = vmax.f32 %v1524_v16, 0.0  ;;  %v2570_v25 = vmax.f32 %v2052_v17, 0.0 }
 0x157   : > { %v2436_v28 = vmax.f32 %v1516_v20, 0.0  ;;  %v2568_v29 = vmax.f32 %v2044_v21, 0.0 }
 0x158   : > { %v4827_v30 = vpack.c.bf16 %v2438_v24, %v2437_v22  ;;  %v5157_v31 = vpack.c.bf16 %v2570_v25, %v2569_v23 }
 0x159   : > { %v4822_v32 = vpack.c.bf16 %v2436_v28, %v2435_v26  ;;  %v5152_v33 = vpack.c.bf16 %v2568_v29, %v2567_v27  ;;  %v5706_v34 = vpop.f32.mrb[48].mxu0  ;;  %v5838_v35 = vpop.f32.mrb[48].mxu1 }
 0x15a   : > { %5391 = vst [vmem:[%s6288_s13 + $0xb8] sm:$0xff] %v4827_v30   ;;  %5457 = vst [vmem:[%s6288_s13 + $0x2c8] sm:$0xff] %v5157_v31   ;;  %v1537_v36 = vadd.f32 %v5706_v34, %v6269_v54  ;;  %v2065_v37 = vadd.f32 %v5838_v35, %v6269_v54  ;;  %v1528_v38 = vpop.f32.mrb[49].mxu0  ;;  %v2056_v39 = vpop.f32.mrb[49].mxu1 }
 0x15b   : > { %5390 = vst [vmem:[%s6288_s13 + $0xb0] sm:$0xff] %v4822_v32   ;;  %5456 = vst [vmem:[%s6288_s13 + $0x2c0] sm:$0xff] %v5152_v33   ;;  %v1529_v40 = vadd.f32 %v6269_v54, %v1528_v38  ;;  %v2057_v41 = vadd.f32 %v6269_v54, %v2056_v39  ;;  %v5707_v42 = vpop.f32.mrb[50].mxu0  ;;  %v5839_v43 = vpop.f32.mrb[50].mxu1 }
 0x15c   : > { %v1540_v44 = vadd.f32 %v5707_v42, %v6269_v54  ;;  %v2068_v45 = vadd.f32 %v5839_v43, %v6269_v54  ;;  %v1531_v46 = vpop.f32.mrb[51].mxu0  ;;  %v2059_v47 = vpop.f32.mrb[51].mxu1  ;;  %v2441_v50 = vmax.f32 %v1537_v36, 0.0  ;;  %v2573_v51 = vmax.f32 %v2065_v37, 0.0 }
 0x15d   : > { %v1532_v48 = vadd.f32 %v6269_v54, %v1531_v46  ;;  %v2060_v49 = vadd.f32 %v6269_v54, %v2059_v47  ;;  %v2439_v55 = vmax.f32 %v1529_v40, 0.0  ;;  %v2571_v56 = vmax.f32 %v2057_v41, 0.0 }
 0x15e   : > { %v2442_v52 = vmax.f32 %v1540_v44, 0.0  ;;  %v2574_v53 = vmax.f32 %v2068_v45, 0.0 }
 0x15f   : > { %v2440_v57 = vmax.f32 %v1532_v48, 0.0  ;;  %v2572_v58 = vmax.f32 %v2060_v49, 0.0 }
 0x160   : > { %v4837_v59 = vpack.c.bf16 %v2442_v52, %v2441_v50  ;;  %v5167_v60 = vpack.c.bf16 %v2574_v53, %v2573_v51 }
 0x161   : > { %v4832_v61 = vpack.c.bf16 %v2440_v57, %v2439_v55  ;;  %v5162_v62 = vpack.c.bf16 %v2572_v58, %v2571_v56  ;;  %v5710_v63 = vpop.f32.mrb[52].mxu0  ;;  %v5842_v0 = vpop.f32.mrb[52].mxu1 }
 0x162   : > { %5393 = vst [vmem:[%s6288_s13 + $0xc8] sm:$0xff] %v4837_v59   ;;  %5459 = vst [vmem:[%s6288_s13 + $0x2d8] sm:$0xff] %v5167_v60   ;;  %v1553_v1 = vadd.f32 %v5710_v63, %v6269_v54  ;;  %v2081_v2 = vadd.f32 %v5842_v0, %v6269_v54  ;;  %v1544_v3 = vpop.f32.mrb[53].mxu0  ;;  %v2072_v4 = vpop.f32.mrb[53].mxu1 }
 0x163   : > { %5392 = vst [vmem:[%s6288_s13 + $0xc0] sm:$0xff] %v4832_v61   ;;  %5458 = vst [vmem:[%s6288_s13 + $0x2d0] sm:$0xff] %v5162_v62   ;;  %v1545_v5 = vadd.f32 %v6269_v54, %v1544_v3  ;;  %v2073_v6 = vadd.f32 %v6269_v54, %v2072_v4  ;;  %v5711_v7 = vpop.f32.mrb[54].mxu0  ;;  %v5843_v8 = vpop.f32.mrb[54].mxu1 }
 0x164   : > { %v1556_v9 = vadd.f32 %v5711_v7, %v6269_v54  ;;  %v2084_v10 = vadd.f32 %v5843_v8, %v6269_v54  ;;  %v1547_v11 = vpop.f32.mrb[55].mxu0  ;;  %v2075_v12 = vpop.f32.mrb[55].mxu1  ;;  %v2445_v15 = vmax.f32 %v1553_v1, 0.0  ;;  %v2577_v16 = vmax.f32 %v2081_v2, 0.0 }
 0x165   : > { %v1548_v13 = vadd.f32 %v6269_v54, %v1547_v11  ;;  %v2076_v14 = vadd.f32 %v6269_v54, %v2075_v12  ;;  %v2443_v19 = vmax.f32 %v1545_v5, 0.0  ;;  %v2575_v20 = vmax.f32 %v2073_v6, 0.0 }
 0x166   : > { %v2446_v17 = vmax.f32 %v1556_v9, 0.0  ;;  %v2578_v18 = vmax.f32 %v2084_v10, 0.0 }
 0x167   : > { %v2444_v21 = vmax.f32 %v1548_v13, 0.0  ;;  %v2576_v22 = vmax.f32 %v2076_v14, 0.0 }
 0x168   : > { %v4847_v23 = vpack.c.bf16 %v2446_v17, %v2445_v15  ;;  %v5177_v24 = vpack.c.bf16 %v2578_v18, %v2577_v16 }
 0x169   : > { %v4842_v25 = vpack.c.bf16 %v2444_v21, %v2443_v19  ;;  %v5172_v26 = vpack.c.bf16 %v2576_v22, %v2575_v20  ;;  %v5714_v27 = vpop.f32.mrb[56].mxu0  ;;  %v5846_v28 = vpop.f32.mrb[56].mxu1 }
 0x16a   : > { %5395 = vst [vmem:[%s6288_s13 + $0xd8] sm:$0xff] %v4847_v23   ;;  %5461 = vst [vmem:[%s6288_s13 + $0x2e8] sm:$0xff] %v5177_v24   ;;  %v1569_v29 = vadd.f32 %v5714_v27, %v6269_v54  ;;  %v2097_v30 = vadd.f32 %v5846_v28, %v6269_v54  ;;  %v1560_v31 = vpop.f32.mrb[57].mxu0  ;;  %v2088_v32 = vpop.f32.mrb[57].mxu1 }
 0x16b   : > { %5394 = vst [vmem:[%s6288_s13 + $0xd0] sm:$0xff] %v4842_v25   ;;  %5460 = vst [vmem:[%s6288_s13 + $0x2e0] sm:$0xff] %v5172_v26   ;;  %v1561_v33 = vadd.f32 %v6269_v54, %v1560_v31  ;;  %v2089_v34 = vadd.f32 %v6269_v54, %v2088_v32  ;;  %v5715_v35 = vpop.f32.mrb[58].mxu0  ;;  %v5847_v36 = vpop.f32.mrb[58].mxu1 }
 0x16c   : > { %v1572_v37 = vadd.f32 %v5715_v35, %v6269_v54  ;;  %v2100_v38 = vadd.f32 %v5847_v36, %v6269_v54  ;;  %v1563_v39 = vpop.f32.mrb[59].mxu0  ;;  %v2091_v40 = vpop.f32.mrb[59].mxu1  ;;  %v2449_v43 = vmax.f32 %v1569_v29, 0.0  ;;  %v2581_v44 = vmax.f32 %v2097_v30, 0.0 }
 0x16d   : > { %v1564_v41 = vadd.f32 %v6269_v54, %v1563_v39  ;;  %v2092_v42 = vadd.f32 %v6269_v54, %v2091_v40  ;;  %v2447_v47 = vmax.f32 %v1561_v33, 0.0  ;;  %v2579_v48 = vmax.f32 %v2089_v34, 0.0  ;;  %v6481_v54 = vld [vmem:[%s6693_s2] ss:$0 sm:$0xff] }
 0x16e   : > { %v2450_v45 = vmax.f32 %v1572_v37, 0.0  ;;  %v2582_v46 = vmax.f32 %v2100_v38, 0.0 }
 0x16f   : > { %v2448_v49 = vmax.f32 %v1564_v41, 0.0  ;;  %v2580_v50 = vmax.f32 %v2092_v42, 0.0 }
 0x170   : > { %v4857_v51 = vpack.c.bf16 %v2450_v45, %v2449_v43  ;;  %v5187_v52 = vpack.c.bf16 %v2582_v46, %v2581_v44 }
 0x171   : > { %v4852_v53 = vpack.c.bf16 %v2448_v49, %v2447_v47  ;;  %v5182_v55 = vpack.c.bf16 %v2580_v50, %v2579_v48  ;;  %v5718_v56 = vpop.f32.mrb[60].mxu0  ;;  %v5850_v57 = vpop.f32.mrb[60].mxu1 }
 0x172   : > { %5397 = vst [vmem:[%s6288_s13 + $0xe8] sm:$0xff] %v4857_v51   ;;  %5463 = vst [vmem:[%s6288_s13 + $0x2f8] sm:$0xff] %v5187_v52   ;;  %v1585_v58 = vadd.f32 %v6481_v54, %v5718_v56  ;;  %v2113_v59 = vadd.f32 %v6481_v54, %v5850_v57  ;;  %v1576_v60 = vpop.f32.mrb[61].mxu0  ;;  %v2104_v61 = vpop.f32.mrb[61].mxu1 }
 0x173   : > { %5396 = vst [vmem:[%s6288_s13 + $0xe0] sm:$0xff] %v4852_v53   ;;  %5462 = vst [vmem:[%s6288_s13 + $0x2f0] sm:$0xff] %v5182_v55   ;;  %v1577_v62 = vadd.f32 %v6481_v54, %v1576_v60  ;;  %v2105_v63 = vadd.f32 %v6481_v54, %v2104_v61  ;;  %v5719_v0 = vpop.f32.mrb[62].mxu0  ;;  %v5851_v1 = vpop.f32.mrb[62].mxu1 }
 0x174   : > { %v1588_v2 = vadd.f32 %v6481_v54, %v5719_v0  ;;  %v2116_v3 = vadd.f32 %v6481_v54, %v5851_v1  ;;  %v1579_v4 = vpop.f32.mrb[63].mxu0  ;;  %v2107_v5 = vpop.f32.mrb[63].mxu1  ;;  %v2453_v8 = vmax.f32 %v1585_v58, 0.0  ;;  %v2585_v9 = vmax.f32 %v2113_v59, 0.0 }
 0x175   : > { %v1580_v6 = vadd.f32 %v6481_v54, %v1579_v4  ;;  %v2108_v7 = vadd.f32 %v6481_v54, %v2107_v5  ;;  %v2451_v12 = vmax.f32 %v1577_v62, 0.0  ;;  %v2583_v13 = vmax.f32 %v2105_v63, 0.0 }
 0x176   : > { %v2454_v10 = vmax.f32 %v1588_v2, 0.0  ;;  %v2586_v11 = vmax.f32 %v2116_v3, 0.0 }
 0x177   : > { %v2452_v14 = vmax.f32 %v1580_v6, 0.0  ;;  %v2584_v15 = vmax.f32 %v2108_v7, 0.0 }
 0x178   : > { %v4867_v16 = vpack.c.bf16 %v2454_v10, %v2453_v8  ;;  %v5197_v17 = vpack.c.bf16 %v2586_v11, %v2585_v9 }
 0x179   : > { %v4862_v18 = vpack.c.bf16 %v2452_v14, %v2451_v12  ;;  %v5192_v19 = vpack.c.bf16 %v2584_v15, %v2583_v13  ;;  %v5722_v20 = vpop.f32.mrb[64].mxu0  ;;  %v5854_v21 = vpop.f32.mrb[64].mxu1 }
 0x17a   : > { %5399 = vst [vmem:[%s6288_s13 + $0xf8] sm:$0xff] %v4867_v16   ;;  %5465 = vst [vmem:[%s6288_s13 + $0x308] sm:$0xff] %v5197_v17   ;;  %v1601_v22 = vadd.f32 %v6481_v54, %v5722_v20  ;;  %v2129_v23 = vadd.f32 %v6481_v54, %v5854_v21  ;;  %v1592_v24 = vpop.f32.mrb[65].mxu0  ;;  %v2120_v25 = vpop.f32.mrb[65].mxu1 }
 0x17b   : > { %5398 = vst [vmem:[%s6288_s13 + $0xf0] sm:$0xff] %v4862_v18   ;;  %5464 = vst [vmem:[%s6288_s13 + $0x300] sm:$0xff] %v5192_v19   ;;  %v1593_v26 = vadd.f32 %v6481_v54, %v1592_v24  ;;  %v2121_v27 = vadd.f32 %v6481_v54, %v2120_v25  ;;  %v5723_v28 = vpop.f32.mrb[66].mxu0  ;;  %v5855_v29 = vpop.f32.mrb[66].mxu1 }
 0x17c   : > { %v1604_v30 = vadd.f32 %v6481_v54, %v5723_v28  ;;  %v2132_v31 = vadd.f32 %v6481_v54, %v5855_v29  ;;  %v1595_v32 = vpop.f32.mrb[67].mxu0  ;;  %v2123_v33 = vpop.f32.mrb[67].mxu1  ;;  %v2457_v36 = vmax.f32 %v1601_v22, 0.0  ;;  %v2589_v37 = vmax.f32 %v2129_v23, 0.0 }
 0x17d   : > { %v1596_v34 = vadd.f32 %v6481_v54, %v1595_v32  ;;  %v2124_v35 = vadd.f32 %v6481_v54, %v2123_v33  ;;  %v2455_v40 = vmax.f32 %v1593_v26, 0.0  ;;  %v2587_v41 = vmax.f32 %v2121_v27, 0.0 }
 0x17e   : > { %v2458_v38 = vmax.f32 %v1604_v30, 0.0  ;;  %v2590_v39 = vmax.f32 %v2132_v31, 0.0 }
 0x17f   : > { %v2456_v42 = vmax.f32 %v1596_v34, 0.0  ;;  %v2588_v43 = vmax.f32 %v2124_v35, 0.0 }
 0x180   : > { %v4877_v44 = vpack.c.bf16 %v2458_v38, %v2457_v36  ;;  %v5207_v45 = vpack.c.bf16 %v2590_v39, %v2589_v37 }
 0x181   : > { %v4872_v46 = vpack.c.bf16 %v2456_v42, %v2455_v40  ;;  %v5202_v47 = vpack.c.bf16 %v2588_v43, %v2587_v41  ;;  %v5726_v48 = vpop.f32.mrb[68].mxu0  ;;  %v5858_v49 = vpop.f32.mrb[68].mxu1 }
 0x182   : > { %5401 = vst [vmem:[%s6288_s13 + $0x108] sm:$0xff] %v4877_v44   ;;  %5467 = vst [vmem:[%s6288_s13 + $0x318] sm:$0xff] %v5207_v45   ;;  %v1617_v50 = vadd.f32 %v6481_v54, %v5726_v48  ;;  %v2145_v51 = vadd.f32 %v6481_v54, %v5858_v49  ;;  %v1608_v52 = vpop.f32.mrb[69].mxu0  ;;  %v2136_v53 = vpop.f32.mrb[69].mxu1 }
 0x183   : > { %5400 = vst [vmem:[%s6288_s13 + $0x100] sm:$0xff] %v4872_v46   ;;  %5466 = vst [vmem:[%s6288_s13 + $0x310] sm:$0xff] %v5202_v47   ;;  %v1609_v55 = vadd.f32 %v6481_v54, %v1608_v52  ;;  %v2137_v56 = vadd.f32 %v6481_v54, %v2136_v53  ;;  %v5727_v57 = vpop.f32.mrb[70].mxu0  ;;  %v5859_v58 = vpop.f32.mrb[70].mxu1 }
 0x184   : > { %v1620_v59 = vadd.f32 %v6481_v54, %v5727_v57  ;;  %v2148_v60 = vadd.f32 %v6481_v54, %v5859_v58  ;;  %v1611_v61 = vpop.f32.mrb[71].mxu0  ;;  %v2139_v62 = vpop.f32.mrb[71].mxu1  ;;  %v2461_v1 = vmax.f32 %v1617_v50, 0.0  ;;  %v2593_v2 = vmax.f32 %v2145_v51, 0.0 }
 0x185   : > { %v1612_v63 = vadd.f32 %v6481_v54, %v1611_v61  ;;  %v2140_v0 = vadd.f32 %v6481_v54, %v2139_v62  ;;  %v2459_v5 = vmax.f32 %v1609_v55, 0.0  ;;  %v2591_v6 = vmax.f32 %v2137_v56, 0.0 }
 0x186   : > { %v2462_v3 = vmax.f32 %v1620_v59, 0.0  ;;  %v2594_v4 = vmax.f32 %v2148_v60, 0.0 }
 0x187   : > { %v2460_v7 = vmax.f32 %v1612_v63, 0.0  ;;  %v2592_v8 = vmax.f32 %v2140_v0, 0.0 }
 0x188   : > { %v4887_v9 = vpack.c.bf16 %v2462_v3, %v2461_v1  ;;  %v5217_v10 = vpack.c.bf16 %v2594_v4, %v2593_v2 }
 0x189   : > { %v4882_v11 = vpack.c.bf16 %v2460_v7, %v2459_v5  ;;  %v5212_v12 = vpack.c.bf16 %v2592_v8, %v2591_v6  ;;  %v5730_v13 = vpop.f32.mrb[72].mxu0  ;;  %v5862_v14 = vpop.f32.mrb[72].mxu1 }
 0x18a   : > { %5403 = vst [vmem:[%s6288_s13 + $0x118] sm:$0xff] %v4887_v9   ;;  %5469 = vst [vmem:[%s6288_s13 + $0x328] sm:$0xff] %v5217_v10   ;;  %v1633_v15 = vadd.f32 %v6481_v54, %v5730_v13  ;;  %v2161_v16 = vadd.f32 %v6481_v54, %v5862_v14  ;;  %v1624_v17 = vpop.f32.mrb[73].mxu0  ;;  %v2152_v18 = vpop.f32.mrb[73].mxu1 }
 0x18b   : > { %5402 = vst [vmem:[%s6288_s13 + $0x110] sm:$0xff] %v4882_v11   ;;  %5468 = vst [vmem:[%s6288_s13 + $0x320] sm:$0xff] %v5212_v12   ;;  %v1625_v19 = vadd.f32 %v6481_v54, %v1624_v17  ;;  %v2153_v20 = vadd.f32 %v6481_v54, %v2152_v18  ;;  %v5731_v21 = vpop.f32.mrb[74].mxu0  ;;  %v5863_v22 = vpop.f32.mrb[74].mxu1 }
 0x18c   : > { %v1636_v23 = vadd.f32 %v6481_v54, %v5731_v21  ;;  %v2164_v24 = vadd.f32 %v6481_v54, %v5863_v22  ;;  %v1627_v25 = vpop.f32.mrb[75].mxu0  ;;  %v2155_v26 = vpop.f32.mrb[75].mxu1  ;;  %v2465_v29 = vmax.f32 %v1633_v15, 0.0  ;;  %v2597_v30 = vmax.f32 %v2161_v16, 0.0 }
 0x18d   : > { %v1628_v27 = vadd.f32 %v6481_v54, %v1627_v25  ;;  %v2156_v28 = vadd.f32 %v6481_v54, %v2155_v26  ;;  %v2463_v33 = vmax.f32 %v1625_v19, 0.0  ;;  %v2595_v34 = vmax.f32 %v2153_v20, 0.0 }
 0x18e   : > { %v2466_v31 = vmax.f32 %v1636_v23, 0.0  ;;  %v2598_v32 = vmax.f32 %v2164_v24, 0.0 }
 0x18f   : > { %v2464_v35 = vmax.f32 %v1628_v27, 0.0  ;;  %v2596_v36 = vmax.f32 %v2156_v28, 0.0 }
 0x190   : > { %v4897_v37 = vpack.c.bf16 %v2466_v31, %v2465_v29  ;;  %v5227_v38 = vpack.c.bf16 %v2598_v32, %v2597_v30 }
 0x191   : > { %v4892_v39 = vpack.c.bf16 %v2464_v35, %v2463_v33  ;;  %v5222_v40 = vpack.c.bf16 %v2596_v36, %v2595_v34  ;;  %v5734_v41 = vpop.f32.mrb[76].mxu0  ;;  %v5866_v42 = vpop.f32.mrb[76].mxu1 }
 0x192   : > { %5405 = vst [vmem:[%s6288_s13 + $0x128] sm:$0xff] %v4897_v37   ;;  %5471 = vst [vmem:[%s6288_s13 + $0x338] sm:$0xff] %v5227_v38   ;;  %v1649_v43 = vadd.f32 %v6481_v54, %v5734_v41  ;;  %v2177_v44 = vadd.f32 %v6481_v54, %v5866_v42  ;;  %v1640_v45 = vpop.f32.mrb[77].mxu0  ;;  %v2168_v46 = vpop.f32.mrb[77].mxu1 }
 0x193   : > { %5404 = vst [vmem:[%s6288_s13 + $0x120] sm:$0xff] %v4892_v39   ;;  %5470 = vst [vmem:[%s6288_s13 + $0x330] sm:$0xff] %v5222_v40   ;;  %v1641_v47 = vadd.f32 %v6481_v54, %v1640_v45  ;;  %v2169_v48 = vadd.f32 %v6481_v54, %v2168_v46  ;;  %v5735_v49 = vpop.f32.mrb[78].mxu0  ;;  %v5867_v50 = vpop.f32.mrb[78].mxu1 }
 0x194   : > { %v1652_v51 = vadd.f32 %v6481_v54, %v5735_v49  ;;  %v2180_v52 = vadd.f32 %v6481_v54, %v5867_v50  ;;  %v1643_v53 = vpop.f32.mrb[79].mxu0  ;;  %v2171_v55 = vpop.f32.mrb[79].mxu1  ;;  %v2469_v58 = vmax.f32 %v1649_v43, 0.0  ;;  %v2601_v59 = vmax.f32 %v2177_v44, 0.0 }
 0x195   : > { %v1644_v56 = vadd.f32 %v6481_v54, %v1643_v53  ;;  %v2172_v57 = vadd.f32 %v6481_v54, %v2171_v55  ;;  %v2467_v62 = vmax.f32 %v1641_v47, 0.0  ;;  %v2599_v63 = vmax.f32 %v2169_v48, 0.0 }
 0x196   : > { %v2470_v60 = vmax.f32 %v1652_v51, 0.0  ;;  %v2602_v61 = vmax.f32 %v2180_v52, 0.0 }
 0x197   : > { %v2468_v0 = vmax.f32 %v1644_v56, 0.0  ;;  %v2600_v1 = vmax.f32 %v2172_v57, 0.0 }
 0x198   : > { %v4907_v2 = vpack.c.bf16 %v2470_v60, %v2469_v58  ;;  %v5237_v3 = vpack.c.bf16 %v2602_v61, %v2601_v59 }
 0x199   : > { %v4902_v4 = vpack.c.bf16 %v2468_v0, %v2467_v62  ;;  %v5232_v5 = vpack.c.bf16 %v2600_v1, %v2599_v63  ;;  %v5738_v6 = vpop.f32.mrb[80].mxu0  ;;  %v5870_v7 = vpop.f32.mrb[80].mxu1 }
 0x19a   : > { %5407 = vst [vmem:[%s6288_s13 + $0x138] sm:$0xff] %v4907_v2   ;;  %5473 = vst [vmem:[%s6288_s13 + $0x348] sm:$0xff] %v5237_v3   ;;  %v1665_v8 = vadd.f32 %v6481_v54, %v5738_v6  ;;  %v2193_v9 = vadd.f32 %v6481_v54, %v5870_v7  ;;  %v1656_v10 = vpop.f32.mrb[81].mxu0  ;;  %v2184_v11 = vpop.f32.mrb[81].mxu1 }
 0x19b   : > { %5406 = vst [vmem:[%s6288_s13 + $0x130] sm:$0xff] %v4902_v4   ;;  %5472 = vst [vmem:[%s6288_s13 + $0x340] sm:$0xff] %v5232_v5   ;;  %v1657_v12 = vadd.f32 %v6481_v54, %v1656_v10  ;;  %v2185_v13 = vadd.f32 %v6481_v54, %v2184_v11  ;;  %v5739_v14 = vpop.f32.mrb[82].mxu0  ;;  %v5871_v15 = vpop.f32.mrb[82].mxu1 }
 0x19c   : > { %v1668_v16 = vadd.f32 %v6481_v54, %v5739_v14  ;;  %v2196_v17 = vadd.f32 %v6481_v54, %v5871_v15  ;;  %v1659_v18 = vpop.f32.mrb[83].mxu0  ;;  %v2187_v19 = vpop.f32.mrb[83].mxu1  ;;  %v2473_v22 = vmax.f32 %v1665_v8, 0.0  ;;  %v2605_v23 = vmax.f32 %v2193_v9, 0.0 }
 0x19d   : > { %v1660_v20 = vadd.f32 %v6481_v54, %v1659_v18  ;;  %v2188_v21 = vadd.f32 %v6481_v54, %v2187_v19  ;;  %v2471_v26 = vmax.f32 %v1657_v12, 0.0  ;;  %v2603_v27 = vmax.f32 %v2185_v13, 0.0 }
 0x19e   : > { %v2474_v24 = vmax.f32 %v1668_v16, 0.0  ;;  %v2606_v25 = vmax.f32 %v2196_v17, 0.0 }
 0x19f   : > { %v2472_v28 = vmax.f32 %v1660_v20, 0.0  ;;  %v2604_v29 = vmax.f32 %v2188_v21, 0.0 }
 0x1a0   : > { %v4917_v30 = vpack.c.bf16 %v2474_v24, %v2473_v22  ;;  %v5247_v31 = vpack.c.bf16 %v2606_v25, %v2605_v23 }
 0x1a1   : > { %v4912_v32 = vpack.c.bf16 %v2472_v28, %v2471_v26  ;;  %v5242_v33 = vpack.c.bf16 %v2604_v29, %v2603_v27  ;;  %v5742_v34 = vpop.f32.mrb[84].mxu0  ;;  %v5874_v35 = vpop.f32.mrb[84].mxu1 }
 0x1a2   : > { %5409 = vst [vmem:[%s6288_s13 + $0x148] sm:$0xff] %v4917_v30   ;;  %5475 = vst [vmem:[%s6288_s13 + $0x358] sm:$0xff] %v5247_v31   ;;  %v1681_v36 = vadd.f32 %v6481_v54, %v5742_v34  ;;  %v2209_v37 = vadd.f32 %v6481_v54, %v5874_v35  ;;  %v1672_v38 = vpop.f32.mrb[85].mxu0  ;;  %v2200_v39 = vpop.f32.mrb[85].mxu1 }
 0x1a3   : > { %5408 = vst [vmem:[%s6288_s13 + $0x140] sm:$0xff] %v4912_v32   ;;  %5474 = vst [vmem:[%s6288_s13 + $0x350] sm:$0xff] %v5242_v33   ;;  %v1673_v40 = vadd.f32 %v6481_v54, %v1672_v38  ;;  %v2201_v41 = vadd.f32 %v6481_v54, %v2200_v39  ;;  %v5743_v42 = vpop.f32.mrb[86].mxu0  ;;  %v5875_v43 = vpop.f32.mrb[86].mxu1 }
 0x1a4   : > { %v1684_v44 = vadd.f32 %v6481_v54, %v5743_v42  ;;  %v2212_v45 = vadd.f32 %v6481_v54, %v5875_v43  ;;  %v1675_v46 = vpop.f32.mrb[87].mxu0  ;;  %v2203_v47 = vpop.f32.mrb[87].mxu1  ;;  %v2477_v50 = vmax.f32 %v1681_v36, 0.0  ;;  %v2609_v51 = vmax.f32 %v2209_v37, 0.0 }
 0x1a5   : > { %v1676_v48 = vadd.f32 %v6481_v54, %v1675_v46  ;;  %v2204_v49 = vadd.f32 %v6481_v54, %v2203_v47  ;;  %v2475_v55 = vmax.f32 %v1673_v40, 0.0  ;;  %v2607_v56 = vmax.f32 %v2201_v41, 0.0 }
 0x1a6   : > { %v2478_v52 = vmax.f32 %v1684_v44, 0.0  ;;  %v2610_v53 = vmax.f32 %v2212_v45, 0.0 }
 0x1a7   : > { %v2476_v57 = vmax.f32 %v1676_v48, 0.0  ;;  %v2608_v58 = vmax.f32 %v2204_v49, 0.0 }
 0x1a8   : > { %v4927_v59 = vpack.c.bf16 %v2478_v52, %v2477_v50  ;;  %v5257_v60 = vpack.c.bf16 %v2610_v53, %v2609_v51 }
 0x1a9   : > { %v4922_v61 = vpack.c.bf16 %v2476_v57, %v2475_v55  ;;  %v5252_v62 = vpack.c.bf16 %v2608_v58, %v2607_v56  ;;  %v5746_v63 = vpop.f32.mrb[88].mxu0  ;;  %v5878_v0 = vpop.f32.mrb[88].mxu1 }
 0x1aa   : > { %5411 = vst [vmem:[%s6288_s13 + $0x158] sm:$0xff] %v4927_v59   ;;  %5477 = vst [vmem:[%s6288_s13 + $0x368] sm:$0xff] %v5257_v60   ;;  %v1697_v1 = vadd.f32 %v6481_v54, %v5746_v63  ;;  %v2225_v2 = vadd.f32 %v6481_v54, %v5878_v0  ;;  %v1688_v3 = vpop.f32.mrb[89].mxu0  ;;  %v2216_v4 = vpop.f32.mrb[89].mxu1 }
 0x1ab   : > { %5410 = vst [vmem:[%s6288_s13 + $0x150] sm:$0xff] %v4922_v61   ;;  %5476 = vst [vmem:[%s6288_s13 + $0x360] sm:$0xff] %v5252_v62   ;;  %v1689_v5 = vadd.f32 %v6481_v54, %v1688_v3  ;;  %v2217_v6 = vadd.f32 %v6481_v54, %v2216_v4  ;;  %v5747_v7 = vpop.f32.mrb[90].mxu0  ;;  %v5879_v8 = vpop.f32.mrb[90].mxu1 }
 0x1ac   : > { %v1700_v9 = vadd.f32 %v6481_v54, %v5747_v7  ;;  %v2228_v10 = vadd.f32 %v6481_v54, %v5879_v8  ;;  %v1691_v11 = vpop.f32.mrb[91].mxu0  ;;  %v2219_v12 = vpop.f32.mrb[91].mxu1  ;;  %v2481_v15 = vmax.f32 %v1697_v1, 0.0  ;;  %v2613_v16 = vmax.f32 %v2225_v2, 0.0 }
 0x1ad   : > { %v1692_v13 = vadd.f32 %v6481_v54, %v1691_v11  ;;  %v2220_v14 = vadd.f32 %v6481_v54, %v2219_v12  ;;  %v2479_v19 = vmax.f32 %v1689_v5, 0.0  ;;  %v2611_v20 = vmax.f32 %v2217_v6, 0.0 }
 0x1ae   : > { %v2482_v17 = vmax.f32 %v1700_v9, 0.0  ;;  %v2614_v18 = vmax.f32 %v2228_v10, 0.0 }
 0x1af   : > { %v2480_v21 = vmax.f32 %v1692_v13, 0.0  ;;  %v2612_v22 = vmax.f32 %v2220_v14, 0.0 }
 0x1b0   : > { %v4937_v23 = vpack.c.bf16 %v2482_v17, %v2481_v15  ;;  %v5267_v24 = vpack.c.bf16 %v2614_v18, %v2613_v16 }
 0x1b1   : > { %v4932_v25 = vpack.c.bf16 %v2480_v21, %v2479_v19  ;;  %v5262_v26 = vpack.c.bf16 %v2612_v22, %v2611_v20  ;;  %v5750_v27 = vpop.f32.mrb[92].mxu0  ;;  %v5882_v28 = vpop.f32.mrb[92].mxu1 }
 0x1b2   : > { %5413 = vst [vmem:[%s6288_s13 + $0x168] sm:$0xff] %v4937_v23   ;;  %5479 = vst [vmem:[%s6288_s13 + $0x378] sm:$0xff] %v5267_v24   ;;  %v1713_v29 = vadd.f32 %v6481_v54, %v5750_v27  ;;  %v2241_v30 = vadd.f32 %v6481_v54, %v5882_v28  ;;  %v1704_v31 = vpop.f32.mrb[93].mxu0  ;;  %v2232_v32 = vpop.f32.mrb[93].mxu1 }
 0x1b3   : > { %5412 = vst [vmem:[%s6288_s13 + $0x160] sm:$0xff] %v4932_v25   ;;  %5478 = vst [vmem:[%s6288_s13 + $0x370] sm:$0xff] %v5262_v26   ;;  %v1705_v33 = vadd.f32 %v6481_v54, %v1704_v31  ;;  %v2233_v34 = vadd.f32 %v6481_v54, %v2232_v32  ;;  %v5751_v35 = vpop.f32.mrb[94].mxu0  ;;  %v5883_v36 = vpop.f32.mrb[94].mxu1 }
 0x1b4   : > { %v1716_v37 = vadd.f32 %v6481_v54, %v5751_v35  ;;  %v2244_v38 = vadd.f32 %v6481_v54, %v5883_v36  ;;  %v1707_v39 = vpop.f32.mrb[95].mxu0  ;;  %v2235_v40 = vpop.f32.mrb[95].mxu1  ;;  %v2485_v43 = vmax.f32 %v1713_v29, 0.0  ;;  %v2617_v44 = vmax.f32 %v2241_v30, 0.0 }
 0x1b5   : > { %v1708_v41 = vadd.f32 %v6481_v54, %v1707_v39  ;;  %v2236_v42 = vadd.f32 %v6481_v54, %v2235_v40  ;;  %v2483_v47 = vmax.f32 %v1705_v33, 0.0  ;;  %v2615_v48 = vmax.f32 %v2233_v34, 0.0 }
 0x1b6   : > { %v2486_v45 = vmax.f32 %v1716_v37, 0.0  ;;  %v2618_v46 = vmax.f32 %v2244_v38, 0.0 }
 0x1b7   : > { %v2484_v49 = vmax.f32 %v1708_v41, 0.0  ;;  %v2616_v50 = vmax.f32 %v2236_v42, 0.0 }
 0x1b8   : > { %v4947_v51 = vpack.c.bf16 %v2486_v45, %v2485_v43  ;;  %v5277_v52 = vpack.c.bf16 %v2618_v46, %v2617_v44 }
 0x1b9   : > { %v4942_v53 = vpack.c.bf16 %v2484_v49, %v2483_v47  ;;  %v5272_v55 = vpack.c.bf16 %v2616_v50, %v2615_v48  ;;  %v5754_v56 = vpop.f32.mrb[96].mxu0  ;;  %v5886_v57 = vpop.f32.mrb[96].mxu1 }
 0x1ba   : > { %5415 = vst [vmem:[%s6288_s13 + $0x178] sm:$0xff] %v4947_v51   ;;  %5481 = vst [vmem:[%s6288_s13 + $0x388] sm:$0xff] %v5277_v52   ;;  %v1729_v58 = vadd.f32 %v6481_v54, %v5754_v56  ;;  %v2257_v59 = vadd.f32 %v6481_v54, %v5886_v57  ;;  %v1720_v60 = vpop.f32.mrb[97].mxu0  ;;  %v2248_v61 = vpop.f32.mrb[97].mxu1 }
 0x1bb   : > { %5414 = vst [vmem:[%s6288_s13 + $0x170] sm:$0xff] %v4942_v53   ;;  %5480 = vst [vmem:[%s6288_s13 + $0x380] sm:$0xff] %v5272_v55   ;;  %v1721_v62 = vadd.f32 %v6481_v54, %v1720_v60  ;;  %v2249_v63 = vadd.f32 %v6481_v54, %v2248_v61  ;;  %v5755_v0 = vpop.f32.mrb[98].mxu0  ;;  %v5887_v1 = vpop.f32.mrb[98].mxu1 }
 0x1bc   : > { %v1732_v2 = vadd.f32 %v6481_v54, %v5755_v0  ;;  %v2260_v3 = vadd.f32 %v6481_v54, %v5887_v1  ;;  %v1723_v4 = vpop.f32.mrb[99].mxu0  ;;  %v2251_v5 = vpop.f32.mrb[99].mxu1  ;;  %v2489_v8 = vmax.f32 %v1729_v58, 0.0  ;;  %v2621_v9 = vmax.f32 %v2257_v59, 0.0 }
 0x1bd   : > { %v1724_v6 = vadd.f32 %v6481_v54, %v1723_v4  ;;  %v2252_v7 = vadd.f32 %v6481_v54, %v2251_v5  ;;  %v2487_v12 = vmax.f32 %v1721_v62, 0.0  ;;  %v2619_v13 = vmax.f32 %v2249_v63, 0.0 }
 0x1be   : > { %v2490_v10 = vmax.f32 %v1732_v2, 0.0  ;;  %v2622_v11 = vmax.f32 %v2260_v3, 0.0 }
 0x1bf   : > { %v2488_v14 = vmax.f32 %v1724_v6, 0.0  ;;  %v2620_v15 = vmax.f32 %v2252_v7, 0.0 }
 0x1c0   : > { %v4957_v16 = vpack.c.bf16 %v2490_v10, %v2489_v8  ;;  %v5287_v17 = vpack.c.bf16 %v2622_v11, %v2621_v9 }
 0x1c1   : > { %v4952_v18 = vpack.c.bf16 %v2488_v14, %v2487_v12  ;;  %v5282_v19 = vpack.c.bf16 %v2620_v15, %v2619_v13  ;;  %v5758_v20 = vpop.f32.mrb[100].mxu0  ;;  %v5890_v21 = vpop.f32.mrb[100].mxu1 }
 0x1c2   : > { %5417 = vst [vmem:[%s6288_s13 + $0x188] sm:$0xff] %v4957_v16   ;;  %5483 = vst [vmem:[%s6288_s13 + $0x398] sm:$0xff] %v5287_v17   ;;  %v1745_v22 = vadd.f32 %v6481_v54, %v5758_v20  ;;  %v2273_v23 = vadd.f32 %v6481_v54, %v5890_v21  ;;  %v1736_v24 = vpop.f32.mrb[101].mxu0  ;;  %v2264_v25 = vpop.f32.mrb[101].mxu1 }
 0x1c3   : > { %5416 = vst [vmem:[%s6288_s13 + $0x180] sm:$0xff] %v4952_v18   ;;  %5482 = vst [vmem:[%s6288_s13 + $0x390] sm:$0xff] %v5282_v19   ;;  %v1737_v26 = vadd.f32 %v6481_v54, %v1736_v24  ;;  %v2265_v27 = vadd.f32 %v6481_v54, %v2264_v25  ;;  %v5759_v28 = vpop.f32.mrb[102].mxu0  ;;  %v5891_v29 = vpop.f32.mrb[102].mxu1 }
 0x1c4   : > { %v1748_v30 = vadd.f32 %v6481_v54, %v5759_v28  ;;  %v2276_v31 = vadd.f32 %v6481_v54, %v5891_v29  ;;  %v1739_v32 = vpop.f32.mrb[103].mxu0  ;;  %v2267_v33 = vpop.f32.mrb[103].mxu1  ;;  %v2493_v36 = vmax.f32 %v1745_v22, 0.0  ;;  %v2625_v37 = vmax.f32 %v2273_v23, 0.0 }
 0x1c5   : > { %v1740_v34 = vadd.f32 %v6481_v54, %v1739_v32  ;;  %v2268_v35 = vadd.f32 %v6481_v54, %v2267_v33  ;;  %v2491_v40 = vmax.f32 %v1737_v26, 0.0  ;;  %v2623_v41 = vmax.f32 %v2265_v27, 0.0 }
 0x1c6   : > { %v2494_v38 = vmax.f32 %v1748_v30, 0.0  ;;  %v2626_v39 = vmax.f32 %v2276_v31, 0.0 }
 0x1c7   : > { %v2492_v42 = vmax.f32 %v1740_v34, 0.0  ;;  %v2624_v43 = vmax.f32 %v2268_v35, 0.0 }
 0x1c8   : > { %v4967_v44 = vpack.c.bf16 %v2494_v38, %v2493_v36  ;;  %v5297_v45 = vpack.c.bf16 %v2626_v39, %v2625_v37 }
 0x1c9   : > { %v4962_v46 = vpack.c.bf16 %v2492_v42, %v2491_v40  ;;  %v5292_v47 = vpack.c.bf16 %v2624_v43, %v2623_v41  ;;  %v5762_v48 = vpop.f32.mrb[104].mxu0  ;;  %v5894_v49 = vpop.f32.mrb[104].mxu1 }
 0x1ca   : > { %5419 = vst [vmem:[%s6288_s13 + $0x198] sm:$0xff] %v4967_v44   ;;  %5485 = vst [vmem:[%s6288_s13 + $0x3a8] sm:$0xff] %v5297_v45   ;;  %v1761_v50 = vadd.f32 %v6481_v54, %v5762_v48  ;;  %v2289_v51 = vadd.f32 %v6481_v54, %v5894_v49  ;;  %v1752_v52 = vpop.f32.mrb[105].mxu0  ;;  %v2280_v53 = vpop.f32.mrb[105].mxu1 }
 0x1cb   : > { %5418 = vst [vmem:[%s6288_s13 + $0x190] sm:$0xff] %v4962_v46   ;;  %5484 = vst [vmem:[%s6288_s13 + $0x3a0] sm:$0xff] %v5292_v47   ;;  %v1753_v55 = vadd.f32 %v6481_v54, %v1752_v52  ;;  %v2281_v56 = vadd.f32 %v6481_v54, %v2280_v53  ;;  %v5763_v57 = vpop.f32.mrb[106].mxu0  ;;  %v5895_v58 = vpop.f32.mrb[106].mxu1 }
 0x1cc   : > { %v1764_v59 = vadd.f32 %v6481_v54, %v5763_v57  ;;  %v2292_v60 = vadd.f32 %v6481_v54, %v5895_v58  ;;  %v1755_v61 = vpop.f32.mrb[107].mxu0  ;;  %v2283_v62 = vpop.f32.mrb[107].mxu1  ;;  %v2497_v1 = vmax.f32 %v1761_v50, 0.0  ;;  %v2629_v2 = vmax.f32 %v2289_v51, 0.0 }
 0x1cd   : > { %v1756_v63 = vadd.f32 %v6481_v54, %v1755_v61  ;;  %v2284_v0 = vadd.f32 %v6481_v54, %v2283_v62  ;;  %v2495_v5 = vmax.f32 %v1753_v55, 0.0  ;;  %v2627_v6 = vmax.f32 %v2281_v56, 0.0 }
 0x1ce   : > { %v2498_v3 = vmax.f32 %v1764_v59, 0.0  ;;  %v2630_v4 = vmax.f32 %v2292_v60, 0.0 }
 0x1cf   : > { %v2496_v7 = vmax.f32 %v1756_v63, 0.0  ;;  %v2628_v8 = vmax.f32 %v2284_v0, 0.0 }
 0x1d0   : > { %v4977_v9 = vpack.c.bf16 %v2498_v3, %v2497_v1  ;;  %v5307_v10 = vpack.c.bf16 %v2630_v4, %v2629_v2 }
 0x1d1   : > { %v4972_v11 = vpack.c.bf16 %v2496_v7, %v2495_v5  ;;  %v5302_v12 = vpack.c.bf16 %v2628_v8, %v2627_v6  ;;  %v5766_v13 = vpop.f32.mrb[108].mxu0  ;;  %v5898_v14 = vpop.f32.mrb[108].mxu1 }
 0x1d2   : > { %5421 = vst [vmem:[%s6288_s13 + $0x1a8] sm:$0xff] %v4977_v9   ;;  %5487 = vst [vmem:[%s6288_s13 + $0x3b8] sm:$0xff] %v5307_v10   ;;  %v1777_v15 = vadd.f32 %v6481_v54, %v5766_v13  ;;  %v2305_v16 = vadd.f32 %v6481_v54, %v5898_v14  ;;  %v1768_v17 = vpop.f32.mrb[109].mxu0  ;;  %v2296_v18 = vpop.f32.mrb[109].mxu1 }
 0x1d3   : > { %5420 = vst [vmem:[%s6288_s13 + $0x1a0] sm:$0xff] %v4972_v11   ;;  %5486 = vst [vmem:[%s6288_s13 + $0x3b0] sm:$0xff] %v5302_v12   ;;  %v1769_v19 = vadd.f32 %v6481_v54, %v1768_v17  ;;  %v2297_v20 = vadd.f32 %v6481_v54, %v2296_v18  ;;  %v5767_v21 = vpop.f32.mrb[110].mxu0  ;;  %v5899_v22 = vpop.f32.mrb[110].mxu1 }
 0x1d4   : > { %v1780_v23 = vadd.f32 %v6481_v54, %v5767_v21  ;;  %v2308_v24 = vadd.f32 %v6481_v54, %v5899_v22  ;;  %v1771_v25 = vpop.f32.mrb[111].mxu0  ;;  %v2299_v26 = vpop.f32.mrb[111].mxu1  ;;  %v2501_v29 = vmax.f32 %v1777_v15, 0.0  ;;  %v2633_v30 = vmax.f32 %v2305_v16, 0.0 }
 0x1d5   : > { %v1772_v27 = vadd.f32 %v6481_v54, %v1771_v25  ;;  %v2300_v28 = vadd.f32 %v6481_v54, %v2299_v26  ;;  %v2499_v33 = vmax.f32 %v1769_v19, 0.0  ;;  %v2631_v34 = vmax.f32 %v2297_v20, 0.0 }
 0x1d6   : > { %v2502_v31 = vmax.f32 %v1780_v23, 0.0  ;;  %v2634_v32 = vmax.f32 %v2308_v24, 0.0 }
 0x1d7   : > { %v2500_v35 = vmax.f32 %v1772_v27, 0.0  ;;  %v2632_v36 = vmax.f32 %v2300_v28, 0.0 }
 0x1d8   : > { %v4987_v37 = vpack.c.bf16 %v2502_v31, %v2501_v29  ;;  %v5317_v38 = vpack.c.bf16 %v2634_v32, %v2633_v30 }
 0x1d9   : > { %v4982_v39 = vpack.c.bf16 %v2500_v35, %v2499_v33  ;;  %v5312_v40 = vpack.c.bf16 %v2632_v36, %v2631_v34  ;;  %v5770_v41 = vpop.f32.mrb[112].mxu0  ;;  %v5902_v42 = vpop.f32.mrb[112].mxu1 }
 0x1da   : > { %5423 = vst [vmem:[%s6288_s13 + $0x1b8] sm:$0xff] %v4987_v37   ;;  %5489 = vst [vmem:[%s6288_s13 + $0x3c8] sm:$0xff] %v5317_v38   ;;  %v1793_v43 = vadd.f32 %v6481_v54, %v5770_v41  ;;  %v2321_v44 = vadd.f32 %v6481_v54, %v5902_v42  ;;  %v1784_v45 = vpop.f32.mrb[113].mxu0  ;;  %v2312_v46 = vpop.f32.mrb[113].mxu1 }
 0x1db   : > { %5422 = vst [vmem:[%s6288_s13 + $0x1b0] sm:$0xff] %v4982_v39   ;;  %5488 = vst [vmem:[%s6288_s13 + $0x3c0] sm:$0xff] %v5312_v40   ;;  %v1785_v47 = vadd.f32 %v6481_v54, %v1784_v45  ;;  %v2313_v48 = vadd.f32 %v6481_v54, %v2312_v46  ;;  %v5771_v49 = vpop.f32.mrb[114].mxu0  ;;  %v5903_v50 = vpop.f32.mrb[114].mxu1 }
 0x1dc   : > { %v1796_v51 = vadd.f32 %v6481_v54, %v5771_v49  ;;  %v2324_v52 = vadd.f32 %v6481_v54, %v5903_v50  ;;  %v1787_v53 = vpop.f32.mrb[115].mxu0  ;;  %v2315_v55 = vpop.f32.mrb[115].mxu1  ;;  %v2505_v58 = vmax.f32 %v1793_v43, 0.0  ;;  %v2637_v59 = vmax.f32 %v2321_v44, 0.0 }
 0x1dd   : > { %v1788_v56 = vadd.f32 %v6481_v54, %v1787_v53  ;;  %v2316_v57 = vadd.f32 %v6481_v54, %v2315_v55  ;;  %v2503_v62 = vmax.f32 %v1785_v47, 0.0  ;;  %v2635_v63 = vmax.f32 %v2313_v48, 0.0 }
 0x1de   : > { %v2506_v60 = vmax.f32 %v1796_v51, 0.0  ;;  %v2638_v61 = vmax.f32 %v2324_v52, 0.0 }
 0x1df   : > { %v2504_v0 = vmax.f32 %v1788_v56, 0.0  ;;  %v2636_v1 = vmax.f32 %v2316_v57, 0.0 }
 0x1e0   : > { %v4997_v2 = vpack.c.bf16 %v2506_v60, %v2505_v58  ;;  %v5327_v3 = vpack.c.bf16 %v2638_v61, %v2637_v59 }
 0x1e1   : > { %v4992_v4 = vpack.c.bf16 %v2504_v0, %v2503_v62  ;;  %v5322_v5 = vpack.c.bf16 %v2636_v1, %v2635_v63  ;;  %v5774_v6 = vpop.f32.mrb[116].mxu0  ;;  %v5906_v7 = vpop.f32.mrb[116].mxu1 }
 0x1e2   : > { %5425 = vst [vmem:[%s6288_s13 + $0x1c8] sm:$0xff] %v4997_v2   ;;  %5491 = vst [vmem:[%s6288_s13 + $0x3d8] sm:$0xff] %v5327_v3   ;;  %v1809_v8 = vadd.f32 %v6481_v54, %v5774_v6  ;;  %v2337_v9 = vadd.f32 %v6481_v54, %v5906_v7  ;;  %v1800_v10 = vpop.f32.mrb[117].mxu0  ;;  %v2328_v11 = vpop.f32.mrb[117].mxu1 }
 0x1e3   : > { %5424 = vst [vmem:[%s6288_s13 + $0x1c0] sm:$0xff] %v4992_v4   ;;  %5490 = vst [vmem:[%s6288_s13 + $0x3d0] sm:$0xff] %v5322_v5   ;;  %v1801_v12 = vadd.f32 %v6481_v54, %v1800_v10  ;;  %v2329_v13 = vadd.f32 %v6481_v54, %v2328_v11  ;;  %v5775_v14 = vpop.f32.mrb[118].mxu0  ;;  %v5907_v15 = vpop.f32.mrb[118].mxu1 }
 0x1e4   : > { %v1812_v16 = vadd.f32 %v6481_v54, %v5775_v14  ;;  %v2340_v17 = vadd.f32 %v6481_v54, %v5907_v15  ;;  %v1803_v18 = vpop.f32.mrb[119].mxu0  ;;  %v2331_v19 = vpop.f32.mrb[119].mxu1  ;;  %v2509_v22 = vmax.f32 %v1809_v8, 0.0  ;;  %v2641_v23 = vmax.f32 %v2337_v9, 0.0 }
 0x1e5   : > { %v1804_v20 = vadd.f32 %v6481_v54, %v1803_v18  ;;  %v2332_v21 = vadd.f32 %v6481_v54, %v2331_v19  ;;  %v2507_v26 = vmax.f32 %v1801_v12, 0.0  ;;  %v2639_v27 = vmax.f32 %v2329_v13, 0.0 }
 0x1e6   : > { %v2510_v24 = vmax.f32 %v1812_v16, 0.0  ;;  %v2642_v25 = vmax.f32 %v2340_v17, 0.0 }
 0x1e7   : > { %v2508_v28 = vmax.f32 %v1804_v20, 0.0  ;;  %v2640_v29 = vmax.f32 %v2332_v21, 0.0 }
 0x1e8   : > { %v5007_v30 = vpack.c.bf16 %v2510_v24, %v2509_v22  ;;  %v5337_v31 = vpack.c.bf16 %v2642_v25, %v2641_v23 }
 0x1e9   : > { %v5002_v32 = vpack.c.bf16 %v2508_v28, %v2507_v26  ;;  %v5332_v33 = vpack.c.bf16 %v2640_v29, %v2639_v27  ;;  %v5778_v34 = vpop.f32.mrb[120].mxu0  ;;  %v5910_v35 = vpop.f32.mrb[120].mxu1 }
 0x1ea   : > { %5427 = vst [vmem:[%s6288_s13 + $0x1d8] sm:$0xff] %v5007_v30   ;;  %5493 = vst [vmem:[%s6288_s13 + $0x3e8] sm:$0xff] %v5337_v31   ;;  %v1825_v36 = vadd.f32 %v6481_v54, %v5778_v34  ;;  %v2353_v37 = vadd.f32 %v6481_v54, %v5910_v35  ;;  %v1816_v38 = vpop.f32.mrb[121].mxu0  ;;  %v2344_v39 = vpop.f32.mrb[121].mxu1 }
 0x1eb   : > { %5426 = vst [vmem:[%s6288_s13 + $0x1d0] sm:$0xff] %v5002_v32   ;;  %5492 = vst [vmem:[%s6288_s13 + $0x3e0] sm:$0xff] %v5332_v33   ;;  %v1817_v40 = vadd.f32 %v6481_v54, %v1816_v38  ;;  %v2345_v41 = vadd.f32 %v6481_v54, %v2344_v39  ;;  %v5779_v42 = vpop.f32.mrb[122].mxu0  ;;  %v5911_v43 = vpop.f32.mrb[122].mxu1 }
 0x1ec   : > { %v1828_v44 = vadd.f32 %v6481_v54, %v5779_v42  ;;  %v2356_v45 = vadd.f32 %v6481_v54, %v5911_v43  ;;  %v1819_v46 = vpop.f32.mrb[123].mxu0  ;;  %v2347_v47 = vpop.f32.mrb[123].mxu1  ;;  %v2513_v50 = vmax.f32 %v1825_v36, 0.0  ;;  %v2645_v51 = vmax.f32 %v2353_v37, 0.0 }
 0x1ed   : > { %v1820_v48 = vadd.f32 %v6481_v54, %v1819_v46  ;;  %v2348_v49 = vadd.f32 %v6481_v54, %v2347_v47  ;;  %v2511_v55 = vmax.f32 %v1817_v40, 0.0  ;;  %v2643_v56 = vmax.f32 %v2345_v41, 0.0  ;;  %v6085_v54 = vld [vmem:[%s6693_s2] ss:$0 sm:$0xff] }
 0x1ee   : > { %v2514_v52 = vmax.f32 %v1828_v44, 0.0  ;;  %v2646_v53 = vmax.f32 %v2356_v45, 0.0 }
 0x1ef   : > { %v2512_v57 = vmax.f32 %v1820_v48, 0.0  ;;  %v2644_v58 = vmax.f32 %v2348_v49, 0.0 }
 0x1f0   : > { %v5017_v59 = vpack.c.bf16 %v2514_v52, %v2513_v50  ;;  %v5347_v60 = vpack.c.bf16 %v2646_v53, %v2645_v51 }
 0x1f1   : > { %v5012_v61 = vpack.c.bf16 %v2512_v57, %v2511_v55  ;;  %v5342_v62 = vpack.c.bf16 %v2644_v58, %v2643_v56  ;;  %v5782_v63 = vpop.f32.mrb[124].mxu0  ;;  %v5914_v0 = vpop.f32.mrb[124].mxu1 }
 0x1f2   : > { %5429 = vst [vmem:[%s6288_s13 + $0x1e8] sm:$0xff] %v5017_v59   ;;  %5495 = vst [vmem:[%s6288_s13 + $0x3f8] sm:$0xff] %v5347_v60   ;;  %v1841_v1 = vadd.f32 %v6085_v54, %v5782_v63  ;;  %v2369_v2 = vadd.f32 %v6085_v54, %v5914_v0  ;;  %v1832_v3 = vpop.f32.mrb[125].mxu0  ;;  %v2360_v4 = vpop.f32.mrb[125].mxu1 }
 0x1f3   : > { %5428 = vst [vmem:[%s6288_s13 + $0x1e0] sm:$0xff] %v5012_v61   ;;  %5494 = vst [vmem:[%s6288_s13 + $0x3f0] sm:$0xff] %v5342_v62   ;;  %v1833_v5 = vadd.f32 %v6085_v54, %v1832_v3  ;;  %v2361_v6 = vadd.f32 %v6085_v54, %v2360_v4  ;;  %v5783_v7 = vpop.f32.mrb[126].mxu0  ;;  %v5915_v8 = vpop.f32.mrb[126].mxu1 }
 0x1f4   : > { %v1844_v9 = vadd.f32 %v6085_v54, %v5783_v7  ;;  %v2372_v10 = vadd.f32 %v6085_v54, %v5915_v8  ;;  %v1835_v11 = vpop.f32.mrb[127].mxu0  ;;  %v2363_v12 = vpop.f32.mrb[127].mxu1  ;;  %v2517_v15 = vmax.f32 %v1841_v1, 0.0  ;;  %v2649_v16 = vmax.f32 %v2369_v2, 0.0 }
 0x1f5   : > { %v1836_v13 = vadd.f32 %v6085_v54, %v1835_v11  ;;  %v2364_v14 = vadd.f32 %v6085_v54, %v2363_v12  ;;  %v2515_v19 = vmax.f32 %v1833_v5, 0.0  ;;  %v2647_v20 = vmax.f32 %v2361_v6, 0.0 }
 0x1f6   : > { %v2518_v17 = vmax.f32 %v1844_v9, 0.0  ;;  %v2650_v18 = vmax.f32 %v2372_v10, 0.0 }
 0x1f7   : > { %v2516_v21 = vmax.f32 %v1836_v13, 0.0  ;;  %v2648_v22 = vmax.f32 %v2364_v14, 0.0 }
 0x1f8   : > { %v5027_v23 = vpack.c.bf16 %v2518_v17, %v2517_v15  ;;  %v5357_v24 = vpack.c.bf16 %v2650_v18, %v2649_v16 }
 0x1f9   : > { %v5022_v25 = vpack.c.bf16 %v2516_v21, %v2515_v19  ;;  %v5352_v26 = vpack.c.bf16 %v2648_v22, %v2647_v20  ;;  %v5786_v27 = vpop.f32.mrb[128].mxu0  ;;  %v5918_v28 = vpop.f32.mrb[128].mxu1 }
 0x1fa   : > { %5431 = vst [vmem:[%s6288_s13 + $0x1f8] sm:$0xff] %v5027_v23   ;;  %5497 = vst [vmem:[%s6288_s13 + $0x408] sm:$0xff] %v5357_v24   ;;  %v1857_v29 = vadd.f32 %v6085_v54, %v5786_v27  ;;  %v2385_v30 = vadd.f32 %v6085_v54, %v5918_v28  ;;  %v1848_v31 = vpop.f32.mrb[129].mxu0  ;;  %v2376_v32 = vpop.f32.mrb[129].mxu1 }
 0x1fb   : > { %5430 = vst [vmem:[%s6288_s13 + $0x1f0] sm:$0xff] %v5022_v25   ;;  %5496 = vst [vmem:[%s6288_s13 + $0x400] sm:$0xff] %v5352_v26   ;;  %v1849_v33 = vadd.f32 %v6085_v54, %v1848_v31  ;;  %v2377_v34 = vadd.f32 %v6085_v54, %v2376_v32  ;;  %v5787_v35 = vpop.f32.mrb[130].mxu0  ;;  %v5919_v36 = vpop.f32.mrb[130].mxu1 }
 0x1fc   : > { %v1860_v37 = vadd.f32 %v6085_v54, %v5787_v35  ;;  %v2388_v38 = vadd.f32 %v6085_v54, %v5919_v36  ;;  %v1851_v39 = vpop.f32.mrb[131].mxu0  ;;  %v2379_v40 = vpop.f32.mrb[131].mxu1  ;;  %v2521_v43 = vmax.f32 %v1857_v29, 0.0  ;;  %v2653_v44 = vmax.f32 %v2385_v30, 0.0 }
 0x1fd   : > { %v1852_v41 = vadd.f32 %v6085_v54, %v1851_v39  ;;  %v2380_v42 = vadd.f32 %v6085_v54, %v2379_v40  ;;  %v2519_v47 = vmax.f32 %v1849_v33, 0.0  ;;  %v2651_v48 = vmax.f32 %v2377_v34, 0.0 }
 0x1fe   : > { %v2522_v45 = vmax.f32 %v1860_v37, 0.0  ;;  %v2654_v46 = vmax.f32 %v2388_v38, 0.0 }
 0x1ff   : > { %v2520_v49 = vmax.f32 %v1852_v41, 0.0  ;;  %v2652_v50 = vmax.f32 %v2380_v42, 0.0 }
 0x200   : > { %v5037_v51 = vpack.c.bf16 %v2522_v45, %v2521_v43  ;;  %v5367_v52 = vpack.c.bf16 %v2654_v46, %v2653_v44 }
 0x201   : > { %v5032_v53 = vpack.c.bf16 %v2520_v49, %v2519_v47  ;;  %v5362_v55 = vpack.c.bf16 %v2652_v50, %v2651_v48 }
 0x202   : > { %5433 = vst [vmem:[%s6288_s13 + $0x208] sm:$0xff] %v5037_v51   ;;  %5499 = vst [vmem:[%s6288_s13 + $0x418] sm:$0xff] %v5367_v52  }
 0x203   : > { %5432 = vst [vmem:[%s6288_s13 + $0x200] sm:$0xff] %v5032_v53   ;;  %5498 = vst [vmem:[%s6288_s13 + $0x410] sm:$0xff] %v5362_v55  }
 0x204 PF: > { %s13_s12 = sadd.s32 1, %s6092_s12  }
 0x205   : > { %p10_p4 = scmp.ge.s32.totalorder %s13_s12, 4  }
 0x207   :  { %12 = sbr.rel (!%p10_p4) target bundleno = 1 (0x1), region = 62 }

// kernel: encoder_forward.5
= control target key start
LH: loop header
LB: loop body
LE: loop exit
PB: predicated region body
PF: predicated region fallthrough
CT: control target
= control target key end

     0   :  { %s2178_s1 = inlined_call_operand.vmem [shape: bf16[512,128], index: 1, kind: input, shape index: {}]   ;;  %s2179_s0 = inlined_call_operand.vmem [shape: bf16[252,512], index: 0, kind: input, shape index: {}]   ;;  %s2180_s2 = inlined_call_operand.vmem [shape: f32[1,128], index: 2, kind: input, shape index: {}]   ;;  %s2181_s3 = inlined_call_operand.vmem [shape: bf16[252,128], index: 3, kind: output, shape index: {}]  }
   0x1   :  { %v1654_v0 = vld [vmem:[%s2178_s1 + $0x40] sm:$0xff]   ;;  %v1658_v4 = vld [vmem:[%s2178_s1 + $0x48] sm:$0xff]   ;;  %v1662_v8 = vld [vmem:[%s2178_s1 + $0x50] sm:$0xff]  }
   0x2   :  { %v1655_v1 = vld [vmem:[%s2178_s1 + $0xc0] sm:$0xff]   ;;  %1430 = vmatprep.subr.bf16.mxu0 %v1654_v0  ;;  %v1659_v5 = vld [vmem:[%s2178_s1 + $0xc8] sm:$0xff]   ;;  %v1663_v9 = vld [vmem:[%s2178_s1 + $0xd0] sm:$0xff]  }
   0x3   :  { %v1656_v2 = vld [vmem:[%s2178_s1] sm:$0xff]   ;;  %1542 = vmatprep.subr.bf16.mxu1 %v1655_v1  ;;  %v1660_v6 = vld [vmem:[%s2178_s1 + $0x8] sm:$0xff]   ;;  %v1664_v10 = vld [vmem:[%s2178_s1 + $0x10] sm:$0xff]  }
   0x4   :  { %v1657_v3 = vld [vmem:[%s2178_s1 + $0x80] sm:$0xff]   ;;  %1431 = vmatpush3.bf16.msra.mxu0 %v1656_v2  ;;  %v1661_v7 = vld [vmem:[%s2178_s1 + $0x88] sm:$0xff]   ;;  %v1665_v11 = vld [vmem:[%s2178_s1 + $0x90] sm:$0xff]  }
   0x5   :  { %1543 = vmatpush3.bf16.msra.mxu1 %v1657_v3  ;;  %1432 = vmatprep.subr.bf16.mxu0 %v1658_v4  ;;  %v1666_v12 = vld [vmem:[%s2178_s1 + $0x58] sm:$0xff]   ;;  %v1670_v16 = vld [vmem:[%s2178_s1 + $0x60] sm:$0xff]   ;;  %v1674_v20 = vld [vmem:[%s2178_s1 + $0x68] sm:$0xff]  }
   0x6   :  { %1544 = vmatprep.subr.bf16.mxu1 %v1659_v5  ;;  %v1667_v13 = vld [vmem:[%s2178_s1 + $0xd8] sm:$0xff]   ;;  %v1671_v17 = vld [vmem:[%s2178_s1 + $0xe0] sm:$0xff]   ;;  %v1675_v21 = vld [vmem:[%s2178_s1 + $0xe8] sm:$0xff]  }
   0x7   :  { %v1668_v14 = vld [vmem:[%s2178_s1 + $0x18] sm:$0xff]   ;;  %v1672_v18 = vld [vmem:[%s2178_s1 + $0x20] sm:$0xff]   ;;  %v1676_v22 = vld [vmem:[%s2178_s1 + $0x28] sm:$0xff]  }
   0x8   :  { %1433 = vmatpush3.bf16.msra.mxu0 %v1660_v6  ;;  %v1669_v15 = vld [vmem:[%s2178_s1 + $0x98] sm:$0xff]   ;;  %v1673_v19 = vld [vmem:[%s2178_s1 + $0xa0] sm:$0xff]   ;;  %v1677_v23 = vld [vmem:[%s2178_s1 + $0xa8] sm:$0xff]  }
   0x9   :  { %1545 = vmatpush3.bf16.msra.mxu1 %v1661_v7  ;;  %1434 = vmatprep.subr.bf16.mxu0 %v1662_v8  ;;  %v1678_v24 = vld [vmem:[%s2178_s1 + $0x70] sm:$0xff]   ;;  %v1682_v28 = vld [vmem:[%s2178_s1 + $0x78] sm:$0xff]  }
   0xa   :  { %1546 = vmatprep.subr.bf16.mxu1 %v1663_v9  ;;  %v1679_v25 = vld [vmem:[%s2178_s1 + $0xf0] sm:$0xff]   ;;  %v1683_v29 = vld [vmem:[%s2178_s1 + $0xf8] sm:$0xff]  }
   0xb   :  { %v1680_v26 = vld [vmem:[%s2178_s1 + $0x30] sm:$0xff]   ;;  %v1684_v30 = vld [vmem:[%s2178_s1 + $0x38] sm:$0xff]  }
   0xc   :  { %1435 = vmatpush3.bf16.msra.mxu0 %v1664_v10  ;;  %v1681_v27 = vld [vmem:[%s2178_s1 + $0xb0] sm:$0xff]   ;;  %v1685_v31 = vld [vmem:[%s2178_s1 + $0xb8] sm:$0xff]  }
   0xd   :  { %1547 = vmatpush3.bf16.msra.mxu1 %v1665_v11  ;;  %1436 = vmatprep.subr.bf16.mxu0 %v1666_v12  ;;  %v1686_v32 = vld [vmem:[%s2179_s0] ss:$16 sps:$4 sm:$0xff]   ;;  %v1688_v33 = vld [vmem:[%s2179_s0 + $0x4] ss:$16 sps:$4 sm:$0xff]   ;;  %v1689_v34 = vld [vmem:[%s2179_s0 + $0x8] ss:$16 sps:$4 sm:$0xff]  }
   0xe   :  { %1548 = vmatprep.subr.bf16.mxu1 %v1667_v13  ;;  %v1691_v35 = vld [vmem:[%s2179_s0 + $0xc] ss:$16 sps:$4 sm:$0xff]   ;;  %694 = vmatprep.mubr.bf16.mxu0 %v1688_v33  ;;  %v1692_v36 = vld [vmem:[%s2179_s0 + $0x24] ss:$16 sps:$4 sm:$0xff]   ;;  %v1696_v38 = vld [vmem:[%s2179_s0 + $0x20] ss:$16 sps:$4 sm:$0xff]  }
   0xf   :  { %855 = vmatprep.mubr.bf16.mxu1 %v1691_v35  ;;  %v1694_v37 = vld [vmem:[%s2179_s0 + $0x2c] ss:$16 sps:$4 sm:$0xff]   ;;  %v1697_v39 = vld [vmem:[%s2179_s0 + $0x28] ss:$16 sps:$4 sm:$0xff]   ;;  %v1698_v40 = vld [vmem:[%s2179_s0 + $0x44] ss:$16 sps:$4 sm:$0xff]  }
  0x10   :  { %1437 = vmatpush3.bf16.msra.mxu0 %v1668_v14  ;;  %v1700_v41 = vld [vmem:[%s2179_s0 + $0x4c] ss:$16 sps:$4 sm:$0xff]   ;;  %v1702_v42 = vld [vmem:[%s2179_s0 + $0x40] ss:$16 sps:$4 sm:$0xff]   ;;  %v1703_v43 = vld [vmem:[%s2179_s0 + $0x48] ss:$16 sps:$4 sm:$0xff]  }
  0x11   :  { %1549 = vmatpush3.bf16.msra.mxu1 %v1669_v15  ;;  %1438 = vmatprep.subr.bf16.mxu0 %v1670_v16  ;;  %v1704_v44 = vld [vmem:[%s2179_s0 + $0x64] ss:$16 sps:$4 sm:$0xff]   ;;  %v1706_v45 = vld [vmem:[%s2179_s0 + $0x6c] ss:$16 sps:$4 sm:$0xff]   ;;  %v1708_v46 = vld [vmem:[%s2179_s0 + $0x60] ss:$16 sps:$4 sm:$0xff]  }
  0x12   :  { %1550 = vmatprep.subr.bf16.mxu1 %v1671_v17  ;;  %v1709_v47 = vld [vmem:[%s2179_s0 + $0x68] ss:$16 sps:$4 sm:$0xff]   ;;  %v1710_v48 = vld [vmem:[%s2179_s0 + $0x84] ss:$16 sps:$4 sm:$0xff]   ;;  %v1712_v49 = vld [vmem:[%s2179_s0 + $0x8c] ss:$16 sps:$4 sm:$0xff]  }
  0x13   :  { %v1714_v50 = vld [vmem:[%s2179_s0 + $0x80] ss:$16 sps:$4 sm:$0xff]   ;;  %v1715_v51 = vld [vmem:[%s2179_s0 + $0x88] ss:$16 sps:$4 sm:$0xff]   ;;  %v1716_v52 = vld [vmem:[%s2179_s0 + $0xa4] ss:$16 sps:$4 sm:$0xff]  }
  0x14   :  { %1439 = vmatpush3.bf16.msra.mxu0 %v1672_v18  ;;  %v1718_v53 = vld [vmem:[%s2179_s0 + $0xac] ss:$16 sps:$4 sm:$0xff]   ;;  %v1720_v54 = vld [vmem:[%s2179_s0 + $0xa0] ss:$16 sps:$4 sm:$0xff]   ;;  %v1721_v55 = vld [vmem:[%s2179_s0 + $0xa8] ss:$16 sps:$4 sm:$0xff]  }
  0x15   :  { %1551 = vmatpush3.bf16.msra.mxu1 %v1673_v19  ;;  %1440 = vmatprep.subr.bf16.mxu0 %v1674_v20  ;;  %v1722_v56 = vld [vmem:[%s2179_s0 + $0xc4] ss:$16 sps:$4 sm:$0xff]   ;;  %v1724_v57 = vld [vmem:[%s2179_s0 + $0xcc] ss:$16 sps:$4 sm:$0xff]   ;;  %v1726_v58 = vld [vmem:[%s2179_s0 + $0xc0] ss:$16 sps:$4 sm:$0xff]  }
  0x16   :  { %1552 = vmatprep.subr.bf16.mxu1 %v1675_v21  ;;  %v1727_v59 = vld [vmem:[%s2179_s0 + $0xc8] ss:$16 sps:$4 sm:$0xff]   ;;  %v1728_v60 = vld [vmem:[%s2179_s0 + $0xe4] ss:$16 sps:$4 sm:$0xff]   ;;  %v1730_v61 = vld [vmem:[%s2179_s0 + $0xec] ss:$16 sps:$4 sm:$0xff]  }
  0x17   :  { %v1732_v62 = vld [vmem:[%s2179_s0 + $0xe0] ss:$16 sps:$4 sm:$0xff]   ;;  %v1733_v63 = vld [vmem:[%s2179_s0 + $0xe8] ss:$16 sps:$4 sm:$0xff]   ;;  %v1734_v0 = vld [vmem:[%s2179_s0 + $0x104] ss:$16 sps:$4 sm:$0xff]  }
  0x18   :  { %1441 = vmatpush3.bf16.msra.mxu0 %v1676_v22  ;;  %v1736_v1 = vld [vmem:[%s2179_s0 + $0x10c] ss:$16 sps:$4 sm:$0xff]   ;;  %v1738_v2 = vld [vmem:[%s2179_s0 + $0x100] ss:$16 sps:$4 sm:$0xff]   ;;  %v1739_v3 = vld [vmem:[%s2179_s0 + $0x108] ss:$16 sps:$4 sm:$0xff]  }
  0x19   :  { %1553 = vmatpush3.bf16.msra.mxu1 %v1677_v23  ;;  %1442 = vmatprep.subr.bf16.mxu0 %v1678_v24  ;;  %v1740_v4 = vld [vmem:[%s2179_s0 + $0x124] ss:$16 sps:$4 sm:$0xff]   ;;  %v1742_v5 = vld [vmem:[%s2179_s0 + $0x12c] ss:$16 sps:$4 sm:$0xff]   ;;  %v1744_v6 = vld [vmem:[%s2179_s0 + $0x120] ss:$16 sps:$4 sm:$0xff]  }
  0x1a   :  { %1554 = vmatprep.subr.bf16.mxu1 %v1679_v25  ;;  %v1745_v7 = vld [vmem:[%s2179_s0 + $0x128] ss:$16 sps:$4 sm:$0xff]   ;;  %v1746_v8 = vld [vmem:[%s2179_s0 + $0x144] ss:$16 sps:$4 sm:$0xff]   ;;  %v1748_v9 = vld [vmem:[%s2179_s0 + $0x14c] ss:$16 sps:$4 sm:$0xff]  }
  0x1b   :  { %v1750_v10 = vld [vmem:[%s2179_s0 + $0x140] ss:$16 sps:$4 sm:$0xff]   ;;  %v1751_v11 = vld [vmem:[%s2179_s0 + $0x148] ss:$16 sps:$4 sm:$0xff]   ;;  %v1752_v12 = vld [vmem:[%s2179_s0 + $0x164] ss:$16 sps:$4 sm:$0xff]  }
  0x1c   :  { %1443 = vmatpush3.bf16.msra.mxu0 %v1680_v26  ;;  %v1754_v13 = vld [vmem:[%s2179_s0 + $0x16c] ss:$16 sps:$4 sm:$0xff]   ;;  %v1756_v14 = vld [vmem:[%s2179_s0 + $0x160] ss:$16 sps:$4 sm:$0xff]   ;;  %v1757_v15 = vld [vmem:[%s2179_s0 + $0x168] ss:$16 sps:$4 sm:$0xff]  }
  0x1d   :  { %1555 = vmatpush3.bf16.msra.mxu1 %v1681_v27  ;;  %1444 = vmatprep.subr.bf16.mxu0 %v1682_v28  ;;  %v1758_v16 = vld [vmem:[%s2179_s0 + $0x184] ss:$16 sps:$4 sm:$0xff]   ;;  %v1760_v17 = vld [vmem:[%s2179_s0 + $0x18c] ss:$16 sps:$4 sm:$0xff]   ;;  %v1762_v18 = vld [vmem:[%s2179_s0 + $0x180] ss:$16 sps:$4 sm:$0xff]  }
  0x1e   :  { %1556 = vmatprep.subr.bf16.mxu1 %v1683_v29  ;;  %v1763_v19 = vld [vmem:[%s2179_s0 + $0x188] ss:$16 sps:$4 sm:$0xff]   ;;  %v1764_v20 = vld [vmem:[%s2179_s0 + $0x1a4] ss:$16 sps:$4 sm:$0xff]   ;;  %v1766_v21 = vld [vmem:[%s2179_s0 + $0x1ac] ss:$16 sps:$4 sm:$0xff]  }
  0x1f   :  { %v1768_v22 = vld [vmem:[%s2179_s0 + $0x1a0] ss:$16 sps:$4 sm:$0xff]   ;;  %v1769_v23 = vld [vmem:[%s2179_s0 + $0x1a8] ss:$16 sps:$4 sm:$0xff]   ;;  %v1770_v24 = vld [vmem:[%s2179_s0 + $0x1c4] ss:$16 sps:$4 sm:$0xff]  }
  0x20   :  { %1445 = vmatpush3.bf16.msra.mxu0 %v1684_v30  ;;  %v1772_v25 = vld [vmem:[%s2179_s0 + $0x1cc] ss:$16 sps:$4 sm:$0xff]   ;;  %v1774_v26 = vld [vmem:[%s2179_s0 + $0x1c0] ss:$16 sps:$4 sm:$0xff]   ;;  %v1775_v27 = vld [vmem:[%s2179_s0 + $0x1c8] ss:$16 sps:$4 sm:$0xff]  }
  0x21   :  { %1557 = vmatpush3.bf16.msra.mxu1 %v1685_v31  ;;  %v1776_v28 = vld [vmem:[%s2179_s0 + $0x1e4] ss:$16 sps:$4 sm:$0x3f]   ;;  %v1778_v29 = vld [vmem:[%s2179_s0 + $0x1ec] ss:$16 sps:$4 sm:$0x3f]  }
  0x22   :  { %v1780_v30 = vld [vmem:[%s2179_s0 + $0x1e0] ss:$16 sps:$4 sm:$0x3f]   ;;  %v1781_v31 = vld [vmem:[%s2179_s0 + $0x1e8] ss:$16 sps:$4 sm:$0x3f]  }
  0x23   :  { %695 = vmatmul.mubr.bf16.vlgmr.msra.gmra.mrb[0].mxu0 %v1686_v32 }
  0x24   :  { %856 = vmatmul.mubr.bf16.vlgmr.msra.gmra.mrb[0].mxu1 %v1689_v34  ;;  %702 = vmatprep.mubr.bf16.mxu0 %v1692_v36  ;;  %v2093_v34 = vld [vmem:[%s2180_s2] ss:$0 sm:$0xff] }
  0x25   :  { %863 = vmatprep.mubr.bf16.mxu1 %v1694_v37 }
  0x2b   :  { %703 = vmatmul.mubr.bf16.gmra.mrb[4].mxu0 %v1696_v38 }
  0x2c   :  { %864 = vmatmul.mubr.bf16.gmra.mrb[4].mxu1 %v1697_v39  ;;  %710 = vmatprep.mubr.bf16.mxu0 %v1698_v40 }
  0x2d   :  { %871 = vmatprep.mubr.bf16.mxu1 %v1700_v41 }
  0x33   :  { %711 = vmatmul.mubr.bf16.gmra.mrb[8].mxu0 %v1702_v42 }
  0x34   :  { %872 = vmatmul.mubr.bf16.gmra.mrb[8].mxu1 %v1703_v43  ;;  %718 = vmatprep.mubr.bf16.mxu0 %v1704_v44 }
  0x35   :  { %879 = vmatprep.mubr.bf16.mxu1 %v1706_v45 }
  0x3b   :  { %719 = vmatmul.mubr.bf16.gmra.mrb[12].mxu0 %v1708_v46 }
  0x3c   :  { %880 = vmatmul.mubr.bf16.gmra.mrb[12].mxu1 %v1709_v47  ;;  %726 = vmatprep.mubr.bf16.mxu0 %v1710_v48 }
  0x3d   :  { %887 = vmatprep.mubr.bf16.mxu1 %v1712_v49 }
  0x43   :  { %727 = vmatmul.mubr.bf16.gmra.mrb[16].mxu0 %v1714_v50 }
  0x44   :  { %888 = vmatmul.mubr.bf16.gmra.mrb[16].mxu1 %v1715_v51  ;;  %734 = vmatprep.mubr.bf16.mxu0 %v1716_v52 }
  0x45   :  { %895 = vmatprep.mubr.bf16.mxu1 %v1718_v53 }
  0x4b   :  { %735 = vmatmul.mubr.bf16.gmra.mrb[20].mxu0 %v1720_v54 }
  0x4c   :  { %896 = vmatmul.mubr.bf16.gmra.mrb[20].mxu1 %v1721_v55  ;;  %742 = vmatprep.mubr.bf16.mxu0 %v1722_v56 }
  0x4d   :  { %903 = vmatprep.mubr.bf16.mxu1 %v1724_v57 }
  0x53   :  { %743 = vmatmul.mubr.bf16.gmra.mrb[24].mxu0 %v1726_v58 }
  0x54   :  { %904 = vmatmul.mubr.bf16.gmra.mrb[24].mxu1 %v1727_v59  ;;  %750 = vmatprep.mubr.bf16.mxu0 %v1728_v60 }
  0x55   :  { %911 = vmatprep.mubr.bf16.mxu1 %v1730_v61 }
  0x5b   :  { %751 = vmatmul.mubr.bf16.gmra.mrb[28].mxu0 %v1732_v62 }
  0x5c   :  { %912 = vmatmul.mubr.bf16.gmra.mrb[28].mxu1 %v1733_v63  ;;  %758 = vmatprep.mubr.bf16.mxu0 %v1734_v0 }
  0x5d   :  { %919 = vmatprep.mubr.bf16.mxu1 %v1736_v1 }
  0x63   :  { %759 = vmatmul.mubr.bf16.gmra.mrb[32].mxu0 %v1738_v2 }
  0x64   :  { %920 = vmatmul.mubr.bf16.gmra.mrb[32].mxu1 %v1739_v3  ;;  %766 = vmatprep.mubr.bf16.mxu0 %v1740_v4 }
  0x65   :  { %927 = vmatprep.mubr.bf16.mxu1 %v1742_v5 }
  0x6b   :  { %767 = vmatmul.mubr.bf16.gmra.mrb[36].mxu0 %v1744_v6 }
  0x6c   :  { %928 = vmatmul.mubr.bf16.gmra.mrb[36].mxu1 %v1745_v7  ;;  %774 = vmatprep.mubr.bf16.mxu0 %v1746_v8 }
  0x6d   :  { %935 = vmatprep.mubr.bf16.mxu1 %v1748_v9 }
  0x73   :  { %775 = vmatmul.mubr.bf16.gmra.mrb[40].mxu0 %v1750_v10 }
  0x74   :  { %936 = vmatmul.mubr.bf16.gmra.mrb[40].mxu1 %v1751_v11  ;;  %782 = vmatprep.mubr.bf16.mxu0 %v1752_v12 }
  0x75   :  { %943 = vmatprep.mubr.bf16.mxu1 %v1754_v13 }
  0x7b   :  { %783 = vmatmul.mubr.bf16.gmra.mrb[44].mxu0 %v1756_v14 }
  0x7c   :  { %944 = vmatmul.mubr.bf16.gmra.mrb[44].mxu1 %v1757_v15  ;;  %790 = vmatprep.mubr.bf16.mxu0 %v1758_v16 }
  0x7d   :  { %951 = vmatprep.mubr.bf16.mxu1 %v1760_v17 }
  0x83   :  { %791 = vmatmul.mubr.bf16.gmra.mrb[48].mxu0 %v1762_v18 }
  0x84   :  { %952 = vmatmul.mubr.bf16.gmra.mrb[48].mxu1 %v1763_v19  ;;  %798 = vmatprep.mubr.bf16.mxu0 %v1764_v20 }
  0x85   :  { %959 = vmatprep.mubr.bf16.mxu1 %v1766_v21 }
  0x8b   :  { %799 = vmatmul.mubr.bf16.gmra.mrb[52].mxu0 %v1768_v22 }
  0x8c   :  { %960 = vmatmul.mubr.bf16.gmra.mrb[52].mxu1 %v1769_v23  ;;  %806 = vmatprep.mubr.bf16.mxu0 %v1770_v24 }
  0x8d   :  { %967 = vmatprep.mubr.bf16.mxu1 %v1772_v25 }
  0x93   :  { %807 = vmatmul.mubr.bf16.gmra.mrb[56].mxu0 %v1774_v26 }
  0x94   :  { %968 = vmatmul.mubr.bf16.gmra.mrb[56].mxu1 %v1775_v27  ;;  %814 = vmatprep.mubr.bf16.mxu0 %v1776_v28 }
  0x95   :  { %975 = vmatprep.mubr.bf16.mxu1 %v1778_v29 }
  0x9b   :  { %815 = vmatmul.mubr.bf16.gmra.mrb[60].mxu0 %v1780_v30 }
  0x9c   :  { %976 = vmatmul.mubr.bf16.gmra.mrb[60].mxu1 %v1781_v31 }
  0xf6   :  { %v1446_v32 = vpop.f32.mrb[0].mxu0 }
  0xf7   :  { %v1558_v33 = vpop.f32.mrb[0].mxu1  ;;  %v1447_v35 = vpop.f32.mrb[1].mxu0 }
  0xf8   :  { %v1448_v36 = vadd.f32 %v1447_v35, %v1446_v32  ;;  %v1559_v37 = vpop.f32.mrb[1].mxu1  ;;  %v1449_v38 = vpop.f32.mrb[2].mxu0 }
  0xf9   :  { %v1560_v39 = vadd.f32 %v1559_v37, %v1558_v33  ;;  %v1561_v40 = vpop.f32.mrb[2].mxu1  ;;  %v1450_v41 = vpop.f32.mrb[3].mxu0 }
  0xfa   :  { %v697_v42 = vadd.f32 %v1448_v36, %v2093_v34  ;;  %v1451_v43 = vadd.f32 %v1450_v41, %v1449_v38  ;;  %v1562_v44 = vpop.f32.mrb[3].mxu1 }
  0xfb   :  { %v1563_v45 = vadd.f32 %v1562_v44, %v1561_v40 }
  0xfc   :  { %v858_v46 = vadd.f32 %v1560_v39, %v697_v42  ;;  %v700_v47 = vadd.f32 %v1451_v43, %v2093_v34 }
  0xfe   :  { %v861_v48 = vadd.f32 %v1563_v45, %v700_v47  ;;  %v1452_v49 = vpop.f32.mrb[4].mxu0  ;;  %v984_v52 = vmax.f32 %v858_v46, 0.0 }
  0xff   :  { %v1564_v50 = vpop.f32.mrb[4].mxu1  ;;  %v1453_v51 = vpop.f32.mrb[5].mxu0 }
 0x100   :  { %v985_v53 = vmax.f32 %v861_v48, 0.0  ;;  %v1454_v54 = vadd.f32 %v1453_v51, %v1452_v49  ;;  %v1565_v55 = vpop.f32.mrb[5].mxu1  ;;  %v1455_v56 = vpop.f32.mrb[6].mxu0 }
 0x101   :  { %v1566_v57 = vadd.f32 %v1565_v55, %v1564_v50  ;;  %v1567_v58 = vpop.f32.mrb[6].mxu1  ;;  %v1456_v59 = vpop.f32.mrb[7].mxu0 }
 0x102   :  { %v1344_v60 = vpack.c.bf16 %v985_v53, %v984_v52  ;;  %v705_v61 = vadd.f32 %v1454_v54, %v2093_v34  ;;  %v1457_v62 = vadd.f32 %v1456_v59, %v1455_v56  ;;  %v1568_v63 = vpop.f32.mrb[7].mxu1 }
 0x103   :  { %v1569_v0 = vadd.f32 %v1568_v63, %v1567_v58 }
 0x104   :  { %1345 = vst [vmem:[%s2181_s3] sm:$0xff] %v1344_v60   ;;  %v866_v1 = vadd.f32 %v1566_v57, %v705_v61  ;;  %v708_v2 = vadd.f32 %v1457_v62, %v2093_v34 }
 0x106   :  { %v869_v3 = vadd.f32 %v1569_v0, %v708_v2  ;;  %v1458_v4 = vpop.f32.mrb[8].mxu0  ;;  %v986_v7 = vmax.f32 %v866_v1, 0.0 }
 0x107   :  { %v1570_v5 = vpop.f32.mrb[8].mxu1  ;;  %v1459_v6 = vpop.f32.mrb[9].mxu0 }
 0x108   :  { %v987_v8 = vmax.f32 %v869_v3, 0.0  ;;  %v1460_v9 = vadd.f32 %v1459_v6, %v1458_v4  ;;  %v1571_v10 = vpop.f32.mrb[9].mxu1  ;;  %v1461_v11 = vpop.f32.mrb[10].mxu0 }
 0x109   :  { %v1572_v12 = vadd.f32 %v1571_v10, %v1570_v5  ;;  %v1573_v13 = vpop.f32.mrb[10].mxu1  ;;  %v1462_v14 = vpop.f32.mrb[11].mxu0 }
 0x10a   :  { %v1349_v15 = vpack.c.bf16 %v987_v8, %v986_v7  ;;  %v713_v16 = vadd.f32 %v1460_v9, %v2093_v34  ;;  %v1463_v17 = vadd.f32 %v1462_v14, %v1461_v11  ;;  %v1574_v18 = vpop.f32.mrb[11].mxu1 }
 0x10b   :  { %v1575_v19 = vadd.f32 %v1574_v18, %v1573_v13 }
 0x10c   :  { %1416 = vst [vmem:[%s2181_s3 + $0x8] sm:$0xff] %v1349_v15   ;;  %v874_v20 = vadd.f32 %v1572_v12, %v713_v16  ;;  %v716_v21 = vadd.f32 %v1463_v17, %v2093_v34 }
 0x10e   :  { %v877_v22 = vadd.f32 %v1575_v19, %v716_v21  ;;  %v1464_v23 = vpop.f32.mrb[12].mxu0  ;;  %v988_v26 = vmax.f32 %v874_v20, 0.0 }
 0x10f   :  { %v1576_v24 = vpop.f32.mrb[12].mxu1  ;;  %v1465_v25 = vpop.f32.mrb[13].mxu0 }
 0x110   :  { %v989_v27 = vmax.f32 %v877_v22, 0.0  ;;  %v1466_v28 = vadd.f32 %v1465_v25, %v1464_v23  ;;  %v1577_v29 = vpop.f32.mrb[13].mxu1  ;;  %v1467_v30 = vpop.f32.mrb[14].mxu0 }
 0x111   :  { %v1578_v31 = vadd.f32 %v1577_v29, %v1576_v24  ;;  %v1579_v32 = vpop.f32.mrb[14].mxu1  ;;  %v1468_v33 = vpop.f32.mrb[15].mxu0 }
 0x112   :  { %v1354_v35 = vpack.c.bf16 %v989_v27, %v988_v26  ;;  %v721_v36 = vadd.f32 %v1466_v28, %v2093_v34  ;;  %v1469_v37 = vadd.f32 %v1468_v33, %v1467_v30  ;;  %v1580_v38 = vpop.f32.mrb[15].mxu1 }
 0x113   :  { %v1581_v39 = vadd.f32 %v1580_v38, %v1579_v32 }
 0x114   :  { %1417 = vst [vmem:[%s2181_s3 + $0x10] sm:$0xff] %v1354_v35   ;;  %v882_v40 = vadd.f32 %v1578_v31, %v721_v36  ;;  %v724_v41 = vadd.f32 %v1469_v37, %v2093_v34 }
 0x116   :  { %v885_v42 = vadd.f32 %v1581_v39, %v724_v41  ;;  %v1470_v43 = vpop.f32.mrb[16].mxu0  ;;  %v990_v46 = vmax.f32 %v882_v40, 0.0 }
 0x117   :  { %v1582_v44 = vpop.f32.mrb[16].mxu1  ;;  %v1471_v45 = vpop.f32.mrb[17].mxu0 }
 0x118   :  { %v991_v47 = vmax.f32 %v885_v42, 0.0  ;;  %v1472_v48 = vadd.f32 %v1471_v45, %v1470_v43  ;;  %v1583_v49 = vpop.f32.mrb[17].mxu1  ;;  %v1473_v50 = vpop.f32.mrb[18].mxu0 }
 0x119   :  { %v1584_v51 = vadd.f32 %v1583_v49, %v1582_v44  ;;  %v1585_v52 = vpop.f32.mrb[18].mxu1  ;;  %v1474_v53 = vpop.f32.mrb[19].mxu0 }
 0x11a   :  { %v1359_v54 = vpack.c.bf16 %v991_v47, %v990_v46  ;;  %v729_v55 = vadd.f32 %v1472_v48, %v2093_v34  ;;  %v1475_v56 = vadd.f32 %v1474_v53, %v1473_v50  ;;  %v1586_v57 = vpop.f32.mrb[19].mxu1 }
 0x11b   :  { %v1587_v58 = vadd.f32 %v1586_v57, %v1585_v52 }
 0x11c   :  { %1418 = vst [vmem:[%s2181_s3 + $0x18] sm:$0xff] %v1359_v54   ;;  %v890_v59 = vadd.f32 %v1584_v51, %v729_v55  ;;  %v732_v60 = vadd.f32 %v1475_v56, %v2093_v34 }
 0x11e   :  { %v893_v61 = vadd.f32 %v1587_v58, %v732_v60  ;;  %v1476_v62 = vpop.f32.mrb[20].mxu0  ;;  %v992_v1 = vmax.f32 %v890_v59, 0.0 }
 0x11f   :  { %v1588_v63 = vpop.f32.mrb[20].mxu1  ;;  %v1477_v0 = vpop.f32.mrb[21].mxu0 }
 0x120   :  { %v993_v2 = vmax.f32 %v893_v61, 0.0  ;;  %v1478_v3 = vadd.f32 %v1477_v0, %v1476_v62  ;;  %v1589_v4 = vpop.f32.mrb[21].mxu1  ;;  %v1479_v5 = vpop.f32.mrb[22].mxu0 }
 0x121   :  { %v1590_v6 = vadd.f32 %v1589_v4, %v1588_v63  ;;  %v1591_v7 = vpop.f32.mrb[22].mxu1  ;;  %v1480_v8 = vpop.f32.mrb[23].mxu0 }
 0x122   :  { %v1364_v9 = vpack.c.bf16 %v993_v2, %v992_v1  ;;  %v737_v10 = vadd.f32 %v1478_v3, %v2093_v34  ;;  %v1481_v11 = vadd.f32 %v1480_v8, %v1479_v5  ;;  %v1592_v12 = vpop.f32.mrb[23].mxu1 }
 0x123   :  { %v1593_v13 = vadd.f32 %v1592_v12, %v1591_v7 }
 0x124   :  { %1419 = vst [vmem:[%s2181_s3 + $0x20] sm:$0xff] %v1364_v9   ;;  %v898_v14 = vadd.f32 %v1590_v6, %v737_v10  ;;  %v740_v15 = vadd.f32 %v1481_v11, %v2093_v34 }
 0x126   :  { %v901_v16 = vadd.f32 %v1593_v13, %v740_v15  ;;  %v1482_v17 = vpop.f32.mrb[24].mxu0  ;;  %v994_v20 = vmax.f32 %v898_v14, 0.0 }
 0x127   :  { %v1594_v18 = vpop.f32.mrb[24].mxu1  ;;  %v1483_v19 = vpop.f32.mrb[25].mxu0 }
 0x128   :  { %v995_v21 = vmax.f32 %v901_v16, 0.0  ;;  %v1484_v22 = vadd.f32 %v1483_v19, %v1482_v17  ;;  %v1595_v23 = vpop.f32.mrb[25].mxu1  ;;  %v1485_v24 = vpop.f32.mrb[26].mxu0 }
 0x129   :  { %v1596_v25 = vadd.f32 %v1595_v23, %v1594_v18  ;;  %v1597_v26 = vpop.f32.mrb[26].mxu1  ;;  %v1486_v27 = vpop.f32.mrb[27].mxu0 }
 0x12a   :  { %v1369_v28 = vpack.c.bf16 %v995_v21, %v994_v20  ;;  %v745_v29 = vadd.f32 %v1484_v22, %v2093_v34  ;;  %v1487_v30 = vadd.f32 %v1486_v27, %v1485_v24  ;;  %v1598_v31 = vpop.f32.mrb[27].mxu1 }
 0x12b   :  { %v1599_v32 = vadd.f32 %v1598_v31, %v1597_v26 }
 0x12c   :  { %1420 = vst [vmem:[%s2181_s3 + $0x28] sm:$0xff] %v1369_v28   ;;  %v906_v33 = vadd.f32 %v1596_v25, %v745_v29  ;;  %v748_v35 = vadd.f32 %v1487_v30, %v2093_v34 }
 0x12e   :  { %v909_v36 = vadd.f32 %v1599_v32, %v748_v35  ;;  %v1488_v37 = vpop.f32.mrb[28].mxu0  ;;  %v996_v40 = vmax.f32 %v906_v33, 0.0 }
 0x12f   :  { %v1600_v38 = vpop.f32.mrb[28].mxu1  ;;  %v1489_v39 = vpop.f32.mrb[29].mxu0 }
 0x130   :  { %v997_v41 = vmax.f32 %v909_v36, 0.0  ;;  %v1490_v42 = vadd.f32 %v1489_v39, %v1488_v37  ;;  %v1601_v43 = vpop.f32.mrb[29].mxu1  ;;  %v1491_v44 = vpop.f32.mrb[30].mxu0 }
 0x131   :  { %v1602_v45 = vadd.f32 %v1601_v43, %v1600_v38  ;;  %v1603_v46 = vpop.f32.mrb[30].mxu1  ;;  %v1492_v47 = vpop.f32.mrb[31].mxu0 }
 0x132   :  { %v1374_v48 = vpack.c.bf16 %v997_v41, %v996_v40  ;;  %v753_v49 = vadd.f32 %v1490_v42, %v2093_v34  ;;  %v1493_v50 = vadd.f32 %v1492_v47, %v1491_v44  ;;  %v1604_v51 = vpop.f32.mrb[31].mxu1 }
 0x133   :  { %v1605_v52 = vadd.f32 %v1604_v51, %v1603_v46 }
 0x134   :  { %1421 = vst [vmem:[%s2181_s3 + $0x30] sm:$0xff] %v1374_v48   ;;  %v914_v53 = vadd.f32 %v1602_v45, %v753_v49  ;;  %v756_v54 = vadd.f32 %v1493_v50, %v2093_v34 }
 0x136   :  { %v917_v55 = vadd.f32 %v1605_v52, %v756_v54  ;;  %v1494_v56 = vpop.f32.mrb[32].mxu0  ;;  %v998_v59 = vmax.f32 %v914_v53, 0.0 }
 0x137   :  { %v1606_v57 = vpop.f32.mrb[32].mxu1  ;;  %v1495_v58 = vpop.f32.mrb[33].mxu0 }
 0x138   :  { %v999_v60 = vmax.f32 %v917_v55, 0.0  ;;  %v1496_v61 = vadd.f32 %v1495_v58, %v1494_v56  ;;  %v1607_v62 = vpop.f32.mrb[33].mxu1  ;;  %v1497_v63 = vpop.f32.mrb[34].mxu0 }
 0x139   :  { %v1608_v0 = vadd.f32 %v1607_v62, %v1606_v57  ;;  %v1609_v1 = vpop.f32.mrb[34].mxu1  ;;  %v1498_v2 = vpop.f32.mrb[35].mxu0 }
 0x13a   :  { %v1379_v3 = vpack.c.bf16 %v999_v60, %v998_v59  ;;  %v761_v4 = vadd.f32 %v1496_v61, %v2093_v34  ;;  %v1499_v5 = vadd.f32 %v1498_v2, %v1497_v63  ;;  %v1610_v6 = vpop.f32.mrb[35].mxu1 }
 0x13b   :  { %v1611_v7 = vadd.f32 %v1610_v6, %v1609_v1 }
 0x13c   :  { %1422 = vst [vmem:[%s2181_s3 + $0x38] sm:$0xff] %v1379_v3   ;;  %v922_v8 = vadd.f32 %v1608_v0, %v761_v4  ;;  %v764_v9 = vadd.f32 %v1499_v5, %v2093_v34 }
 0x13e   :  { %v925_v10 = vadd.f32 %v1611_v7, %v764_v9  ;;  %v1500_v11 = vpop.f32.mrb[36].mxu0  ;;  %v1000_v14 = vmax.f32 %v922_v8, 0.0 }
 0x13f   :  { %v1612_v12 = vpop.f32.mrb[36].mxu1  ;;  %v1501_v13 = vpop.f32.mrb[37].mxu0 }
 0x140   :  { %v1001_v15 = vmax.f32 %v925_v10, 0.0  ;;  %v1502_v16 = vadd.f32 %v1501_v13, %v1500_v11  ;;  %v1613_v17 = vpop.f32.mrb[37].mxu1  ;;  %v1503_v18 = vpop.f32.mrb[38].mxu0 }
 0x141   :  { %v1614_v19 = vadd.f32 %v1613_v17, %v1612_v12  ;;  %v1615_v20 = vpop.f32.mrb[38].mxu1  ;;  %v1504_v21 = vpop.f32.mrb[39].mxu0 }
 0x142   :  { %v1384_v22 = vpack.c.bf16 %v1001_v15, %v1000_v14  ;;  %v769_v23 = vadd.f32 %v1502_v16, %v2093_v34  ;;  %v1505_v24 = vadd.f32 %v1504_v21, %v1503_v18  ;;  %v1616_v25 = vpop.f32.mrb[39].mxu1 }
 0x143   :  { %v1617_v26 = vadd.f32 %v1616_v25, %v1615_v20 }
 0x144   :  { %1423 = vst [vmem:[%s2181_s3 + $0x40] sm:$0xff] %v1384_v22   ;;  %v930_v27 = vadd.f32 %v1614_v19, %v769_v23  ;;  %v772_v28 = vadd.f32 %v1505_v24, %v2093_v34 }
 0x146   :  { %v933_v29 = vadd.f32 %v1617_v26, %v772_v28  ;;  %v1506_v30 = vpop.f32.mrb[40].mxu0  ;;  %v1002_v33 = vmax.f32 %v930_v27, 0.0 }
 0x147   :  { %v1618_v31 = vpop.f32.mrb[40].mxu1  ;;  %v1507_v32 = vpop.f32.mrb[41].mxu0 }
 0x148   :  { %v1003_v35 = vmax.f32 %v933_v29, 0.0  ;;  %v1508_v36 = vadd.f32 %v1507_v32, %v1506_v30  ;;  %v1619_v37 = vpop.f32.mrb[41].mxu1  ;;  %v1509_v38 = vpop.f32.mrb[42].mxu0 }
 0x149   :  { %v1620_v39 = vadd.f32 %v1619_v37, %v1618_v31  ;;  %v1621_v40 = vpop.f32.mrb[42].mxu1  ;;  %v1510_v41 = vpop.f32.mrb[43].mxu0 }
 0x14a   :  { %v1389_v42 = vpack.c.bf16 %v1003_v35, %v1002_v33  ;;  %v777_v43 = vadd.f32 %v1508_v36, %v2093_v34  ;;  %v1511_v44 = vadd.f32 %v1510_v41, %v1509_v38  ;;  %v1622_v45 = vpop.f32.mrb[43].mxu1 }
 0x14b   :  { %v1623_v46 = vadd.f32 %v1622_v45, %v1621_v40 }
 0x14c   :  { %1424 = vst [vmem:[%s2181_s3 + $0x48] sm:$0xff] %v1389_v42   ;;  %v938_v47 = vadd.f32 %v1620_v39, %v777_v43  ;;  %v780_v48 = vadd.f32 %v1511_v44, %v2093_v34 }
 0x14e   :  { %v941_v49 = vadd.f32 %v1623_v46, %v780_v48  ;;  %v1512_v50 = vpop.f32.mrb[44].mxu0  ;;  %v1004_v53 = vmax.f32 %v938_v47, 0.0 }
 0x14f   :  { %v1624_v51 = vpop.f32.mrb[44].mxu1  ;;  %v1513_v52 = vpop.f32.mrb[45].mxu0 }
 0x150   :  { %v1005_v54 = vmax.f32 %v941_v49, 0.0  ;;  %v1514_v55 = vadd.f32 %v1513_v52, %v1512_v50  ;;  %v1625_v56 = vpop.f32.mrb[45].mxu1  ;;  %v1515_v57 = vpop.f32.mrb[46].mxu0 }
 0x151   :  { %v1626_v58 = vadd.f32 %v1625_v56, %v1624_v51  ;;  %v1627_v59 = vpop.f32.mrb[46].mxu1  ;;  %v1516_v60 = vpop.f32.mrb[47].mxu0 }
 0x152   :  { %v1394_v61 = vpack.c.bf16 %v1005_v54, %v1004_v53  ;;  %v785_v62 = vadd.f32 %v1514_v55, %v2093_v34  ;;  %v1517_v63 = vadd.f32 %v1516_v60, %v1515_v57  ;;  %v1628_v0 = vpop.f32.mrb[47].mxu1 }
 0x153   :  { %v1629_v1 = vadd.f32 %v1628_v0, %v1627_v59 }
 0x154   :  { %1425 = vst [vmem:[%s2181_s3 + $0x50] sm:$0xff] %v1394_v61   ;;  %v946_v2 = vadd.f32 %v1626_v58, %v785_v62  ;;  %v788_v3 = vadd.f32 %v1517_v63, %v2093_v34 }
 0x156   :  { %v949_v4 = vadd.f32 %v1629_v1, %v788_v3  ;;  %v1518_v5 = vpop.f32.mrb[48].mxu0  ;;  %v1006_v8 = vmax.f32 %v946_v2, 0.0 }
 0x157   :  { %v1630_v6 = vpop.f32.mrb[48].mxu1  ;;  %v1519_v7 = vpop.f32.mrb[49].mxu0 }
 0x158   :  { %v1007_v9 = vmax.f32 %v949_v4, 0.0  ;;  %v1520_v10 = vadd.f32 %v1519_v7, %v1518_v5  ;;  %v1631_v11 = vpop.f32.mrb[49].mxu1  ;;  %v1521_v12 = vpop.f32.mrb[50].mxu0 }
 0x159   :  { %v1632_v13 = vadd.f32 %v1631_v11, %v1630_v6  ;;  %v1633_v14 = vpop.f32.mrb[50].mxu1  ;;  %v1522_v15 = vpop.f32.mrb[51].mxu0 }
 0x15a   :  { %v1399_v16 = vpack.c.bf16 %v1007_v9, %v1006_v8  ;;  %v793_v17 = vadd.f32 %v1520_v10, %v2093_v34  ;;  %v1523_v18 = vadd.f32 %v1522_v15, %v1521_v12  ;;  %v1634_v19 = vpop.f32.mrb[51].mxu1 }
 0x15b   :  { %v1635_v20 = vadd.f32 %v1634_v19, %v1633_v14 }
 0x15c   :  { %1426 = vst [vmem:[%s2181_s3 + $0x58] sm:$0xff] %v1399_v16   ;;  %v954_v21 = vadd.f32 %v1632_v13, %v793_v17  ;;  %v796_v22 = vadd.f32 %v1523_v18, %v2093_v34 }
 0x15e   :  { %v957_v23 = vadd.f32 %v1635_v20, %v796_v22  ;;  %v1524_v24 = vpop.f32.mrb[52].mxu0  ;;  %v1008_v27 = vmax.f32 %v954_v21, 0.0 }
 0x15f   :  { %v1636_v25 = vpop.f32.mrb[52].mxu1  ;;  %v1525_v26 = vpop.f32.mrb[53].mxu0 }
 0x160   :  { %v1009_v28 = vmax.f32 %v957_v23, 0.0  ;;  %v1526_v29 = vadd.f32 %v1525_v26, %v1524_v24  ;;  %v1637_v30 = vpop.f32.mrb[53].mxu1  ;;  %v1527_v31 = vpop.f32.mrb[54].mxu0 }
 0x161   :  { %v1638_v32 = vadd.f32 %v1637_v30, %v1636_v25  ;;  %v1639_v33 = vpop.f32.mrb[54].mxu1  ;;  %v1528_v35 = vpop.f32.mrb[55].mxu0 }
 0x162   :  { %v1404_v36 = vpack.c.bf16 %v1009_v28, %v1008_v27  ;;  %v801_v37 = vadd.f32 %v1526_v29, %v2093_v34  ;;  %v1529_v38 = vadd.f32 %v1528_v35, %v1527_v31  ;;  %v1640_v39 = vpop.f32.mrb[55].mxu1 }
 0x163   :  { %v1641_v40 = vadd.f32 %v1640_v39, %v1639_v33 }
 0x164   :  { %1427 = vst [vmem:[%s2181_s3 + $0x60] sm:$0xff] %v1404_v36   ;;  %v962_v41 = vadd.f32 %v1638_v32, %v801_v37  ;;  %v804_v42 = vadd.f32 %v1529_v38, %v2093_v34 }
 0x166   :  { %v965_v43 = vadd.f32 %v1641_v40, %v804_v42  ;;  %v1530_v44 = vpop.f32.mrb[56].mxu0  ;;  %v1010_v47 = vmax.f32 %v962_v41, 0.0 }
 0x167   :  { %v1642_v45 = vpop.f32.mrb[56].mxu1  ;;  %v1531_v46 = vpop.f32.mrb[57].mxu0 }
 0x168   :  { %v1011_v48 = vmax.f32 %v965_v43, 0.0  ;;  %v1532_v49 = vadd.f32 %v1531_v46, %v1530_v44  ;;  %v1643_v50 = vpop.f32.mrb[57].mxu1  ;;  %v1533_v51 = vpop.f32.mrb[58].mxu0 }
 0x169   :  { %v1644_v52 = vadd.f32 %v1643_v50, %v1642_v45  ;;  %v1645_v53 = vpop.f32.mrb[58].mxu1  ;;  %v1534_v54 = vpop.f32.mrb[59].mxu0 }
 0x16a   :  { %v1409_v55 = vpack.c.bf16 %v1011_v48, %v1010_v47  ;;  %v809_v56 = vadd.f32 %v1532_v49, %v2093_v34  ;;  %v1535_v57 = vadd.f32 %v1534_v54, %v1533_v51  ;;  %v1646_v58 = vpop.f32.mrb[59].mxu1 }
 0x16b   :  { %v1647_v59 = vadd.f32 %v1646_v58, %v1645_v53 }
 0x16c   :  { %1428 = vst [vmem:[%s2181_s3 + $0x68] sm:$0xff] %v1409_v55   ;;  %v970_v60 = vadd.f32 %v1644_v52, %v809_v56  ;;  %v812_v61 = vadd.f32 %v1535_v57, %v2093_v34 }
 0x16e   :  { %v973_v62 = vadd.f32 %v1647_v59, %v812_v61  ;;  %v1536_v63 = vpop.f32.mrb[60].mxu0  ;;  %v1012_v2 = vmax.f32 %v970_v60, 0.0 }
 0x16f   :  { %v1648_v0 = vpop.f32.mrb[60].mxu1  ;;  %v1537_v1 = vpop.f32.mrb[61].mxu0 }
 0x170   :  { %v1013_v3 = vmax.f32 %v973_v62, 0.0  ;;  %v1538_v4 = vadd.f32 %v1537_v1, %v1536_v63  ;;  %v1649_v5 = vpop.f32.mrb[61].mxu1  ;;  %v1539_v6 = vpop.f32.mrb[62].mxu0 }
 0x171   :  { %v1650_v7 = vadd.f32 %v1649_v5, %v1648_v0  ;;  %v1651_v8 = vpop.f32.mrb[62].mxu1  ;;  %v1540_v9 = vpop.f32.mrb[63].mxu0 }
 0x172   :  { %v1414_v10 = vpack.c.bf16 %v1013_v3, %v1012_v2  ;;  %v817_v11 = vadd.f32 %v1538_v4, %v2093_v34  ;;  %v1541_v12 = vadd.f32 %v1540_v9, %v1539_v6  ;;  %v1652_v13 = vpop.f32.mrb[63].mxu1 }
 0x173   :  { %v1653_v14 = vadd.f32 %v1652_v13, %v1651_v8 }
 0x174   :  { %1429 = vst [vmem:[%s2181_s3 + $0x70] sm:$0xff] %v1414_v10   ;;  %v978_v15 = vadd.f32 %v1650_v7, %v817_v11  ;;  %v820_v16 = vadd.f32 %v1541_v12, %v2093_v34 }
 0x176   :  { %v1014_v17 = vmax.f32 %v978_v15, 0.0  ;;  %v981_v18 = vadd.f32 %v1653_v14, %v820_v16 }
 0x178   :  { %v1339_v19 = vpack.c.bf16 %v1014_v17, %v1014_v17  ;;  %v1015_v20 = vmax.f32 %v981_v18, 0.0 }
 0x17a   :  { %1174 = vst [vmem:[%s2181_s3 + $0x78] sm:$0xf] %v1339_v19  ;;  %v1340_v21 = vpack.c.bf16 %v1015_v20, %v1015_v20 }
 0x17c   :  { %1175 = vst [vmem:[%s2181_s3 + $0x7c] sm:$0x3] %v1340_v21 }

// kernel: encoder_forward.6
= control target key start
LH: loop header
LB: loop body
LE: loop exit
PB: predicated region body
PF: predicated region fallthrough
CT: control target
= control target key end

     0   :  { %s1240_s1 = inlined_call_operand.vmem [shape: bf16[512,128], index: 1, kind: input, shape index: {}]   ;;  %s1241_s0 = inlined_call_operand.vmem [shape: bf16[100,512], index: 0, kind: input, shape index: {}]   ;;  %s1242_s2 = inlined_call_operand.vmem [shape: f32[1,128], index: 2, kind: input, shape index: {}]   ;;  %s1243_s3 = inlined_call_operand.vmem [shape: bf16[100,128], index: 3, kind: output, shape index: {}]  }
   0x1   :  { %v935_v0 = vld [vmem:[%s1240_s1 + $0x40] sm:$0xff]   ;;  %v939_v4 = vld [vmem:[%s1240_s1 + $0x48] sm:$0xff]   ;;  %v943_v8 = vld [vmem:[%s1240_s1 + $0x50] sm:$0xff]  }
   0x2   :  { %v936_v1 = vld [vmem:[%s1240_s1 + $0xc0] sm:$0xff]   ;;  %819 = vmatprep.subr.bf16.mxu0 %v935_v0  ;;  %v940_v5 = vld [vmem:[%s1240_s1 + $0xc8] sm:$0xff]   ;;  %v944_v9 = vld [vmem:[%s1240_s1 + $0xd0] sm:$0xff]  }
   0x3   :  { %v937_v2 = vld [vmem:[%s1240_s1] sm:$0xff]   ;;  %877 = vmatprep.subr.bf16.mxu1 %v936_v1  ;;  %v941_v6 = vld [vmem:[%s1240_s1 + $0x8] sm:$0xff]   ;;  %v945_v10 = vld [vmem:[%s1240_s1 + $0x10] sm:$0xff]  }
   0x4   :  { %v938_v3 = vld [vmem:[%s1240_s1 + $0x80] sm:$0xff]   ;;  %820 = vmatpush3.bf16.msra.mxu0 %v937_v2  ;;  %v942_v7 = vld [vmem:[%s1240_s1 + $0x88] sm:$0xff]   ;;  %v946_v11 = vld [vmem:[%s1240_s1 + $0x90] sm:$0xff]  }
   0x5   :  { %878 = vmatpush3.bf16.msra.mxu1 %v938_v3  ;;  %821 = vmatprep.subr.bf16.mxu0 %v939_v4  ;;  %v947_v12 = vld [vmem:[%s1240_s1 + $0x58] sm:$0xff]   ;;  %v951_v16 = vld [vmem:[%s1240_s1 + $0x60] sm:$0xff]   ;;  %v955_v20 = vld [vmem:[%s1240_s1 + $0x68] sm:$0xff]  }
   0x6   :  { %879 = vmatprep.subr.bf16.mxu1 %v940_v5  ;;  %v948_v13 = vld [vmem:[%s1240_s1 + $0xd8] sm:$0xff]   ;;  %v952_v17 = vld [vmem:[%s1240_s1 + $0xe0] sm:$0xff]   ;;  %v956_v21 = vld [vmem:[%s1240_s1 + $0xe8] sm:$0xff]  }
   0x7   :  { %v949_v14 = vld [vmem:[%s1240_s1 + $0x18] sm:$0xff]   ;;  %v953_v18 = vld [vmem:[%s1240_s1 + $0x20] sm:$0xff]   ;;  %v957_v22 = vld [vmem:[%s1240_s1 + $0x28] sm:$0xff]  }
   0x8   :  { %822 = vmatpush3.bf16.msra.mxu0 %v941_v6  ;;  %v950_v15 = vld [vmem:[%s1240_s1 + $0x98] sm:$0xff]   ;;  %v954_v19 = vld [vmem:[%s1240_s1 + $0xa0] sm:$0xff]   ;;  %v958_v23 = vld [vmem:[%s1240_s1 + $0xa8] sm:$0xff]  }
   0x9   :  { %880 = vmatpush3.bf16.msra.mxu1 %v942_v7  ;;  %823 = vmatprep.subr.bf16.mxu0 %v943_v8  ;;  %v959_v24 = vld [vmem:[%s1240_s1 + $0x70] sm:$0xff]   ;;  %v963_v28 = vld [vmem:[%s1240_s1 + $0x78] sm:$0xff]   ;;  %v39_v54 = vld [vmem:[%s1241_s0 + $0xc0] sm:$0x33] }
   0xa   :  { %881 = vmatprep.subr.bf16.mxu1 %v944_v9  ;;  %v960_v25 = vld [vmem:[%s1240_s1 + $0xf0] sm:$0xff]   ;;  %v964_v29 = vld [vmem:[%s1240_s1 + $0xf8] sm:$0xff]   ;;  %v40_v55 = vld [vmem:[%s1241_s0 + $0xc8] sm:$0x33]  ;;  %v723_v58 = vcombine.high %v39_v54, %v39_v54  ;;  %v722_v60 = vcombine.low %v39_v54, %v39_v54 }
   0xb   :  { %v961_v26 = vld [vmem:[%s1240_s1 + $0x30] sm:$0xff]   ;;  %v965_v30 = vld [vmem:[%s1240_s1 + $0x38] sm:$0xff]   ;;  %v725_v59 = vcombine.high %v40_v55, %v40_v55  ;;  %v724_v61 = vcombine.low %v40_v55, %v40_v55  ;;  %v1204_v0 = vld [vmem:[%s1242_s2] ss:$0 sm:$0xff] }
   0xc   :  { %824 = vmatpush3.bf16.msra.mxu0 %v945_v10  ;;  %v962_v27 = vld [vmem:[%s1240_s1 + $0xb0] sm:$0xff]   ;;  %v966_v31 = vld [vmem:[%s1240_s1 + $0xb8] sm:$0xff]  }
   0xd   :  { %882 = vmatpush3.bf16.msra.mxu1 %v946_v11  ;;  %825 = vmatprep.subr.bf16.mxu0 %v947_v12  ;;  %v967_v32 = vld [vmem:[%s1241_s0] ss:$16 sps:$4 sm:$0xff]   ;;  %v969_v33 = vld [vmem:[%s1241_s0 + $0x4] ss:$16 sps:$4 sm:$0xff]   ;;  %v970_v34 = vld [vmem:[%s1241_s0 + $0x8] ss:$16 sps:$4 sm:$0xff]  }
   0xe   :  { %883 = vmatprep.subr.bf16.mxu1 %v948_v13  ;;  %v972_v35 = vld [vmem:[%s1241_s0 + $0xc] ss:$16 sps:$4 sm:$0xff]   ;;  %470 = vmatprep.mubr.bf16.mxu0 %v969_v33  ;;  %v973_v36 = vld [vmem:[%s1241_s0 + $0x24] ss:$16 sps:$4 sm:$0xff]   ;;  %v977_v38 = vld [vmem:[%s1241_s0 + $0x20] ss:$16 sps:$4 sm:$0xff]  }
   0xf   :  { %558 = vmatprep.mubr.bf16.mxu1 %v972_v35  ;;  %v975_v37 = vld [vmem:[%s1241_s0 + $0x2c] ss:$16 sps:$4 sm:$0xff]   ;;  %v978_v39 = vld [vmem:[%s1241_s0 + $0x28] ss:$16 sps:$4 sm:$0xff]   ;;  %v979_v40 = vld [vmem:[%s1241_s0 + $0x44] ss:$16 sps:$4 sm:$0xff]  }
  0x10   :  { %826 = vmatpush3.bf16.msra.mxu0 %v949_v14  ;;  %v981_v41 = vld [vmem:[%s1241_s0 + $0x4c] ss:$16 sps:$4 sm:$0xff]   ;;  %v983_v42 = vld [vmem:[%s1241_s0 + $0x40] ss:$16 sps:$4 sm:$0xff]   ;;  %v984_v43 = vld [vmem:[%s1241_s0 + $0x48] ss:$16 sps:$4 sm:$0xff]  }
  0x11   :  { %884 = vmatpush3.bf16.msra.mxu1 %v950_v15  ;;  %827 = vmatprep.subr.bf16.mxu0 %v951_v16  ;;  %v985_v44 = vld [vmem:[%s1241_s0 + $0x64] ss:$16 sps:$4 sm:$0xff]   ;;  %v987_v45 = vld [vmem:[%s1241_s0 + $0x6c] ss:$16 sps:$4 sm:$0xff]   ;;  %v989_v46 = vld [vmem:[%s1241_s0 + $0x60] ss:$16 sps:$4 sm:$0xff]  }
  0x12   :  { %885 = vmatprep.subr.bf16.mxu1 %v952_v17  ;;  %v990_v47 = vld [vmem:[%s1241_s0 + $0x68] ss:$16 sps:$4 sm:$0xff]   ;;  %v991_v48 = vld [vmem:[%s1241_s0 + $0x84] ss:$16 sps:$4 sm:$0xff]   ;;  %v993_v49 = vld [vmem:[%s1241_s0 + $0x8c] ss:$16 sps:$4 sm:$0xff]  }
  0x13   :  { %v995_v50 = vld [vmem:[%s1241_s0 + $0x80] ss:$16 sps:$4 sm:$0xff]   ;;  %v996_v51 = vld [vmem:[%s1241_s0 + $0x88] ss:$16 sps:$4 sm:$0xff]   ;;  %v997_v52 = vld [vmem:[%s1241_s0 + $0xa4] ss:$16 sps:$4 sm:$0xff]  }
  0x14   :  { %828 = vmatpush3.bf16.msra.mxu0 %v953_v18  ;;  %v999_v53 = vld [vmem:[%s1241_s0 + $0xac] ss:$16 sps:$4 sm:$0xff]   ;;  %v1001_v56 = vld [vmem:[%s1241_s0 + $0xa0] ss:$16 sps:$4 sm:$0xff]   ;;  %v1002_v57 = vld [vmem:[%s1241_s0 + $0xa8] ss:$16 sps:$4 sm:$0xff]  }
  0x15   :  { %886 = vmatpush3.bf16.msra.mxu1 %v954_v19  ;;  %829 = vmatprep.subr.bf16.mxu0 %v955_v20 }
  0x16   :  { %887 = vmatprep.subr.bf16.mxu1 %v956_v21 }
  0x18   :  { %830 = vmatpush3.bf16.msra.mxu0 %v957_v22 }
  0x19   :  { %888 = vmatpush3.bf16.msra.mxu1 %v958_v23  ;;  %831 = vmatprep.subr.bf16.mxu0 %v959_v24 }
  0x1a   :  { %889 = vmatprep.subr.bf16.mxu1 %v960_v25 }
  0x1c   :  { %832 = vmatpush3.bf16.msra.mxu0 %v961_v26 }
  0x1d   :  { %890 = vmatpush3.bf16.msra.mxu1 %v962_v27  ;;  %833 = vmatprep.subr.bf16.mxu0 %v963_v28 }
  0x1e   :  { %891 = vmatprep.subr.bf16.mxu1 %v964_v29 }
  0x20   :  { %834 = vmatpush3.bf16.msra.mxu0 %v965_v30 }
  0x21   :  { %892 = vmatpush3.bf16.msra.mxu1 %v966_v31 }
  0x23   :  { %471 = vmatmul.mubr.bf16.vlgmr.msra.gmra.mrb[0].mxu0 %v967_v32 }
  0x24   :  { %559 = vmatmul.mubr.bf16.vlgmr.msra.gmra.mrb[0].mxu1 %v970_v34  ;;  %478 = vmatprep.mubr.bf16.mxu0 %v973_v36 }
  0x25   :  { %566 = vmatprep.mubr.bf16.mxu1 %v975_v37 }
  0x2b   :  { %479 = vmatmul.mubr.bf16.gmra.mrb[4].mxu0 %v977_v38 }
  0x2c   :  { %567 = vmatmul.mubr.bf16.gmra.mrb[4].mxu1 %v978_v39  ;;  %486 = vmatprep.mubr.bf16.mxu0 %v979_v40 }
  0x2d   :  { %574 = vmatprep.mubr.bf16.mxu1 %v981_v41 }
  0x33   :  { %487 = vmatmul.mubr.bf16.gmra.mrb[8].mxu0 %v983_v42 }
  0x34   :  { %575 = vmatmul.mubr.bf16.gmra.mrb[8].mxu1 %v984_v43  ;;  %494 = vmatprep.mubr.bf16.mxu0 %v985_v44 }
  0x35   :  { %582 = vmatprep.mubr.bf16.mxu1 %v987_v45 }
  0x3b   :  { %495 = vmatmul.mubr.bf16.gmra.mrb[12].mxu0 %v989_v46 }
  0x3c   :  { %583 = vmatmul.mubr.bf16.gmra.mrb[12].mxu1 %v990_v47  ;;  %502 = vmatprep.mubr.bf16.mxu0 %v991_v48 }
  0x3d   :  { %590 = vmatprep.mubr.bf16.mxu1 %v993_v49 }
  0x43   :  { %503 = vmatmul.mubr.bf16.gmra.mrb[16].mxu0 %v995_v50 }
  0x44   :  { %591 = vmatmul.mubr.bf16.gmra.mrb[16].mxu1 %v996_v51  ;;  %510 = vmatprep.mubr.bf16.mxu0 %v997_v52 }
  0x45   :  { %598 = vmatprep.mubr.bf16.mxu1 %v999_v53 }
  0x4b   :  { %511 = vmatmul.mubr.bf16.gmra.mrb[20].mxu0 %v1001_v56 }
  0x4c   :  { %599 = vmatmul.mubr.bf16.gmra.mrb[20].mxu1 %v1002_v57  ;;  %518 = vmatprep.mubr.bf16.mxu0 %v723_v58 }
  0x4d   :  { %606 = vmatprep.mubr.bf16.mxu1 %v725_v59 }
  0x53   :  { %519 = vmatmul.mubr.bf16.gmra.mrb[24].mxu0 %v722_v60 }
  0x54   :  { %607 = vmatmul.mubr.bf16.gmra.mrb[24].mxu1 %v724_v61 }
  0xf6   :  { %v835_v62 = vpop.f32.mrb[0].mxu0 }
  0xf7   :  { %v893_v63 = vpop.f32.mrb[0].mxu1  ;;  %v836_v1 = vpop.f32.mrb[1].mxu0 }
  0xf8   :  { %v837_v2 = vadd.f32 %v836_v1, %v835_v62  ;;  %v894_v3 = vpop.f32.mrb[1].mxu1  ;;  %v838_v4 = vpop.f32.mrb[2].mxu0 }
  0xf9   :  { %v895_v5 = vadd.f32 %v894_v3, %v893_v63  ;;  %v896_v6 = vpop.f32.mrb[2].mxu1  ;;  %v839_v7 = vpop.f32.mrb[3].mxu0 }
  0xfa   :  { %v473_v8 = vadd.f32 %v837_v2, %v1204_v0  ;;  %v840_v9 = vadd.f32 %v839_v7, %v838_v4  ;;  %v897_v10 = vpop.f32.mrb[3].mxu1 }
  0xfb   :  { %v898_v11 = vadd.f32 %v897_v10, %v896_v6 }
  0xfc   :  { %v561_v12 = vadd.f32 %v895_v5, %v473_v8  ;;  %v476_v13 = vadd.f32 %v840_v9, %v1204_v0 }
  0xfe   :  { %v564_v14 = vadd.f32 %v898_v11, %v476_v13  ;;  %v841_v15 = vpop.f32.mrb[4].mxu0  ;;  %v614_v18 = vmax.f32 %v561_v12, 0.0 }
  0xff   :  { %v899_v16 = vpop.f32.mrb[4].mxu1  ;;  %v842_v17 = vpop.f32.mrb[5].mxu0 }
 0x100   :  { %v615_v19 = vmax.f32 %v564_v14, 0.0  ;;  %v843_v20 = vadd.f32 %v842_v17, %v841_v15  ;;  %v900_v21 = vpop.f32.mrb[5].mxu1  ;;  %v844_v22 = vpop.f32.mrb[6].mxu0 }
 0x101   :  { %v901_v23 = vadd.f32 %v900_v21, %v899_v16  ;;  %v902_v24 = vpop.f32.mrb[6].mxu1  ;;  %v845_v25 = vpop.f32.mrb[7].mxu0 }
 0x102   :  { %v787_v26 = vpack.c.bf16 %v615_v19, %v614_v18  ;;  %v481_v27 = vadd.f32 %v843_v20, %v1204_v0  ;;  %v846_v28 = vadd.f32 %v845_v25, %v844_v22  ;;  %v903_v29 = vpop.f32.mrb[7].mxu1 }
 0x103   :  { %v904_v30 = vadd.f32 %v903_v29, %v902_v24 }
 0x104   :  { %788 = vst [vmem:[%s1243_s3] sm:$0xff] %v787_v26   ;;  %v569_v31 = vadd.f32 %v901_v23, %v481_v27  ;;  %v484_v32 = vadd.f32 %v846_v28, %v1204_v0 }
 0x106   :  { %v572_v33 = vadd.f32 %v904_v30, %v484_v32  ;;  %v847_v34 = vpop.f32.mrb[8].mxu0  ;;  %v616_v37 = vmax.f32 %v569_v31, 0.0 }
 0x107   :  { %v905_v35 = vpop.f32.mrb[8].mxu1  ;;  %v848_v36 = vpop.f32.mrb[9].mxu0 }
 0x108   :  { %v617_v38 = vmax.f32 %v572_v33, 0.0  ;;  %v849_v39 = vadd.f32 %v848_v36, %v847_v34  ;;  %v906_v40 = vpop.f32.mrb[9].mxu1  ;;  %v850_v41 = vpop.f32.mrb[10].mxu0 }
 0x109   :  { %v907_v42 = vadd.f32 %v906_v40, %v905_v35  ;;  %v908_v43 = vpop.f32.mrb[10].mxu1  ;;  %v851_v44 = vpop.f32.mrb[11].mxu0 }
 0x10a   :  { %v792_v45 = vpack.c.bf16 %v617_v38, %v616_v37  ;;  %v489_v46 = vadd.f32 %v849_v39, %v1204_v0  ;;  %v852_v47 = vadd.f32 %v851_v44, %v850_v41  ;;  %v909_v48 = vpop.f32.mrb[11].mxu1 }
 0x10b   :  { %v910_v49 = vadd.f32 %v909_v48, %v908_v43 }
 0x10c   :  { %814 = vst [vmem:[%s1243_s3 + $0x8] sm:$0xff] %v792_v45   ;;  %v577_v50 = vadd.f32 %v907_v42, %v489_v46  ;;  %v492_v51 = vadd.f32 %v852_v47, %v1204_v0 }
 0x10e   :  { %v580_v52 = vadd.f32 %v910_v49, %v492_v51  ;;  %v853_v53 = vpop.f32.mrb[12].mxu0  ;;  %v618_v56 = vmax.f32 %v577_v50, 0.0 }
 0x10f   :  { %v911_v54 = vpop.f32.mrb[12].mxu1  ;;  %v854_v55 = vpop.f32.mrb[13].mxu0 }
 0x110   :  { %v619_v57 = vmax.f32 %v580_v52, 0.0  ;;  %v855_v58 = vadd.f32 %v854_v55, %v853_v53  ;;  %v912_v59 = vpop.f32.mrb[13].mxu1  ;;  %v856_v60 = vpop.f32.mrb[14].mxu0 }
 0x111   :  { %v913_v61 = vadd.f32 %v912_v59, %v911_v54  ;;  %v914_v62 = vpop.f32.mrb[14].mxu1  ;;  %v857_v63 = vpop.f32.mrb[15].mxu0 }
 0x112   :  { %v797_v1 = vpack.c.bf16 %v619_v57, %v618_v56  ;;  %v497_v2 = vadd.f32 %v855_v58, %v1204_v0  ;;  %v858_v3 = vadd.f32 %v857_v63, %v856_v60  ;;  %v915_v4 = vpop.f32.mrb[15].mxu1 }
 0x113   :  { %v916_v5 = vadd.f32 %v915_v4, %v914_v62 }
 0x114   :  { %815 = vst [vmem:[%s1243_s3 + $0x10] sm:$0xff] %v797_v1   ;;  %v585_v6 = vadd.f32 %v913_v61, %v497_v2  ;;  %v500_v7 = vadd.f32 %v858_v3, %v1204_v0 }
 0x116   :  { %v588_v8 = vadd.f32 %v916_v5, %v500_v7  ;;  %v859_v9 = vpop.f32.mrb[16].mxu0  ;;  %v620_v12 = vmax.f32 %v585_v6, 0.0 }
 0x117   :  { %v917_v10 = vpop.f32.mrb[16].mxu1  ;;  %v860_v11 = vpop.f32.mrb[17].mxu0 }
 0x118   :  { %v621_v13 = vmax.f32 %v588_v8, 0.0  ;;  %v861_v14 = vadd.f32 %v860_v11, %v859_v9  ;;  %v918_v15 = vpop.f32.mrb[17].mxu1  ;;  %v862_v16 = vpop.f32.mrb[18].mxu0 }
 0x119   :  { %v919_v17 = vadd.f32 %v918_v15, %v917_v10  ;;  %v920_v18 = vpop.f32.mrb[18].mxu1  ;;  %v863_v19 = vpop.f32.mrb[19].mxu0 }
 0x11a   :  { %v802_v20 = vpack.c.bf16 %v621_v13, %v620_v12  ;;  %v505_v21 = vadd.f32 %v861_v14, %v1204_v0  ;;  %v864_v22 = vadd.f32 %v863_v19, %v862_v16  ;;  %v921_v23 = vpop.f32.mrb[19].mxu1 }
 0x11b   :  { %v922_v24 = vadd.f32 %v921_v23, %v920_v18 }
 0x11c   :  { %816 = vst [vmem:[%s1243_s3 + $0x18] sm:$0xff] %v802_v20   ;;  %v593_v25 = vadd.f32 %v919_v17, %v505_v21  ;;  %v508_v26 = vadd.f32 %v864_v22, %v1204_v0 }
 0x11e   :  { %v596_v27 = vadd.f32 %v922_v24, %v508_v26  ;;  %v865_v28 = vpop.f32.mrb[20].mxu0  ;;  %v622_v31 = vmax.f32 %v593_v25, 0.0 }
 0x11f   :  { %v923_v29 = vpop.f32.mrb[20].mxu1  ;;  %v866_v30 = vpop.f32.mrb[21].mxu0 }
 0x120   :  { %v623_v32 = vmax.f32 %v596_v27, 0.0  ;;  %v867_v33 = vadd.f32 %v866_v30, %v865_v28  ;;  %v924_v34 = vpop.f32.mrb[21].mxu1  ;;  %v868_v35 = vpop.f32.mrb[22].mxu0 }
 0x121   :  { %v925_v36 = vadd.f32 %v924_v34, %v923_v29  ;;  %v926_v37 = vpop.f32.mrb[22].mxu1  ;;  %v869_v38 = vpop.f32.mrb[23].mxu0 }
 0x122   :  { %v807_v39 = vpack.c.bf16 %v623_v32, %v622_v31  ;;  %v513_v40 = vadd.f32 %v867_v33, %v1204_v0  ;;  %v870_v41 = vadd.f32 %v869_v38, %v868_v35  ;;  %v927_v42 = vpop.f32.mrb[23].mxu1 }
 0x123   :  { %v928_v43 = vadd.f32 %v927_v42, %v926_v37 }
 0x124   :  { %817 = vst [vmem:[%s1243_s3 + $0x20] sm:$0xff] %v807_v39   ;;  %v601_v44 = vadd.f32 %v925_v36, %v513_v40  ;;  %v516_v45 = vadd.f32 %v870_v41, %v1204_v0 }
 0x126   :  { %v604_v46 = vadd.f32 %v928_v43, %v516_v45  ;;  %v871_v47 = vpop.f32.mrb[24].mxu0  ;;  %v624_v50 = vmax.f32 %v601_v44, 0.0 }
 0x127   :  { %v929_v48 = vpop.f32.mrb[24].mxu1  ;;  %v872_v49 = vpop.f32.mrb[25].mxu0 }
 0x128   :  { %v625_v51 = vmax.f32 %v604_v46, 0.0  ;;  %v873_v52 = vadd.f32 %v872_v49, %v871_v47  ;;  %v930_v53 = vpop.f32.mrb[25].mxu1  ;;  %v874_v54 = vpop.f32.mrb[26].mxu0 }
 0x129   :  { %v931_v55 = vadd.f32 %v930_v53, %v929_v48  ;;  %v932_v56 = vpop.f32.mrb[26].mxu1  ;;  %v875_v57 = vpop.f32.mrb[27].mxu0 }
 0x12a   :  { %v812_v58 = vpack.c.bf16 %v625_v51, %v624_v50  ;;  %v521_v59 = vadd.f32 %v873_v52, %v1204_v0  ;;  %v933_v60 = vpop.f32.mrb[27].mxu1 }
 0x12c   :  { %818 = vst [vmem:[%s1243_s3 + $0x28] sm:$0xff] %v812_v58   ;;  %v609_v61 = vadd.f32 %v931_v55, %v521_v59 }
 0x12e   :  { %v626_v62 = vmax.f32 %v609_v61, 0.0 }
 0x130   :  { %v783_v63 = vpack.c.bf16 %v626_v62, %v626_v62 }
 0x132   :  { %692 = vst [vmem:[%s1243_s3 + $0x30] sm:$0x3] %v783_v63 }

// kernel: encoder_forward.7
= control target key start
LH: loop header
LB: loop body
LE: loop exit
PB: predicated region body
PF: predicated region fallthrough
CT: control target
= control target key end

     0   :  { %v169_v28 = vlaneseq  ;;  %v1346_v36 = vmov 1966171168   ;;  %s1685_s0 = inlined_call_operand.vmem [shape: bf16[2,1024], index: 0, kind: input, shape index: {}]   ;;  %s1686_s1 = inlined_call_operand.vmem [shape: bf16[1024,128], index: 1, kind: input, shape index: {}]   ;;  %s1687_s2 = inlined_call_operand.vmem [shape: f32[1,128], index: 2, kind: input, shape index: {}]   ;;  %s1688_s3 = inlined_call_operand.vmem [shape: bf16[128,128], index: 3, kind: input, shape index: {}]   ;;  %s1689_s4 = inlined_call_operand.vmem [shape: f32[1,128], index: 4, kind: input, shape index: {}]   ;;  %s1690_s5 = inlined_call_operand.vmem [shape: bf16[128,128], index: 5, kind: input, shape index: {}]   ;;  %s1691_s6 = inlined_call_operand.vmem [shape: f32[1,128], index: 6, kind: input, shape index: {}]   ;;  %s1692_s7 = inlined_call_operand.hbm [shape: f32[2,128], index: 7, kind: output, shape index: {}]  }
   0x1   :  { %v1241_v0 = vld [vmem:[%s1686_s1 + $0x40] sm:$0xff]   ;;  %v1245_v4 = vld [vmem:[%s1686_s1 + $0x48] sm:$0xff]   ;;  %v1249_v8 = vld [vmem:[%s1686_s1 + $0x50] sm:$0xff]   ;;  %v167_v37 = vunpack.c.l.s4 %v1346_v36 }
   0x2   :  { %v1242_v1 = vld [vmem:[%s1686_s1 + $0xc0] sm:$0xff]   ;;  %1091 = vmatprep.subr.bf16.mxu0 %v1241_v0  ;;  %v1246_v5 = vld [vmem:[%s1686_s1 + $0xc8] sm:$0xff]   ;;  %v1250_v9 = vld [vmem:[%s1686_s1 + $0xd0] sm:$0xff]   ;;  %v170_v33 = vshrl.u32 %v169_v28, 7 }
   0x3   :  { %v1243_v2 = vld [vmem:[%s1686_s1] sm:$0xff]   ;;  %1113 = vmatprep.subr.bf16.mxu1 %v1242_v1  ;;  %v1247_v6 = vld [vmem:[%s1686_s1 + $0x8] sm:$0xff]   ;;  %v1251_v10 = vld [vmem:[%s1686_s1 + $0x10] sm:$0xff]   ;;  %v168_v40 = vunpack.c.0.s8 %v167_v37 }
   0x4   :  { %v1244_v3 = vld [vmem:[%s1686_s1 + $0x80] sm:$0xff]   ;;  %1092 = vmatpush3.bf16.msra.mxu0 %v1243_v2  ;;  %v1248_v7 = vld [vmem:[%s1686_s1 + $0x88] sm:$0xff]   ;;  %v1252_v11 = vld [vmem:[%s1686_s1 + $0x90] sm:$0xff]  }
   0x5   :  { %1114 = vmatpush3.bf16.msra.mxu1 %v1244_v3  ;;  %1093 = vmatprep.subr.bf16.mxu0 %v1245_v4  ;;  %v1253_v12 = vld [vmem:[%s1686_s1 + $0x58] sm:$0xff]   ;;  %v1257_v16 = vld [vmem:[%s1686_s1 + $0x60] sm:$0xff]   ;;  %v1261_v20 = vld [vmem:[%s1686_s1 + $0x68] sm:$0xff]   ;;  %v1495_v41 = vsub.s32 %v168_v40, %v170_v33 }
   0x6   :  { %1115 = vmatprep.subr.bf16.mxu1 %v1246_v5  ;;  %v1254_v13 = vld [vmem:[%s1686_s1 + $0xd8] sm:$0xff]   ;;  %v1258_v17 = vld [vmem:[%s1686_s1 + $0xe0] sm:$0xff]   ;;  %v1262_v21 = vld [vmem:[%s1686_s1 + $0xe8] sm:$0xff]  }
   0x7   :  { %v1255_v14 = vld [vmem:[%s1686_s1 + $0x18] sm:$0xff]   ;;  %v1259_v18 = vld [vmem:[%s1686_s1 + $0x20] sm:$0xff]   ;;  %v1263_v22 = vld [vmem:[%s1686_s1 + $0x28] sm:$0xff]  }
   0x8   :  { %1094 = vmatpush3.bf16.msra.mxu0 %v1247_v6  ;;  %v1256_v15 = vld [vmem:[%s1686_s1 + $0x98] sm:$0xff]   ;;  %v1260_v19 = vld [vmem:[%s1686_s1 + $0xa0] sm:$0xff]   ;;  %v1264_v23 = vld [vmem:[%s1686_s1 + $0xa8] sm:$0xff]  }
   0x9   :  { %1116 = vmatpush3.bf16.msra.mxu1 %v1248_v7  ;;  %1095 = vmatprep.subr.bf16.mxu0 %v1249_v8  ;;  %v1265_v24 = vld [vmem:[%s1686_s1 + $0x70] sm:$0xff]   ;;  %v1269_v29 = vld [vmem:[%s1686_s1 + $0x78] sm:$0xff]   ;;  %v28_v34 = vld [vmem:[%s1685_s0] sm:$0xff] }
   0xa   :  { %1117 = vmatprep.subr.bf16.mxu1 %v1250_v9  ;;  %v1266_v25 = vld [vmem:[%s1686_s1 + $0xf0] sm:$0xff]   ;;  %v1270_v30 = vld [vmem:[%s1686_s1 + $0xf8] sm:$0xff]   ;;  %v1274_v35 = vld [vmem:[%s1686_s1 + $0x140] sm:$0xff]   ;;  %v165_v39 = vcombine.high %v28_v34, %v28_v34  ;;  %v172_v42 = vrot.slane %v28_v34, %v1495_v41 }
   0xb   :  { %v1267_v26 = vld [vmem:[%s1686_s1 + $0x30] sm:$0xff]   ;;  %v1271_v31 = vld [vmem:[%s1686_s1 + $0x38] sm:$0xff]   ;;  %v1275_v38 = vld [vmem:[%s1686_s1 + $0x1c0] sm:$0xff]  }
   0xc   :  { %1096 = vmatpush3.bf16.msra.mxu0 %v1251_v10  ;;  %v1268_v27 = vld [vmem:[%s1686_s1 + $0xb0] sm:$0xff]   ;;  %v1272_v32 = vld [vmem:[%s1686_s1 + $0xb8] sm:$0xff]   ;;  %v1499_v43 = vrot.slane %v165_v39, %v1495_v41  ;;  %v180_v44 = vcombine.high %v172_v42, %v172_v42  ;;  %v188_v45 = vrot.slane %v172_v42, %v1495_v41  ;;  %v1276_v47 = vld [vmem:[%s1686_s1 + $0x100] sm:$0xff]  }
   0xd   :  { %1118 = vmatpush3.bf16.msra.mxu1 %v1252_v11  ;;  %1097 = vmatprep.subr.bf16.mxu0 %v1253_v12  ;;  %v1277_v49 = vld [vmem:[%s1686_s1 + $0x180] sm:$0xff]   ;;  %v1278_v52 = vld [vmem:[%s1686_s1 + $0x148] sm:$0xff]   ;;  %v1282_v58 = vld [vmem:[%s1686_s1 + $0x150] sm:$0xff]  }
   0xe   :  { %1119 = vmatprep.subr.bf16.mxu1 %v1254_v13  ;;  %v181_v46 = vcombine.high %v1499_v43, %v1499_v43  ;;  %v202_v48 = vrot.slane %v180_v44, %v1495_v41  ;;  %v210_v51 = vcombine.high %v188_v45, %v188_v45  ;;  %v1279_v54 = vld [vmem:[%s1686_s1 + $0x1c8] sm:$0xff]   ;;  %v1283_v59 = vld [vmem:[%s1686_s1 + $0x1d0] sm:$0xff]   ;;  %v1286_v62 = vld [vmem:[%s1686_s1 + $0x158] sm:$0xff]  }
   0xf   :  { %v1280_v55 = vld [vmem:[%s1686_s1 + $0x108] sm:$0xff]   ;;  %v1284_v60 = vld [vmem:[%s1686_s1 + $0x110] sm:$0xff]   ;;  %v1287_v63 = vld [vmem:[%s1686_s1 + $0x1d8] sm:$0xff]  }
  0x10   :  { %1098 = vmatpush3.bf16.msra.mxu0 %v1255_v14  ;;  %v209_v50 = vrot.slane %v181_v46, %v1495_v41  ;;  %638 = vmatprep.mubr.bf16.mxu0 %v202_v48  ;;  %v212_v53 = vcombine.high %v202_v48, %v202_v48  ;;  %v1281_v57 = vld [vmem:[%s1686_s1 + $0x188] sm:$0xff]   ;;  %v1285_v61 = vld [vmem:[%s1686_s1 + $0x190] sm:$0xff]   ;;  %v1288_v0 = vld [vmem:[%s1686_s1 + $0x118] sm:$0xff]  }
  0x11   :  { %1120 = vmatpush3.bf16.msra.mxu1 %v1256_v15  ;;  %1099 = vmatprep.subr.bf16.mxu0 %v1257_v16  ;;  %v1289_v1 = vld [vmem:[%s1686_s1 + $0x198] sm:$0xff]   ;;  %v1290_v2 = vld [vmem:[%s1686_s1 + $0x160] sm:$0xff]   ;;  %v1294_v6 = vld [vmem:[%s1686_s1 + $0x168] sm:$0xff]  }
  0x12   :  { %1121 = vmatprep.subr.bf16.mxu1 %v1258_v17  ;;  %v213_v56 = vcombine.high %v209_v50, %v209_v50  ;;  %678 = vmatprep.mubr.bf16.mxu1 %v212_v53  ;;  %v1291_v3 = vld [vmem:[%s1686_s1 + $0x1e0] sm:$0xff]   ;;  %v1295_v7 = vld [vmem:[%s1686_s1 + $0x1e8] sm:$0xff]   ;;  %v1298_v10 = vld [vmem:[%s1686_s1 + $0x170] sm:$0xff]  }
  0x13   :  { %v1292_v4 = vld [vmem:[%s1686_s1 + $0x120] sm:$0xff]   ;;  %v1296_v8 = vld [vmem:[%s1686_s1 + $0x128] sm:$0xff]   ;;  %v1299_v11 = vld [vmem:[%s1686_s1 + $0x1f0] sm:$0xff]  }
  0x14   :  { %1100 = vmatpush3.bf16.msra.mxu0 %v1259_v18  ;;  %v1293_v5 = vld [vmem:[%s1686_s1 + $0x1a0] sm:$0xff]   ;;  %v1297_v9 = vld [vmem:[%s1686_s1 + $0x1a8] sm:$0xff]   ;;  %v1300_v12 = vld [vmem:[%s1686_s1 + $0x130] sm:$0xff]   ;;  %v195_v18 = vrot.slane %v1499_v43, %v1495_v41 }
  0x15   :  { %1122 = vmatpush3.bf16.msra.mxu1 %v1260_v19  ;;  %1101 = vmatprep.subr.bf16.mxu0 %v1261_v20  ;;  %v1302_v13 = vld [vmem:[%s1686_s1 + $0x178] sm:$0xff]   ;;  %v1301_v14 = vld [vmem:[%s1686_s1 + $0x1b0] sm:$0xff]  }
  0x16   :  { %1123 = vmatprep.subr.bf16.mxu1 %v1262_v21  ;;  %v1303_v15 = vld [vmem:[%s1686_s1 + $0x1f8] sm:$0xff]  }
  0x17   :  { %v1304_v16 = vld [vmem:[%s1686_s1 + $0x138] sm:$0xff]  }
  0x18   :  { %1102 = vmatpush3.bf16.msra.mxu0 %v1263_v22  ;;  %v1305_v17 = vld [vmem:[%s1686_s1 + $0x1b8] sm:$0xff]  }
  0x19   :  { %1124 = vmatpush3.bf16.msra.mxu1 %v1264_v23  ;;  %1103 = vmatprep.subr.bf16.mxu0 %v1265_v24 }
  0x1a   :  { %1125 = vmatprep.subr.bf16.mxu1 %v1266_v25 }
  0x1c   :  { %1104 = vmatpush3.bf16.msra.mxu0 %v1267_v26 }
  0x1d   :  { %1126 = vmatpush3.bf16.msra.mxu1 %v1268_v27  ;;  %1105 = vmatprep.subr.bf16.mxu0 %v1269_v29 }
  0x1e   :  { %1127 = vmatprep.subr.bf16.mxu1 %v1270_v30 }
  0x20   :  { %1106 = vmatpush3.bf16.msra.mxu0 %v1271_v31 }
  0x21   :  { %1128 = vmatpush3.bf16.msra.mxu1 %v1272_v32  ;;  %1135 = vmatprep.subr.bf16.mxu0 %v1274_v35 }
  0x22   :  { %1157 = vmatprep.subr.bf16.mxu1 %v1275_v38 }
  0x23   :  { %639 = vmatmul.mubr.bf16.vlgmr.msra.gmra.mrb[0].mxu0 %v188_v45 }
  0x24   :  { %1136 = vmatpush3.bf16.msra.mxu0 %v1276_v47  ;;  %679 = vmatmul.mubr.bf16.vlgmr.msra.gmra.mrb[0].mxu1 %v210_v51 }
  0x25   :  { %1137 = vmatprep.subr.bf16.mxu0 %v1278_v52  ;;  %1158 = vmatpush3.bf16.msra.mxu1 %v1277_v49 }
  0x26   :  { %718 = vmatprep.mubr.bf16.mxu0 %v209_v50  ;;  %1159 = vmatprep.subr.bf16.mxu1 %v1279_v54 }
  0x27   :  { %758 = vmatprep.mubr.bf16.mxu1 %v213_v56 }
  0x28   :  { %1138 = vmatpush3.bf16.msra.mxu0 %v1280_v55 }
  0x29   :  { %1139 = vmatprep.subr.bf16.mxu0 %v1282_v58  ;;  %1160 = vmatpush3.bf16.msra.mxu1 %v1281_v57 }
  0x2a   :  { %1161 = vmatprep.subr.bf16.mxu1 %v1283_v59 }
  0x2c   :  { %1140 = vmatpush3.bf16.msra.mxu0 %v1284_v60 }
  0x2d   :  { %1141 = vmatprep.subr.bf16.mxu0 %v1286_v62  ;;  %1162 = vmatpush3.bf16.msra.mxu1 %v1285_v61 }
  0x2e   :  { %1163 = vmatprep.subr.bf16.mxu1 %v1287_v63 }
  0x30   :  { %1142 = vmatpush3.bf16.msra.mxu0 %v1288_v0 }
  0x31   :  { %1143 = vmatprep.subr.bf16.mxu0 %v1290_v2  ;;  %1164 = vmatpush3.bf16.msra.mxu1 %v1289_v1 }
  0x32   :  { %1165 = vmatprep.subr.bf16.mxu1 %v1291_v3 }
  0x34   :  { %1144 = vmatpush3.bf16.msra.mxu0 %v1292_v4 }
  0x35   :  { %1145 = vmatprep.subr.bf16.mxu0 %v1294_v6  ;;  %1166 = vmatpush3.bf16.msra.mxu1 %v1293_v5 }
  0x36   :  { %1167 = vmatprep.subr.bf16.mxu1 %v1295_v7 }
  0x38   :  { %1146 = vmatpush3.bf16.msra.mxu0 %v1296_v8 }
  0x39   :  { %1147 = vmatprep.subr.bf16.mxu0 %v1298_v10  ;;  %1168 = vmatpush3.bf16.msra.mxu1 %v1297_v9 }
  0x3a   :  { %1169 = vmatprep.subr.bf16.mxu1 %v1299_v11 }
  0x3c   :  { %1148 = vmatpush3.bf16.msra.mxu0 %v1300_v12 }
  0x3d   :  { %1149 = vmatprep.subr.bf16.mxu0 %v1302_v13  ;;  %1170 = vmatpush3.bf16.msra.mxu1 %v1301_v14 }
  0x3e   :  { %1171 = vmatprep.subr.bf16.mxu1 %v1303_v15 }
  0x40   :  { %1150 = vmatpush3.bf16.msra.mxu0 %v1304_v16 }
  0x41   :  { %12 = vsyncpa [#allocation3], 0  ;;  %v211_v19 = vcombine.high %v195_v18, %v195_v18  ;;  %1172 = vmatpush3.bf16.msra.mxu1 %v1305_v17  ;;  %v1306_v20 = vld [vmem:[%s1688_s3] sm:$0xff]   ;;  %v1347_v21 = vmov 0.0   ;;  %v1307_v22 = vld [vmem:[%s1688_s3 + $0x8] sm:$0xff]   ;;  %vm1348_vm0 = vmmov 0  }
  0x42   :  { %1197 = vmatprep.subr.bf16.mxu0 %v1347_v21  ;;  %1217 = vmatprep.subr.bf16.mxu1 %v1347_v21  ;;  %v1308_v23 = vld [vmem:[%s1688_s3 + $0x10] sm:$0xff]   ;;  %v1309_v24 = vld [vmem:[%s1688_s3 + $0x18] sm:$0xff]   ;;  %v1310_v25 = vld [vmem:[%s1688_s3 + $0x20] sm:$0xff]   ;;  %s1349_s23 = smov [#allocation2]  }
  0x43   :  { %719 = vmatmul.mubr.bf16.vlgmr.msra.gmra.mrb[4].mxu0 %v195_v18  ;;  %v1311_v26 = vld [vmem:[%s1688_s3 + $0x28] sm:$0xff]   ;;  %v1312_v27 = vld [vmem:[%s1688_s3 + $0x30] sm:$0xff]   ;;  %v1313_v28 = vld [vmem:[%s1688_s3 + $0x38] sm:$0xff]  }
  0x44   :  { %759 = vmatmul.mubr.bf16.vlgmr.msra.gmra.mrb[4].mxu1 %v211_v19  ;;  %1198 = vmatpush3.bf16.msra.mxu0 %v1306_v20  ;;  %v1314_v29 = vld [vmem:[%s1690_s5] sm:$0xff]   ;;  %v1315_v30 = vld [vmem:[%s1690_s5 + $0x8] sm:$0xff]   ;;  %v1316_v31 = vld [vmem:[%s1690_s5 + $0x10] sm:$0xff]  }
  0x45   :  { %1199 = vmatprep.subr.bf16.mxu0 %v1347_v21  ;;  %1213 = vmatprep.mubr.msk.bf16.mxu0 %vm1348_vm0, %v1347_v21  ;;  %v1317_v32 = vld [vmem:[%s1690_s5 + $0x18] sm:$0xff]   ;;  %v1318_v33 = vld [vmem:[%s1690_s5 + $0x20] sm:$0xff]   ;;  %v1319_v34 = vld [vmem:[%s1690_s5 + $0x28] sm:$0xff]  }
  0x46   :  { %1233 = vmatprep.mubr.msk.bf16.mxu1 %vm1348_vm0, %v1347_v21  ;;  %1218 = vmatpush3.bf16.msra.mxu1 %v1314_v29  ;;  %v1008_v36 = vld [vmem:[%s1687_s2] ss:$0 sm:$0xff]  ;;  %v1320_v62 = vld [vmem:[%s1690_s5 + $0x30] sm:$0xff]   ;;  %v1321_v63 = vld [vmem:[%s1690_s5 + $0x38] sm:$0xff]   ;;  %s1000_s5 = sshll.u32 %s1349_s23, 4  ;;  %s1001_s5 = int_to_ptr.vmem [resolvable:$true] %s1000_s5 }
  0x47   :  { %1219 = vmatprep.subr.bf16.mxu1 %v1347_v21  ;;  %v1073_v0 = vld [vmem:[%s1689_s4] ss:$0 sm:$0xff]  ;;  %s1322_s4 = scalar_lea.vmem %s1001_s5, 32  ;;  %p1327_p1 = scmp.lt.s32.totalorder %s1001_s5, %s1001_s5 }
  0x48   :  { %1200 = vmatpush3.bf16.msra.mxu0 %v1307_v22  ;;  %v1082_v8 = vld [vmem:[%s1691_s6] ss:$0 sm:$0xff]  ;;  %p1323_p0 = scmp.ne.s32.totalorder %s1001_s5, %s1322_s4  ;;  %p1328_p2 = scmp.lt.s32.totalorder %s1322_s4, %s1322_s4 }
  0x49   :  { %1201 = vmatprep.subr.bf16.mxu0 %v1347_v21 }
  0x4a   :  { %1220 = vmatpush3.bf16.msra.mxu1 %v1315_v30  ;;  %p1329_p3 = por %p1328_p2, %p1327_p1 }
  0x4b   :  { %1221 = vmatprep.subr.bf16.mxu1 %v1347_v21 }
  0x4c   :  { %1202 = vmatpush3.bf16.msra.mxu0 %v1308_v23  ;;  %p1330_p4 = pnand %p1329_p3, %p1323_p0 }
  0x4d   :  { %1203 = vmatprep.subr.bf16.mxu0 %v1347_v21 }
  0x4e   :  { %1222 = vmatpush3.bf16.msra.mxu1 %v1316_v31 }
  0x4f   :  { %1223 = vmatprep.subr.bf16.mxu1 %v1347_v21 }
  0x50   :  { %1204 = vmatpush3.bf16.msra.mxu0 %v1309_v24 }
  0x51   :  { %1205 = vmatprep.subr.bf16.mxu0 %v1347_v21 }
  0x52   :  { %1224 = vmatpush3.bf16.msra.mxu1 %v1317_v32 }
  0x53   :  { %1225 = vmatprep.subr.bf16.mxu1 %v1347_v21 }
  0x54   :  { %1206 = vmatpush3.bf16.msra.mxu0 %v1310_v25 }
  0x55   :  { %1207 = vmatprep.subr.bf16.mxu0 %v1347_v21 }
  0x56   :  { %1226 = vmatpush3.bf16.msra.mxu1 %v1318_v33 }
  0x57   :  { %1227 = vmatprep.subr.bf16.mxu1 %v1347_v21 }
  0x58   :  { %1208 = vmatpush3.bf16.msra.mxu0 %v1311_v26 }
  0x59   :  { %1209 = vmatprep.subr.bf16.mxu0 %v1347_v21 }
  0x5a   :  { %1228 = vmatpush3.bf16.msra.mxu1 %v1319_v34 }
  0x5b   :  { %1229 = vmatprep.subr.bf16.mxu1 %v1347_v21 }
  0x5c   :  { %1210 = vmatpush3.bf16.msra.mxu0 %v1312_v27 }
  0x5d   :  { %1211 = vmatprep.subr.bf16.mxu0 %v1347_v21 }
  0x5e   :  { %1230 = vmatpush3.bf16.msra.mxu1 %v1320_v62 }
  0x5f   :  { %1231 = vmatprep.subr.bf16.mxu1 %v1347_v21 }
  0x60   :  { %1212 = vmatpush3.bf16.msra.mxu0 %v1313_v28 }
  0x62   :  { %1232 = vmatpush3.bf16.msra.mxu1 %v1321_v63 }
  0xf6   :  { %v1107_v35 = vpop.f32.mrb[0].mxu0 }
  0xf7   :  { %v1108_v37 = vpop.f32.mrb[1].mxu0  ;;  %v1129_v38 = vpop.f32.mrb[0].mxu1 }
  0xf8   :  { %v1109_v39 = vadd.f32 %v1108_v37, %v1107_v35  ;;  %v1110_v40 = vpop.f32.mrb[2].mxu0  ;;  %v1130_v41 = vpop.f32.mrb[1].mxu1 }
  0xf9   :  { %v1111_v42 = vpop.f32.mrb[3].mxu0  ;;  %v1131_v44 = vadd.f32 %v1130_v41, %v1129_v38  ;;  %v1132_v45 = vpop.f32.mrb[2].mxu1 }
  0xfa   :  { %v641_v43 = vadd.f32 %v1109_v39, %v1008_v36  ;;  %v1133_v46 = vpop.f32.mrb[3].mxu1 }
  0xfc   :  { %v681_v47 = vadd.f32 %v1131_v44, %v641_v43 }
 0x116   :  { %v1151_v48 = vpop.f32.mrb[4].mxu0 }
 0x117   :  { %v1152_v49 = vpop.f32.mrb[5].mxu0  ;;  %v1173_v50 = vpop.f32.mrb[4].mxu1 }
 0x118   :  { %v1153_v51 = vadd.f32 %v1152_v49, %v1151_v48  ;;  %v1154_v52 = vpop.f32.mrb[6].mxu0  ;;  %v1174_v53 = vpop.f32.mrb[5].mxu1 }
 0x119   :  { %v1155_v54 = vpop.f32.mrb[7].mxu0  ;;  %v1175_v56 = vadd.f32 %v1174_v53, %v1173_v50  ;;  %v1176_v57 = vpop.f32.mrb[6].mxu1 }
 0x11a   :  { %v721_v55 = vadd.f32 %v1153_v51, %v681_v47  ;;  %v1177_v58 = vpop.f32.mrb[7].mxu1 }
 0x11c   :  { %v761_v59 = vadd.f32 %v1175_v56, %v721_v55 }
 0x11e   :  { %v766_v60 = vmax.f32 %v761_v59, 0.0 }
 0x120   :  { %v767_v61 = vpack.c.bf16 %v766_v60, %v766_v60 }
 0x122   :  { %1214 = vmatmul.mubr.bf16.vlgmr.msra.gmra.mrb[8].mxu0 %v767_v61 }
 0x1f5   :  { %v873_v1 = vpop.f32.mrb[8].mxu0 }
 0x1f6   :  { %v874_v2 = vadd.f32 %v1073_v0, %v873_v1  ;;  %v1215_v3 = vpop.f32.mrb[9].mxu0 }
 0x1f7   :  { %v876_v4 = vpop.f32.mrb[10].mxu0 }
 0x1f8   :  { %v879_v5 = vmax.f32 %v874_v2, 0.0  ;;  %v1216_v6 = vpop.f32.mrb[11].mxu0 }
 0x1fa   :  { %v880_v7 = vpack.c.bf16 %v879_v5, %v879_v5 }
 0x1fc   :  { %1234 = vmatmul.mubr.bf16.vlgmr.msra.gmra.mrb[8].mxu1 %v880_v7 }
 0x2cf   :  { %v986_v9 = vpop.f32.mrb[8].mxu1 }
 0x2d0   :  { %v987_v10 = vadd.f32 %v1082_v8, %v986_v9  ;;  %v1235_v11 = vpop.f32.mrb[9].mxu1 }
 0x2d1   :  { %v989_v12 = vpop.f32.mrb[10].mxu1 }
 0x2d2   :  { %v992_v13 = vmax.f32 %v987_v10, 0.0  ;;  %v1236_v14 = vpop.f32.mrb[11].mxu1 }
 0x2d4   :  { %993 = vst [vmem:[#allocation2] sm:$0x3] %v992_v13 }
 0x2d5   :  { %1333 = shalt.err (!%p1330_p4)
}
 0x2d6   :  { %s1334_s6 = scalar_lea.hbm %s1692_s7, 32 }
 0x2d7   :  { %p1335_p5 = scmp.ne.s32.totalorder %s1692_s7, %s1334_s6  ;;  %p1338_p6 = scmp.lt.u32.totalorder %s1334_s6, %s1692_s7 }
 0x2d9   :  { %p1340_p7 = pnand %p1338_p6, %p1335_p5 }
 0x2db   :  { %1343 = shalt.err (!%p1340_p7)
}
 0x2dc   :  { %1003 = dma.vmem_to_hbm [thread:$0]  %s1001_s5, 32, %s1692_s7, [#allocation3]  }
 0x2dd   :  { %1344 = dma.done.wait [#allocation3], 32  }
 0x2de   :  { %1345 = vsyncadd [#allocation3], 4294967264 }
 0x2df   :  { %1007 = vsyncpa [#allocation3], 1 }

</bundles_post_ra>
